<compile_context>
chip_gen: v7x
topology: tpu7x:2x2x1
jax: 0.10.0
libtpu: 0.0.40
codegen_flags: <defaults>
</compile_context>

<pallas_src>
import math

import numpy as np
import jax
import jax.numpy as jnp
from jax.experimental import pallas as pl
from jax.experimental.pallas import tpu as pltpu

EPS = 1e-5                                   # nn.LayerNorm default eps
MIN_VAL = float(jnp.finfo(jnp.float32).min)  # torch.finfo(torch.float32).min
MXU_DTYPE = jnp.bfloat16                     # MXU operand dtype (accumulation stays f32)


# ----------------------------- config -----------------------------
class Config:
    d_model = 32
    feed_forward_dim = 64
    q_n_heads = 4
    kv_n_heads = 2
    num_dec_layers = 2
    dec_vocab_size = 64
    dec_pad_id = 0
    max_seq_len = 8
    alibi_bias_max = 8
    norm_type = "layernorm"   # -> torch.nn.LayerNorm
    attn_impl = "torch"
    no_bias = False
    init_device = None


# ----------------------------- alibi slopes (compile-time, numpy) -----------------------------
def gen_slopes(n_heads, alibi_bias_max=8):
    _n_heads = 2 ** math.ceil(math.log2(n_heads))
    m = np.arange(1, _n_heads + 1, dtype=np.float32) * (alibi_bias_max / _n_heads)
    slopes = 1.0 / np.power(2.0, m)
    if _n_heads != n_heads:
        slopes = np.concatenate([slopes[1::2], slopes[::2]])[:n_heads]
    return slopes  # (n_heads,)


# ----------------------------- VMEM accounting -----------------------------
def _padded_vmem_bytes(shape, dtype):
    item = jnp.dtype(dtype).itemsize
    sub = 8 * max(1, 4 // item)               # f32 -> 8 rows per tile, bf16 -> 16
    if len(shape) < 2:
        return max(int(np.prod(shape)) * item, 512)
    rows = -(-int(shape[-2]) // sub) * sub
    lanes = -(-int(shape[-1]) // 128) * 128
    lead = 1
    for d in shape[:-2]:
        lead *= int(d)
    return lead * rows * lanes * item


# ----------------------------- fully fused decoder kernel -----------------------------
def make_decoder_call(cfg, B, S, S_enc):
    D = cfg.d_model
    F = cfg.feed_forward_dim
    Hq, Hkv = cfg.q_n_heads, cfg.kv_n_heads
    Dh = D // Hq
    KVd = Dh * Hkv
    rep = Hq // Hkv
    N = Hq * B                                 # head-batched attention batch size
    L = cfg.num_dec_layers
    V = cfg.dec_vocab_size
    scale = 1.0 / math.sqrt(Dh)

    # weight-slab lane offsets (wide blocks first so the big slices are vreg-aligned)
    QKV_W = D + 2 * KVd
    GU_OFF = 0
    QKV_OFF = GU_OFF + 2 * F
    O1_OFF = QKV_OFF + QKV_W
    Q2_OFF = O1_OFF + D
    KV2_OFF = Q2_OFF + D
    O2_OFF = KV2_OFF + 2 * KVd
    W_TOT = O2_OFF + D

    def _ln(v, g, b):
        mu = jnp.mean(v, axis=-1, keepdims=True)
        var = jnp.mean(jnp.square(v - mu), axis=-1, keepdims=True)
        return (v - mu) * jax.lax.rsqrt(var + EPS) * g + b

    def kernel(x_ref, enc_ref, sbias_ref, cbias_ref, vec_ref, wmat_ref, wdn_ref,
               fnorm_ref, wlog_ref,
               logits_ref, attnw_ref,
               q_scr, ks_scr, vs_scr, kc_scr, vc_scr):
        x = x_ref[...]          # (B*S, D)       f32 residual stream
        enc = enc_ref[...]      # (B*S_enc, D)   f32 encoder outputs (not normalized)
        sbias = sbias_ref[...]  # (N, S, S)      alibi + causal + key-padding (additive)
        cbias = cbias_ref[...]  # (N, S, S_enc)  alibi + key-padding (additive)

        def gather_heads(mat, off, s_k, scr, n_src_heads, repeat):
            # mat: (B*s_k, _) f32 projection output with heads packed on lanes.
            # Writes head-major (N, s_k, Dh) pieces into VMEM scratch (leading-dim stores
            # only); GQA repeat_kv handled by writing each kv head `repeat` times.
            for i in range(n_src_heads):
                piece = mat[:, off + i * Dh: off + (i + 1) * Dh].reshape(B, s_k, Dh)
                for r in range(repeat):
                    h = i * repeat + r
                    scr[h * B:(h + 1) * B] = piece

        def attend(qmat, qoff, kvmat, koff, voff, bias, s_k, k_scr, v_scr):
            gather_heads(qmat, qoff, S, q_scr, Hq, 1)
            gather_heads(kvmat, koff, s_k, k_scr, Hkv, rep)
            gather_heads(kvmat, voff, s_k, v_scr, Hkv, rep)
            qa = q_scr[...].astype(MXU_DTYPE)
            ka = k_scr[...].astype(MXU_DTYPE)
            va = v_scr[...].astype(MXU_DTYPE)
            # single batched matmul over all (head, batch) pairs
            s = jnp.einsum('nqd,nkd->nqk', qa, ka,
                           preferred_element_type=jnp.float32) * scale + bias
            m = jnp.max(s, axis=-1, keepdims=True)
            e = jnp.exp(s - m)
            p = e / jnp.sum(e, axis=-1, keepdims=True)          # (N, S, s_k) f32
            ctx = jnp.einsum('nqk,nkd->nqd', p.astype(MXU_DTYPE), va,
                             preferred_element_type=jnp.float32)  # (N, S, Dh) f32
            return ctx, p

        def out_proj(ctx, wo, bo):
            # sum_h ctx_h @ Wo[h*Dh:(h+1)*Dh, :]  ==  concat_h(ctx_h) @ Wo, without the lane
            # concatenation (leading-dim slices + sublane weight slices only).
            out = bo
            for h in range(Hq):
                c2 = ctx[h * B:(h + 1) * B].reshape(B * S, Dh).astype(MXU_DTYPE)
                out = out + jnp.dot(c2, wo[h * Dh:(h + 1) * Dh, :],
                                    preferred_element_type=jnp.float32)
            return out

        for l in range(L):
            vec = vec_ref[l]    # (11, QKV_W) f32: LN params + projection biases
            wm = wmat_ref[l]    # (D, W_TOT)  bf16: [wgu | wqkv | wo1 | wq2 | wkv2 | wo2]
            wdn = wdn_ref[l]    # (F, D)      bf16

            ln1g, ln1b = vec[0:1, :D], vec[1:2, :D]
            ln2g, ln2b = vec[2:3, :D], vec[3:4, :D]
            ln3g, ln3b = vec[4:5, :D], vec[5:6, :D]
            bqkv = vec[6:7, :QKV_W]
            bo1 = vec[7:8, :D]
            bq2 = vec[8:9, :D]
            bkv2 = vec[9:10, :2 * KVd]
            bo2 = vec[10:11, :D]

            wgu = wm[:, GU_OFF:GU_OFF + 2 * F]
            wqkv = wm[:, QKV_OFF:QKV_OFF + QKV_W]
            wo1 = wm[:, O1_OFF:O1_OFF + D]
            wq2 = wm[:, Q2_OFF:Q2_OFF + D]
            wkv2 = wm[:, KV2_OFF:KV2_OFF + 2 * KVd]
            wo2 = wm[:, O2_OFF:O2_OFF + D]

            # ---- self-attention: LN1 + fused QKV + causal alibi attn + out-proj + residual ----
            a = _ln(x, ln1g, ln1b)
            qkv = jnp.dot(a.astype(MXU_DTYPE), wqkv,
                          preferred_element_type=jnp.float32) + bqkv
            ctx, _ = attend(qkv, 0, qkv, D, D + KVd, sbias, S, ks_scr, vs_scr)
            x = x + out_proj(ctx, wo1, bo1)

            # ---- cross-attention over enc_outputs: LN2 + Q / fused KV + attn + out-proj + residual ----
            a2 = _ln(x, ln2g, ln2b)
            q2 = jnp.dot(a2.astype(MXU_DTYPE), wq2,
                         preferred_element_type=jnp.float32) + bq2
            kv2 = jnp.dot(enc.astype(MXU_DTYPE), wkv2,
                          preferred_element_type=jnp.float32) + bkv2
            ctx2, p2 = attend(q2, 0, kv2, 0, KVd, cbias, S_enc, kc_scr, vc_scr)
            attnw_ref[l] = p2      # only cross-attn weights are returned (matches torch layer)
            x = x + out_proj(ctx2, wo2, bo2)

            # ---- LlamaMLP: LN3 + fused gate|up (2F lanes) + SiLU*up + down + residual ----
            mm = _ln(x, ln3g, ln3b)
            gu = jnp.dot(mm.astype(MXU_DTYPE), wgu, preferred_element_type=jnp.float32)
            g, u = gu[:, :F], gu[:, F:]
            act = (g * jax.nn.sigmoid(g)) * u
            x = x + jnp.dot(act.astype(MXU_DTYPE), wdn, preferred_element_type=jnp.float32)

        # ---- norm_f + logits_fc (fused into the same kernel) ----
        fg, fb = fnorm_ref[0:1, :], fnorm_ref[1:2, :]
        xf = _ln(x, fg, fb)
        logits_ref[...] = jnp.dot(xf.astype(MXU_DTYPE), wlog_ref[...],
                                  preferred_element_type=jnp.float32)

    in_shapes = [
        ((B * S, D), jnp.float32),            # x
        ((B * S_enc, D), jnp.float32),        # enc
        ((N, S, S), jnp.float32),             # self bias
        ((N, S, S_enc), jnp.float32),         # cross bias
        ((L, 11, QKV_W), jnp.float32),        # LN params + biases slab
        ((L, D, W_TOT), MXU_DTYPE),           # (D, *) weight slab
        ((L, F, D), MXU_DTYPE),               # down-proj
        ((2, D), jnp.float32),                # norm_f gamma/beta
        ((D, V), MXU_DTYPE),                  # logits weight
    ]
    out_shapes = [((B * S, V), jnp.float32), ((L, N, S, S_enc), jnp.float32)]
    scr_shapes = ([((N, S, Dh), jnp.float32)] * 3
                  + [((N, S_enc, Dh), jnp.float32)] * 2)
    total_bytes = sum(_padded_vmem_bytes(s, d)
                      for s, d in in_shapes + out_shapes + scr_shapes)
    vmem_limit = int(max(8 * 1024 * 1024, 4 * total_bytes))   # derived, generous headroom

    vmem = pl.BlockSpec(memory_space=pltpu.MemorySpace.VMEM)
    return pl.pallas_call(
        kernel,
        out_shape=tuple(jax.ShapeDtypeStruct(s, d) for s, d in out_shapes),
        in_specs=[vmem] * len(in_shapes),
        out_specs=(vmem, vmem),
        scratch_shapes=[pltpu.VMEM(s, d) for s, d in scr_shapes],
        compiler_params=pltpu.CompilerParams(vmem_limit_bytes=vmem_limit),
    )


# ----------------------------- params -----------------------------
def init_params(cfg, key):
    D, F, V = cfg.d_model, cfg.feed_forward_dim, cfg.dec_vocab_size
    Dh = D // cfg.q_n_heads
    KVd = Dh * cfg.kv_n_heads

    state = {"key": key}

    def w(shape, scale=0.02):
        state["key"], sub = jax.random.split(state["key"])
        return jax.random.normal(sub, shape, dtype=jnp.float32) * scale

    emb = w((V, D)).at[cfg.dec_pad_id].set(0.0)   # nn.Embedding padding_idx row is zero

    layers = []
    for _ in range(cfg.num_dec_layers):
        wq1, wk1, wv1 = w((D, D)), w((D, KVd)), w((D, KVd))
        bq1, bk1, bv1 = w((D,), 0.01), w((KVd,), 0.01), w((KVd,), 0.01)
        wq2, wk2, wv2 = w((D, D)), w((D, KVd)), w((D, KVd))
        bq2, bk2, bv2 = w((D,), 0.01), w((KVd,), 0.01), w((KVd,), 0.01)
        layers.append({
            "ln1_g": jnp.ones((1, D), jnp.float32), "ln1_b": jnp.zeros((1, D), jnp.float32),
            "ln2_g": jnp.ones((1, D), jnp.float32), "ln2_b": jnp.zeros((1, D), jnp.float32),
            "ln3_g": jnp.ones((1, D), jnp.float32), "ln3_b": jnp.zeros((1, D), jnp.float32),
            "wqkv": jnp.concatenate([wq1, wk1, wv1], axis=1),           # (D, D+2*KVd)
            "bqkv": jnp.concatenate([bq1, bk1, bv1]).reshape(1, -1),
            "wo1": w((D, D)), "bo1": w((D,), 0.01).reshape(1, D),
            "wq2": wq2, "bq2": bq2.reshape(1, D),
            "wkv2": jnp.concatenate([wk2, wv2], axis=1),                # (D, 2*KVd)
            "bkv2": jnp.concatenate([bk2, bv2]).reshape(1, -1),
            "wo2": w((D, D)), "bo2": w((D,), 0.01).reshape(1, D),
            "wgu": jnp.concatenate([w((D, F)), w((D, F))], axis=1),     # gate|up fused (D, 2F)
            "wdown": w((F, D)),
        })

    return {
        "emb": emb,
        "layers": layers,
        "norm_f_g": jnp.ones((1, D), jnp.float32),
        "norm_f_b": jnp.zeros((1, D), jnp.float32),
        "logits_w": w((D, V)),        # logits_fc (bias=False)
    }


def pack_params(params, cfg):
    """Pack per-layer params into the few slabs the fused kernel consumes (done once)."""
    D, F = cfg.d_model, cfg.feed_forward_dim
    Dh = D // cfg.q_n_heads
    KVd = Dh * cfg.kv_n_heads
    QKV_W = D + 2 * KVd

    def padv(v):
        v = v.reshape(1, -1)
        return jnp.pad(v, ((0, 0), (0, QKV_W - v.shape[1])))

    vecs, wmats, wdns = [], [], []
    for lp in params["layers"]:
        vec = jnp.concatenate([
            padv(lp["ln1_g"]), padv(lp["ln1_b"]),
            padv(lp["ln2_g"]), padv(lp["ln2_b"]),
            padv(lp["ln3_g"]), padv(lp["ln3_b"]),
            padv(lp["bqkv"]), padv(lp["bo1"]), padv(lp["bq2"]),
            padv(lp["bkv2"]), padv(lp["bo2"])], axis=0)               # (11, QKV_W)
        wm = jnp.concatenate([lp["wgu"], lp["wqkv"], lp["wo1"], lp["wq2"],
                              lp["wkv2"], lp["wo2"]], axis=1)          # (D, 320)
        vecs.append(vec[None])
        wmats.append(wm[None].astype(MXU_DTYPE))
        wdns.append(lp["wdown"][None].astype(MXU_DTYPE))

    return {
        "emb": params["emb"],
        "vec": jnp.concatenate(vecs, axis=0),
        "wmat": jnp.concatenate(wmats, axis=0),
        "wdn": jnp.concatenate(wdns, axis=0),
        "fnorm": jnp.concatenate([params["norm_f_g"], params["norm_f_b"]], axis=0),
        "wlog": params["logits_w"].astype(MXU_DTYPE),
    }


# ----------------------------- forward -----------------------------
def transformer_decoder_forward(packed, cfg, dec_inputs, enc_outputs,
                                self_attention_mask=None, cross_attention_mask=None):
    B, S = dec_inputs.shape
    S_enc = enc_outputs.shape[1]
    D, Hq, V = cfg.d_model, cfg.q_n_heads, cfg.dec_vocab_size
    N = Hq * B
    L = cfg.num_dec_layers

    # TODO(synk): embedding gather stays as jnp.take in the wrapper (no clean single-kernel
    # Pallas gather for a tiny vocab lookup).
    x = jnp.take(packed["emb"], dec_inputs.reshape(-1), axis=0)          # (B*S, D)
    enc2d = enc_outputs.astype(jnp.float32).reshape(B * S_enc, D)

    sm = (jnp.ones((B, S)) if self_attention_mask is None
          else self_attention_mask).astype(jnp.float32)
    cm = (jnp.ones((B, S_enc)) if cross_attention_mask is None
          else cross_attention_mask).astype(jnp.float32)

    # Combined additive biases (alibi [+ causal] [+ key padding]) built ONCE, shared by all
    # layers inside the single fused kernel. Batch order is n = h*B + b (head-major), matching
    # the in-kernel head-batched layout. Mirrors torch's build_alibi_bias + masked_fill.
    slopes = jnp.asarray(gen_slopes(Hq, cfg.alibi_bias_max)).reshape(Hq, 1, 1, 1)

    self_al = slopes * (jnp.arange(S, dtype=jnp.float32) - (S - 1))[None, None, None, :]
    causal = jnp.tril(jnp.ones((S, S), dtype=bool))
    keep_s = causal[None, None, :, :] & (sm[None, :, None, :] > 0.5)     # (1,B,S,S)
    self_bias = jnp.where(keep_s, self_al, MIN_VAL).reshape(N, S, S)

    qpos = jnp.arange(S, dtype=jnp.float32) - (S - 1)
    kpos = jnp.arange(S_enc, dtype=jnp.float32) - (S_enc - 1)
    cross_al = slopes * (-jnp.abs(kpos[None, None, None, :] - qpos[None, None, :, None]))
    keep_c = cm[None, :, None, :] > 0.5                                  # (1,B,1,S_enc)
    cross_bias = jnp.where(keep_c, cross_al, MIN_VAL).reshape(N, S, S_enc)

    call = make_decoder_call(cfg, B, S, S_enc)
    logits, attnw = call(x, enc2d, self_bias, cross_bias,
                         packed["vec"], packed["wmat"], packed["wdn"],
                         packed["fnorm"], packed["wlog"])

    logits = logits.reshape(B, S, V)
    # wrapper-side layout plumbing (free): head-major (L, Hq*B, S, S_enc) -> (L, B, Hq, S, S_enc)
    attnw = attnw.reshape(L, Hq, B, S, S_enc).transpose(0, 2, 1, 3, 4)
    all_attn_weights = [attnw[l] for l in range(L)]
    return logits, all_attn_weights


# ----------------------------- main -----------------------------
if __name__ == "__main__":
    cfg = Config()
    key = jax.random.PRNGKey(0)
    pkey, dkey, ekey = jax.random.split(key, 3)

    params = init_params(cfg, pkey)
    packed = pack_params(params, cfg)

    B, S = 2, cfg.max_seq_len
    S_enc = cfg.max_seq_len
    dec_inputs = jax.random.randint(dkey, (B, S), 0, cfg.dec_vocab_size, dtype=jnp.int32)
    enc_outputs = jax.random.normal(ekey, (B, S_enc, cfg.d_model), dtype=jnp.float32)
    self_attention_mask = jnp.ones((B, S), dtype=jnp.int32).at[1, -2:].set(0)
    cross_attention_mask = jnp.ones((B, S_enc), dtype=jnp.int32).at[1, -1:].set(0)

    logits, attn_weights = transformer_decoder_forward(
        packed, cfg, dec_inputs, enc_outputs, self_attention_mask, cross_attention_mask)
    jax.block_until_ready(logits)
    jax.block_until_ready(attn_weights)

    assert logits.shape == (B, S, cfg.dec_vocab_size)
    assert len(attn_weights) == cfg.num_dec_layers
    assert attn_weights[0].shape == (B, cfg.q_n_heads, S, S_enc)
    assert bool(jnp.all(jnp.isfinite(logits)))
    print("KERNEL_OK")
</pallas_src>

<mosaic_0001>
module attributes {stable_mosaic.version = 11 : i64} {
  func.func @kernel(%arg0: memref<16x32xf32, #tpu.memory_space<vmem>>, %arg1: memref<16x32xf32, #tpu.memory_space<vmem>>, %arg2: memref<8x8x8xf32, #tpu.memory_space<vmem>>, %arg3: memref<8x8x8xf32, #tpu.memory_space<vmem>>, %arg4: memref<2x11x64xf32, #tpu.memory_space<vmem>>, %arg5: memref<2x32x320xbf16, #tpu.memory_space<vmem>>, %arg6: memref<2x64x32xbf16, #tpu.memory_space<vmem>>, %arg7: memref<2x32xf32, #tpu.memory_space<vmem>>, %arg8: memref<32x64xbf16, #tpu.memory_space<vmem>>, %arg9: memref<16x64xf32, #tpu.memory_space<vmem>>, %arg10: memref<2x8x8x8xf32, #tpu.memory_space<vmem>>, %arg11: memref<8x8x8xf32, #tpu.memory_space<vmem>>, %arg12: memref<8x8x8xf32, #tpu.memory_space<vmem>>, %arg13: memref<8x8x8xf32, #tpu.memory_space<vmem>>, %arg14: memref<8x8x8xf32, #tpu.memory_space<vmem>>, %arg15: memref<8x8x8xf32, #tpu.memory_space<vmem>>) attributes {dimension_semantics = [], scalar_prefetch = 0 : i64, scratch_operands = 5 : i64, tpu.core_type = #tpu.core_type<tc>} {
    %c0 = arith.constant 0 : index
    %c0_0 = arith.constant 0 : index
    %0 = vector.load %arg0[%c0, %c0_0] : memref<16x32xf32, #tpu.memory_space<vmem>>, vector<16x32xf32>
    %c0_1 = arith.constant 0 : index
    %c0_2 = arith.constant 0 : index
    %1 = vector.load %arg1[%c0_1, %c0_2] : memref<16x32xf32, #tpu.memory_space<vmem>>, vector<16x32xf32>
    %c0_3 = arith.constant 0 : index
    %c0_4 = arith.constant 0 : index
    %c0_5 = arith.constant 0 : index
    %2 = vector.load %arg2[%c0_3, %c0_4, %c0_5] : memref<8x8x8xf32, #tpu.memory_space<vmem>>, vector<8x8x8xf32>
    %c0_6 = arith.constant 0 : index
    %c0_7 = arith.constant 0 : index
    %c0_8 = arith.constant 0 : index
    %3 = vector.load %arg3[%c0_6, %c0_7, %c0_8] : memref<8x8x8xf32, #tpu.memory_space<vmem>>, vector<8x8x8xf32>
    %c0_9 = arith.constant 0 : index
    %c0_10 = arith.constant 0 : index
    %c0_11 = arith.constant 0 : index
    %4 = vector.load %arg4[%c0_9, %c0_10, %c0_11] : memref<2x11x64xf32, #tpu.memory_space<vmem>>, vector<1x11x64xf32>
    %5 = vector.shape_cast %4 : vector<1x11x64xf32> to vector<11x64xf32>
    %c0_12 = arith.constant 0 : index
    %c0_13 = arith.constant 0 : index
    %c0_14 = arith.constant 0 : index
    %6 = vector.load %arg5[%c0_12, %c0_13, %c0_14] : memref<2x32x320xbf16, #tpu.memory_space<vmem>>, vector<1x32x320xbf16>
    %7 = vector.shape_cast %6 : vector<1x32x320xbf16> to vector<32x320xbf16>
    %c0_15 = arith.constant 0 : index
    %c0_16 = arith.constant 0 : index
    %c0_17 = arith.constant 0 : index
    %8 = vector.load %arg6[%c0_15, %c0_16, %c0_17] : memref<2x64x32xbf16, #tpu.memory_space<vmem>>, vector<1x64x32xbf16>
    %9 = vector.shape_cast %8 : vector<1x64x32xbf16> to vector<64x32xbf16>
    %10 = vector.extract_strided_slice %5 {offsets = [0, 0], sizes = [1, 32], strides = [1, 1]} : vector<11x64xf32> to vector<1x32xf32>
    %11 = vector.extract_strided_slice %5 {offsets = [1, 0], sizes = [1, 32], strides = [1, 1]} : vector<11x64xf32> to vector<1x32xf32>
    %12 = vector.extract_strided_slice %5 {offsets = [2, 0], sizes = [1, 32], strides = [1, 1]} : vector<11x64xf32> to vector<1x32xf32>
    %13 = vector.extract_strided_slice %5 {offsets = [3, 0], sizes = [1, 32], strides = [1, 1]} : vector<11x64xf32> to vector<1x32xf32>
    %14 = vector.extract_strided_slice %5 {offsets = [4, 0], sizes = [1, 32], strides = [1, 1]} : vector<11x64xf32> to vector<1x32xf32>
    %15 = vector.extract_strided_slice %5 {offsets = [5, 0], sizes = [1, 32], strides = [1, 1]} : vector<11x64xf32> to vector<1x32xf32>
    %16 = vector.extract_strided_slice %5 {offsets = [6, 0], sizes = [1, 64], strides = [1, 1]} : vector<11x64xf32> to vector<1x64xf32>
    %17 = vector.extract_strided_slice %5 {offsets = [7, 0], sizes = [1, 32], strides = [1, 1]} : vector<11x64xf32> to vector<1x32xf32>
    %18 = vector.extract_strided_slice %5 {offsets = [8, 0], sizes = [1, 32], strides = [1, 1]} : vector<11x64xf32> to vector<1x32xf32>
    %19 = vector.extract_strided_slice %5 {offsets = [9, 0], sizes = [1, 32], strides = [1, 1]} : vector<11x64xf32> to vector<1x32xf32>
    %20 = vector.extract_strided_slice %5 {offsets = [10, 0], sizes = [1, 32], strides = [1, 1]} : vector<11x64xf32> to vector<1x32xf32>
    %21 = vector.extract_strided_slice %7 {offsets = [0, 0], sizes = [32, 128], strides = [1, 1]} : vector<32x320xbf16> to vector<32x128xbf16>
    %22 = vector.extract_strided_slice %7 {offsets = [0, 128], sizes = [32, 64], strides = [1, 1]} : vector<32x320xbf16> to vector<32x64xbf16>
    %23 = vector.extract_strided_slice %7 {offsets = [0, 192], sizes = [32, 32], strides = [1, 1]} : vector<32x320xbf16> to vector<32x32xbf16>
    %24 = vector.extract_strided_slice %7 {offsets = [0, 224], sizes = [32, 32], strides = [1, 1]} : vector<32x320xbf16> to vector<32x32xbf16>
    %25 = vector.extract_strided_slice %7 {offsets = [0, 256], sizes = [32, 32], strides = [1, 1]} : vector<32x320xbf16> to vector<32x32xbf16>
    %26 = vector.extract_strided_slice %7 {offsets = [0, 288], sizes = [32, 32], strides = [1, 1]} : vector<32x320xbf16> to vector<32x32xbf16>
    %cst = arith.constant dense<0.000000e+00> : vector<16xf32>
    %27 = vector.multi_reduction <add>, %0, %cst [1] : vector<16x32xf32> to vector<16xf32>
    %28 = vector.shape_cast %27 : vector<16xf32> to vector<16x1xf32>
    %cst_18 = arith.constant 3.200000e+01 : f32
    %29 = vector.broadcast %cst_18 : f32 to vector<16x1xf32>
    %30 = arith.divf %28, %29 : vector<16x1xf32>
    %31 = vector.broadcast %30 : vector<16x1xf32> to vector<16x32xf32>
    %32 = arith.subf %0, %31 : vector<16x32xf32>
    %33 = arith.mulf %32, %32 : vector<16x32xf32>
    %cst_19 = arith.constant dense<0.000000e+00> : vector<16xf32>
    %34 = vector.multi_reduction <add>, %33, %cst_19 [1] : vector<16x32xf32> to vector<16xf32>
    %35 = vector.shape_cast %34 : vector<16xf32> to vector<16x1xf32>
    %cst_20 = arith.constant 3.200000e+01 : f32
    %36 = vector.broadcast %cst_20 : f32 to vector<16x1xf32>
    %37 = arith.divf %35, %36 : vector<16x1xf32>
    %38 = vector.broadcast %30 : vector<16x1xf32> to vector<16x32xf32>
    %39 = arith.subf %0, %38 : vector<16x32xf32>
    %cst_21 = arith.constant 9.99999974E-6 : f32
    %40 = vector.broadcast %cst_21 : f32 to vector<16x1xf32>
    %41 = arith.addf %37, %40 : vector<16x1xf32>
    %42 = math.rsqrt %41 : vector<16x1xf32>
    %43 = vector.broadcast %42 : vector<16x1xf32> to vector<16x32xf32>
    %44 = arith.mulf %39, %43 : vector<16x32xf32>
    %45 = vector.broadcast %10 : vector<1x32xf32> to vector<16x32xf32>
    %46 = arith.mulf %44, %45 : vector<16x32xf32>
    %47 = vector.broadcast %11 : vector<1x32xf32> to vector<16x32xf32>
    %48 = arith.addf %46, %47 : vector<16x32xf32>
    %49 = arith.truncf %48 : vector<16x32xf32> to vector<16x32xbf16>
    %cst_22 = arith.constant dense<0.000000e+00> : vector<16x64xf32>
    %50 = tpu.matmul %49, %22, %cst_22 {dimension_numbers = #tpu.dot_dimension_numbers<[1], [0], [0], [1], [0, 0, 1, 1], [], []>} : vector<16x32xbf16>, vector<32x64xbf16>, vector<16x64xf32> -> vector<16x64xf32>
    %51 = vector.broadcast %16 : vector<1x64xf32> to vector<16x64xf32>
    %52 = arith.addf %50, %51 : vector<16x64xf32>
    %53 = vector.extract_strided_slice %52 {offsets = [0, 0], sizes = [16, 8], strides = [1, 1]} : vector<16x64xf32> to vector<16x8xf32>
    %54 = vector.shape_cast %53 : vector<16x8xf32> to vector<2x8x8xf32>
    %c0_23 = arith.constant 0 : index
    %c0_24 = arith.constant 0 : index
    %c0_25 = arith.constant 0 : index
    %55 = vector.load %arg11[%c0_23, %c0_24, %c0_25] : memref<8x8x8xf32, #tpu.memory_space<vmem>>, vector<2x8x8xf32>
    tpu.vector_store %arg11[%c0_23, %c0_24, %c0_25], %54 {strides = array<i32>} : memref<8x8x8xf32, #tpu.memory_space<vmem>>, vector<2x8x8xf32>,
    %56 = vector.extract_strided_slice %52 {offsets = [0, 8], sizes = [16, 8], strides = [1, 1]} : vector<16x64xf32> to vector<16x8xf32>
    %57 = vector.shape_cast %56 : vector<16x8xf32> to vector<2x8x8xf32>
    %c2 = arith.constant 2 : index
    %c0_26 = arith.constant 0 : index
    %c0_27 = arith.constant 0 : index
    %58 = vector.load %arg11[%c2, %c0_26, %c0_27] : memref<8x8x8xf32, #tpu.memory_space<vmem>>, vector<2x8x8xf32>
    tpu.vector_store %arg11[%c2, %c0_26, %c0_27], %57 {strides = array<i32>} : memref<8x8x8xf32, #tpu.memory_space<vmem>>, vector<2x8x8xf32>,
    %59 = vector.extract_strided_slice %52 {offsets = [0, 16], sizes = [16, 8], strides = [1, 1]} : vector<16x64xf32> to vector<16x8xf32>
    %60 = vector.shape_cast %59 : vector<16x8xf32> to vector<2x8x8xf32>
    %c4 = arith.constant 4 : index
    %c0_28 = arith.constant 0 : index
    %c0_29 = arith.constant 0 : index
    %61 = vector.load %arg11[%c4, %c0_28, %c0_29] : memref<8x8x8xf32, #tpu.memory_space<vmem>>, vector<2x8x8xf32>
    tpu.vector_store %arg11[%c4, %c0_28, %c0_29], %60 {strides = array<i32>} : memref<8x8x8xf32, #tpu.memory_space<vmem>>, vector<2x8x8xf32>,
    %62 = vector.extract_strided_slice %52 {offsets = [0, 24], sizes = [16, 8], strides = [1, 1]} : vector<16x64xf32> to vector<16x8xf32>
    %63 = vector.shape_cast %62 : vector<16x8xf32> to vector<2x8x8xf32>
    %c6 = arith.constant 6 : index
    %c0_30 = arith.constant 0 : index
    %c0_31 = arith.constant 0 : index
    %64 = vector.load %arg11[%c6, %c0_30, %c0_31] : memref<8x8x8xf32, #tpu.memory_space<vmem>>, vector<2x8x8xf32>
    tpu.vector_store %arg11[%c6, %c0_30, %c0_31], %63 {strides = array<i32>} : memref<8x8x8xf32, #tpu.memory_space<vmem>>, vector<2x8x8xf32>,
    %65 = vector.extract_strided_slice %52 {offsets = [0, 32], sizes = [16, 8], strides = [1, 1]} : vector<16x64xf32> to vector<16x8xf32>
    %66 = vector.shape_cast %65 : vector<16x8xf32> to vector<2x8x8xf32>
    %c0_32 = arith.constant 0 : index
    %c0_33 = arith.constant 0 : index
    %c0_34 = arith.constant 0 : index
    %67 = vector.load %arg12[%c0_32, %c0_33, %c0_34] : memref<8x8x8xf32, #tpu.memory_space<vmem>>, vector<2x8x8xf32>
    tpu.vector_store %arg12[%c0_32, %c0_33, %c0_34], %66 {strides = array<i32>} : memref<8x8x8xf32, #tpu.memory_space<vmem>>, vector<2x8x8xf32>,
    %c2_35 = arith.constant 2 : index
    %c0_36 = arith.constant 0 : index
    %c0_37 = arith.constant 0 : index
    %68 = vector.load %arg12[%c2_35, %c0_36, %c0_37] : memref<8x8x8xf32, #tpu.memory_space<vmem>>, vector<2x8x8xf32>
    tpu.vector_store %arg12[%c2_35, %c0_36, %c0_37], %66 {strides = array<i32>} : memref<8x8x8xf32, #tpu.memory_space<vmem>>, vector<2x8x8xf32>,
    %69 = vector.extract_strided_slice %52 {offsets = [0, 40], sizes = [16, 8], strides = [1, 1]} : vector<16x64xf32> to vector<16x8xf32>
    %70 = vector.shape_cast %69 : vector<16x8xf32> to vector<2x8x8xf32>
    %c4_38 = arith.constant 4 : index
    %c0_39 = arith.constant 0 : index
    %c0_40 = arith.constant 0 : index
    %71 = vector.load %arg12[%c4_38, %c0_39, %c0_40] : memref<8x8x8xf32, #tpu.memory_space<vmem>>, vector<2x8x8xf32>
    tpu.vector_store %arg12[%c4_38, %c0_39, %c0_40], %70 {strides = array<i32>} : memref<8x8x8xf32, #tpu.memory_space<vmem>>, vector<2x8x8xf32>,
    %c6_41 = arith.constant 6 : index
    %c0_42 = arith.constant 0 : index
    %c0_43 = arith.constant 0 : index
    %72 = vector.load %arg12[%c6_41, %c0_42, %c0_43] : memref<8x8x8xf32, #tpu.memory_space<vmem>>, vector<2x8x8xf32>
    tpu.vector_store %arg12[%c6_41, %c0_42, %c0_43], %70 {strides = array<i32>} : memref<8x8x8xf32, #tpu.memory_space<vmem>>, vector<2x8x8xf32>,
    %73 = vector.extract_strided_slice %52 {offsets = [0, 48], sizes = [16, 8], strides = [1, 1]} : vector<16x64xf32> to vector<16x8xf32>
    %74 = vector.shape_cast %73 : vector<16x8xf32> to vector<2x8x8xf32>
    %c0_44 = arith.constant 0 : index
    %c0_45 = arith.constant 0 : index
    %c0_46 = arith.constant 0 : index
    %75 = vector.load %arg13[%c0_44, %c0_45, %c0_46] : memref<8x8x8xf32, #tpu.memory_space<vmem>>, vector<2x8x8xf32>
    tpu.vector_store %arg13[%c0_44, %c0_45, %c0_46], %74 {strides = array<i32>} : memref<8x8x8xf32, #tpu.memory_space<vmem>>, vector<2x8x8xf32>,
    %c2_47 = arith.constant 2 : index
    %c0_48 = arith.constant 0 : index
    %c0_49 = arith.constant 0 : index
    %76 = vector.load %arg13[%c2_47, %c0_48, %c0_49] : memref<8x8x8xf32, #tpu.memory_space<vmem>>, vector<2x8x8xf32>
    tpu.vector_store %arg13[%c2_47, %c0_48, %c0_49], %74 {strides = array<i32>} : memref<8x8x8xf32, #tpu.memory_space<vmem>>, vector<2x8x8xf32>,
    %77 = vector.extract_strided_slice %52 {offsets = [0, 56], sizes = [16, 8], strides = [1, 1]} : vector<16x64xf32> to vector<16x8xf32>
    %78 = vector.shape_cast %77 : vector<16x8xf32> to vector<2x8x8xf32>
    %c4_50 = arith.constant 4 : index
    %c0_51 = arith.constant 0 : index
    %c0_52 = arith.constant 0 : index
    %79 = vector.load %arg13[%c4_50, %c0_51, %c0_52] : memref<8x8x8xf32, #tpu.memory_space<vmem>>, vector<2x8x8xf32>
    tpu.vector_store %arg13[%c4_50, %c0_51, %c0_52], %78 {strides = array<i32>} : memref<8x8x8xf32, #tpu.memory_space<vmem>>, vector<2x8x8xf32>,
    %c6_53 = arith.constant 6 : index
    %c0_54 = arith.constant 0 : index
    %c0_55 = arith.constant 0 : index
    %80 = vector.load %arg13[%c6_53, %c0_54, %c0_55] : memref<8x8x8xf32, #tpu.memory_space<vmem>>, vector<2x8x8xf32>
    tpu.vector_store %arg13[%c6_53, %c0_54, %c0_55], %78 {strides = array<i32>} : memref<8x8x8xf32, #tpu.memory_space<vmem>>, vector<2x8x8xf32>,
    %c0_56 = arith.constant 0 : index
    %c0_57 = arith.constant 0 : index
    %c0_58 = arith.constant 0 : index
    %81 = vector.load %arg11[%c0_56, %c0_57, %c0_58] : memref<8x8x8xf32, #tpu.memory_space<vmem>>, vector<8x8x8xf32>
    %82 = arith.truncf %81 : vector<8x8x8xf32> to vector<8x8x8xbf16>
    %c0_59 = arith.constant 0 : index
    %c0_60 = arith.constant 0 : index
    %c0_61 = arith.constant 0 : index
    %83 = vector.load %arg12[%c0_59, %c0_60, %c0_61] : memref<8x8x8xf32, #tpu.memory_space<vmem>>, vector<8x8x8xf32>
    %84 = arith.truncf %83 : vector<8x8x8xf32> to vector<8x8x8xbf16>
    %c0_62 = arith.constant 0 : index
    %c0_63 = arith.constant 0 : index
    %c0_64 = arith.constant 0 : index
    %85 = vector.load %arg13[%c0_62, %c0_63, %c0_64] : memref<8x8x8xf32, #tpu.memory_space<vmem>>, vector<8x8x8xf32>
    %86 = arith.truncf %85 : vector<8x8x8xf32> to vector<8x8x8xbf16>
    "tpu.trace_start"() <{level = 10 : i32, message = "nqd,nkd->nqk"}> : () -> ()
    %cst_65 = arith.constant dense<0.000000e+00> : vector<8x8x8xf32>
    %87 = tpu.matmul %82, %84, %cst_65 {dimension_numbers = #tpu.dot_dimension_numbers<[2], [2], [1], [1], [0, 0, 0, 1, 1, 1], [0], [0]>} : vector<8x8x8xbf16>, vector<8x8x8xbf16>, vector<8x8x8xf32> -> vector<8x8x8xf32>
    "tpu.trace_stop"() : () -> ()
    %cst_66 = arith.constant 0.353553385 : f32
    %88 = vector.broadcast %cst_66 : f32 to vector<8x8x8xf32>
    %89 = arith.mulf %87, %88 : vector<8x8x8xf32>
    %90 = arith.addf %89, %2 : vector<8x8x8xf32>
    %cst_67 = arith.constant dense<0xFF800000> : vector<8x8xf32>
    %91 = vector.multi_reduction <maximumf>, %90, %cst_67 [2] : vector<8x8x8xf32> to vector<8x8xf32>
    %92 = vector.shape_cast %91 : vector<8x8xf32> to vector<8x8x1xf32>
    %93 = vector.broadcast %92 : vector<8x8x1xf32> to vector<8x8x8xf32>
    %94 = arith.subf %90, %93 : vector<8x8x8xf32>
    %95 = math.exp %94 : vector<8x8x8xf32>
    %cst_68 = arith.constant dense<0.000000e+00> : vector<8x8xf32>
    %96 = vector.multi_reduction <add>, %95, %cst_68 [2] : vector<8x8x8xf32> to vector<8x8xf32>
    %97 = vector.shape_cast %96 : vector<8x8xf32> to vector<8x8x1xf32>
    %98 = vector.broadcast %97 : vector<8x8x1xf32> to vector<8x8x8xf32>
    %99 = arith.divf %95, %98 : vector<8x8x8xf32>
    %100 = arith.truncf %99 : vector<8x8x8xf32> to vector<8x8x8xbf16>
    "tpu.trace_start"() <{level = 10 : i32, message = "nqk,nkd->nqd"}> : () -> ()
    %cst_69 = arith.constant dense<0.000000e+00> : vector<8x8x8xf32>
    %101 = tpu.matmul %100, %86, %cst_69 {dimension_numbers = #tpu.dot_dimension_numbers<[2], [1], [1], [2], [0, 0, 0, 1, 1, 2], [0], [0]>} : vector<8x8x8xbf16>, vector<8x8x8xbf16>, vector<8x8x8xf32> -> vector<8x8x8xf32>
    "tpu.trace_stop"() : () -> ()
    %102 = vector.extract_strided_slice %101 {offsets = [0, 0, 0], sizes = [2, 8, 8], strides = [1, 1, 1]} : vector<8x8x8xf32> to vector<2x8x8xf32>
    %103 = vector.shape_cast %102 : vector<2x8x8xf32> to vector<16x8xf32>
    %104 = arith.truncf %103 : vector<16x8xf32> to vector<16x8xbf16>
    %105 = vector.extract_strided_slice %23 {offsets = [0, 0], sizes = [8, 32], strides = [1, 1]} : vector<32x32xbf16> to vector<8x32xbf16>
    %cst_70 = arith.constant dense<0.000000e+00> : vector<16x32xf32>
    %106 = tpu.matmul %104, %105, %cst_70 {dimension_numbers = #tpu.dot_dimension_numbers<[1], [0], [0], [1], [0, 0, 1, 1], [], []>} : vector<16x8xbf16>, vector<8x32xbf16>, vector<16x32xf32> -> vector<16x32xf32>
    %107 = vector.broadcast %17 : vector<1x32xf32> to vector<16x32xf32>
    %108 = arith.addf %107, %106 : vector<16x32xf32>
    %109 = vector.extract_strided_slice %101 {offsets = [2, 0, 0], sizes = [2, 8, 8], strides = [1, 1, 1]} : vector<8x8x8xf32> to vector<2x8x8xf32>
    %110 = vector.shape_cast %109 : vector<2x8x8xf32> to vector<16x8xf32>
    %111 = arith.truncf %110 : vector<16x8xf32> to vector<16x8xbf16>
    %112 = vector.extract_strided_slice %23 {offsets = [8, 0], sizes = [8, 32], strides = [1, 1]} : vector<32x32xbf16> to vector<8x32xbf16>
    %cst_71 = arith.constant dense<0.000000e+00> : vector<16x32xf32>
    %113 = tpu.matmul %111, %112, %cst_71 {dimension_numbers = #tpu.dot_dimension_numbers<[1], [0], [0], [1], [0, 0, 1, 1], [], []>} : vector<16x8xbf16>, vector<8x32xbf16>, vector<16x32xf32> -> vector<16x32xf32>
    %114 = arith.addf %108, %113 : vector<16x32xf32>
    %115 = vector.extract_strided_slice %101 {offsets = [4, 0, 0], sizes = [2, 8, 8], strides = [1, 1, 1]} : vector<8x8x8xf32> to vector<2x8x8xf32>
    %116 = vector.shape_cast %115 : vector<2x8x8xf32> to vector<16x8xf32>
    %117 = arith.truncf %116 : vector<16x8xf32> to vector<16x8xbf16>
    %118 = vector.extract_strided_slice %23 {offsets = [16, 0], sizes = [8, 32], strides = [1, 1]} : vector<32x32xbf16> to vector<8x32xbf16>
    %cst_72 = arith.constant dense<0.000000e+00> : vector<16x32xf32>
    %119 = tpu.matmul %117, %118, %cst_72 {dimension_numbers = #tpu.dot_dimension_numbers<[1], [0], [0], [1], [0, 0, 1, 1], [], []>} : vector<16x8xbf16>, vector<8x32xbf16>, vector<16x32xf32> -> vector<16x32xf32>
    %120 = arith.addf %114, %119 : vector<16x32xf32>
    %121 = vector.extract_strided_slice %101 {offsets = [6, 0, 0], sizes = [2, 8, 8], strides = [1, 1, 1]} : vector<8x8x8xf32> to vector<2x8x8xf32>
    %122 = vector.shape_cast %121 : vector<2x8x8xf32> to vector<16x8xf32>
    %123 = arith.truncf %122 : vector<16x8xf32> to vector<16x8xbf16>
    %124 = vector.extract_strided_slice %23 {offsets = [24, 0], sizes = [8, 32], strides = [1, 1]} : vector<32x32xbf16> to vector<8x32xbf16>
    %cst_73 = arith.constant dense<0.000000e+00> : vector<16x32xf32>
    %125 = tpu.matmul %123, %124, %cst_73 {dimension_numbers = #tpu.dot_dimension_numbers<[1], [0], [0], [1], [0, 0, 1, 1], [], []>} : vector<16x8xbf16>, vector<8x32xbf16>, vector<16x32xf32> -> vector<16x32xf32>
    %126 = arith.addf %120, %125 : vector<16x32xf32>
    %127 = arith.addf %0, %126 : vector<16x32xf32>
    %cst_74 = arith.constant dense<0.000000e+00> : vector<16xf32>
    %128 = vector.multi_reduction <add>, %127, %cst_74 [1] : vector<16x32xf32> to vector<16xf32>
    %129 = vector.shape_cast %128 : vector<16xf32> to vector<16x1xf32>
    %cst_75 = arith.constant 3.200000e+01 : f32
    %130 = vector.broadcast %cst_75 : f32 to vector<16x1xf32>
    %131 = arith.divf %129, %130 : vector<16x1xf32>
    %132 = vector.broadcast %131 : vector<16x1xf32> to vector<16x32xf32>
    %133 = arith.subf %127, %132 : vector<16x32xf32>
    %134 = arith.mulf %133, %133 : vector<16x32xf32>
    %cst_76 = arith.constant dense<0.000000e+00> : vector<16xf32>
    %135 = vector.multi_reduction <add>, %134, %cst_76 [1] : vector<16x32xf32> to vector<16xf32>
    %136 = vector.shape_cast %135 : vector<16xf32> to vector<16x1xf32>
    %cst_77 = arith.constant 3.200000e+01 : f32
    %137 = vector.broadcast %cst_77 : f32 to vector<16x1xf32>
    %138 = arith.divf %136, %137 : vector<16x1xf32>
    %139 = vector.broadcast %131 : vector<16x1xf32> to vector<16x32xf32>
    %140 = arith.subf %127, %139 : vector<16x32xf32>
    %cst_78 = arith.constant 9.99999974E-6 : f32
    %141 = vector.broadcast %cst_78 : f32 to vector<16x1xf32>
    %142 = arith.addf %138, %141 : vector<16x1xf32>
    %143 = math.rsqrt %142 : vector<16x1xf32>
    %144 = vector.broadcast %143 : vector<16x1xf32> to vector<16x32xf32>
    %145 = arith.mulf %140, %144 : vector<16x32xf32>
    %146 = vector.broadcast %12 : vector<1x32xf32> to vector<16x32xf32>
    %147 = arith.mulf %145, %146 : vector<16x32xf32>
    %148 = vector.broadcast %13 : vector<1x32xf32> to vector<16x32xf32>
    %149 = arith.addf %147, %148 : vector<16x32xf32>
    %150 = arith.truncf %149 : vector<16x32xf32> to vector<16x32xbf16>
    %cst_79 = arith.constant dense<0.000000e+00> : vector<16x32xf32>
    %151 = tpu.matmul %150, %24, %cst_79 {dimension_numbers = #tpu.dot_dimension_numbers<[1], [0], [0], [1], [0, 0, 1, 1], [], []>} : vector<16x32xbf16>, vector<32x32xbf16>, vector<16x32xf32> -> vector<16x32xf32>
    %152 = vector.broadcast %18 : vector<1x32xf32> to vector<16x32xf32>
    %153 = arith.addf %151, %152 : vector<16x32xf32>
    %154 = arith.truncf %1 : vector<16x32xf32> to vector<16x32xbf16>
    %cst_80 = arith.constant dense<0.000000e+00> : vector<16x32xf32>
    %155 = tpu.matmul %154, %25, %cst_80 {dimension_numbers = #tpu.dot_dimension_numbers<[1], [0], [0], [1], [0, 0, 1, 1], [], []>} : vector<16x32xbf16>, vector<32x32xbf16>, vector<16x32xf32> -> vector<16x32xf32>
    %156 = vector.broadcast %19 : vector<1x32xf32> to vector<16x32xf32>
    %157 = arith.addf %155, %156 : vector<16x32xf32>
    %158 = vector.extract_strided_slice %153 {offsets = [0, 0], sizes = [16, 8], strides = [1, 1]} : vector<16x32xf32> to vector<16x8xf32>
    %159 = vector.shape_cast %158 : vector<16x8xf32> to vector<2x8x8xf32>
    %c0_81 = arith.constant 0 : index
    %c0_82 = arith.constant 0 : index
    %c0_83 = arith.constant 0 : index
    %160 = vector.load %arg11[%c0_81, %c0_82, %c0_83] : memref<8x8x8xf32, #tpu.memory_space<vmem>>, vector<2x8x8xf32>
    tpu.vector_store %arg11[%c0_81, %c0_82, %c0_83], %159 {strides = array<i32>} : memref<8x8x8xf32, #tpu.memory_space<vmem>>, vector<2x8x8xf32>,
    %161 = vector.extract_strided_slice %153 {offsets = [0, 8], sizes = [16, 8], strides = [1, 1]} : vector<16x32xf32> to vector<16x8xf32>
    %162 = vector.shape_cast %161 : vector<16x8xf32> to vector<2x8x8xf32>
    %c2_84 = arith.constant 2 : index
    %c0_85 = arith.constant 0 : index
    %c0_86 = arith.constant 0 : index
    %163 = vector.load %arg11[%c2_84, %c0_85, %c0_86] : memref<8x8x8xf32, #tpu.memory_space<vmem>>, vector<2x8x8xf32>
    tpu.vector_store %arg11[%c2_84, %c0_85, %c0_86], %162 {strides = array<i32>} : memref<8x8x8xf32, #tpu.memory_space<vmem>>, vector<2x8x8xf32>,
    %164 = vector.extract_strided_slice %153 {offsets = [0, 16], sizes = [16, 8], strides = [1, 1]} : vector<16x32xf32> to vector<16x8xf32>
    %165 = vector.shape_cast %164 : vector<16x8xf32> to vector<2x8x8xf32>
    %c4_87 = arith.constant 4 : index
    %c0_88 = arith.constant 0 : index
    %c0_89 = arith.constant 0 : index
    %166 = vector.load %arg11[%c4_87, %c0_88, %c0_89] : memref<8x8x8xf32, #tpu.memory_space<vmem>>, vector<2x8x8xf32>
    tpu.vector_store %arg11[%c4_87, %c0_88, %c0_89], %165 {strides = array<i32>} : memref<8x8x8xf32, #tpu.memory_space<vmem>>, vector<2x8x8xf32>,
    %167 = vector.extract_strided_slice %153 {offsets = [0, 24], sizes = [16, 8], strides = [1, 1]} : vector<16x32xf32> to vector<16x8xf32>
    %168 = vector.shape_cast %167 : vector<16x8xf32> to vector<2x8x8xf32>
    %c6_90 = arith.constant 6 : index
    %c0_91 = arith.constant 0 : index
    %c0_92 = arith.constant 0 : index
    %169 = vector.load %arg11[%c6_90, %c0_91, %c0_92] : memref<8x8x8xf32, #tpu.memory_space<vmem>>, vector<2x8x8xf32>
    tpu.vector_store %arg11[%c6_90, %c0_91, %c0_92], %168 {strides = array<i32>} : memref<8x8x8xf32, #tpu.memory_space<vmem>>, vector<2x8x8xf32>,
    %170 = vector.extract_strided_slice %157 {offsets = [0, 0], sizes = [16, 8], strides = [1, 1]} : vector<16x32xf32> to vector<16x8xf32>
    %171 = vector.shape_cast %170 : vector<16x8xf32> to vector<2x8x8xf32>
    %c0_93 = arith.constant 0 : index
    %c0_94 = arith.constant 0 : index
    %c0_95 = arith.constant 0 : index
    %172 = vector.load %arg14[%c0_93, %c0_94, %c0_95] : memref<8x8x8xf32, #tpu.memory_space<vmem>>, vector<2x8x8xf32>
    tpu.vector_store %arg14[%c0_93, %c0_94, %c0_95], %171 {strides = array<i32>} : memref<8x8x8xf32, #tpu.memory_space<vmem>>, vector<2x8x8xf32>,
    %c2_96 = arith.constant 2 : index
    %c0_97 = arith.constant 0 : index
    %c0_98 = arith.constant 0 : index
    %173 = vector.load %arg14[%c2_96, %c0_97, %c0_98] : memref<8x8x8xf32, #tpu.memory_space<vmem>>, vector<2x8x8xf32>
    tpu.vector_store %arg14[%c2_96, %c0_97, %c0_98], %171 {strides = array<i32>} : memref<8x8x8xf32, #tpu.memory_space<vmem>>, vector<2x8x8xf32>,
    %174 = vector.extract_strided_slice %157 {offsets = [0, 8], sizes = [16, 8], strides = [1, 1]} : vector<16x32xf32> to vector<16x8xf32>
    %175 = vector.shape_cast %174 : vector<16x8xf32> to vector<2x8x8xf32>
    %c4_99 = arith.constant 4 : index
    %c0_100 = arith.constant 0 : index
    %c0_101 = arith.constant 0 : index
    %176 = vector.load %arg14[%c4_99, %c0_100, %c0_101] : memref<8x8x8xf32, #tpu.memory_space<vmem>>, vector<2x8x8xf32>
    tpu.vector_store %arg14[%c4_99, %c0_100, %c0_101], %175 {strides = array<i32>} : memref<8x8x8xf32, #tpu.memory_space<vmem>>, vector<2x8x8xf32>,
    %c6_102 = arith.constant 6 : index
    %c0_103 = arith.constant 0 : index
    %c0_104 = arith.constant 0 : index
    %177 = vector.load %arg14[%c6_102, %c0_103, %c0_104] : memref<8x8x8xf32, #tpu.memory_space<vmem>>, vector<2x8x8xf32>
    tpu.vector_store %arg14[%c6_102, %c0_103, %c0_104], %175 {strides = array<i32>} : memref<8x8x8xf32, #tpu.memory_space<vmem>>, vector<2x8x8xf32>,
    %178 = vector.extract_strided_slice %157 {offsets = [0, 16], sizes = [16, 8], strides = [1, 1]} : vector<16x32xf32> to vector<16x8xf32>
    %179 = vector.shape_cast %178 : vector<16x8xf32> to vector<2x8x8xf32>
    %c0_105 = arith.constant 0 : index
    %c0_106 = arith.constant 0 : index
    %c0_107 = arith.constant 0 : index
    %180 = vector.load %arg15[%c0_105, %c0_106, %c0_107] : memref<8x8x8xf32, #tpu.memory_space<vmem>>, vector<2x8x8xf32>
    tpu.vector_store %arg15[%c0_105, %c0_106, %c0_107], %179 {strides = array<i32>} : memref<8x8x8xf32, #tpu.memory_space<vmem>>, vector<2x8x8xf32>,
    %c2_108 = arith.constant 2 : index
    %c0_109 = arith.constant 0 : index
    %c0_110 = arith.constant 0 : index
    %181 = vector.load %arg15[%c2_108, %c0_109, %c0_110] : memref<8x8x8xf32, #tpu.memory_space<vmem>>, vector<2x8x8xf32>
    tpu.vector_store %arg15[%c2_108, %c0_109, %c0_110], %179 {strides = array<i32>} : memref<8x8x8xf32, #tpu.memory_space<vmem>>, vector<2x8x8xf32>,
    %182 = vector.extract_strided_slice %157 {offsets = [0, 24], sizes = [16, 8], strides = [1, 1]} : vector<16x32xf32> to vector<16x8xf32>
    %183 = vector.shape_cast %182 : vector<16x8xf32> to vector<2x8x8xf32>
    %c4_111 = arith.constant 4 : index
    %c0_112 = arith.constant 0 : index
    %c0_113 = arith.constant 0 : index
    %184 = vector.load %arg15[%c4_111, %c0_112, %c0_113] : memref<8x8x8xf32, #tpu.memory_space<vmem>>, vector<2x8x8xf32>
    tpu.vector_store %arg15[%c4_111, %c0_112, %c0_113], %183 {strides = array<i32>} : memref<8x8x8xf32, #tpu.memory_space<vmem>>, vector<2x8x8xf32>,
    %c6_114 = arith.constant 6 : index
    %c0_115 = arith.constant 0 : index
    %c0_116 = arith.constant 0 : index
    %185 = vector.load %arg15[%c6_114, %c0_115, %c0_116] : memref<8x8x8xf32, #tpu.memory_space<vmem>>, vector<2x8x8xf32>
    tpu.vector_store %arg15[%c6_114, %c0_115, %c0_116], %183 {strides = array<i32>} : memref<8x8x8xf32, #tpu.memory_space<vmem>>, vector<2x8x8xf32>,
    %c0_117 = arith.constant 0 : index
    %c0_118 = arith.constant 0 : index
    %c0_119 = arith.constant 0 : index
    %186 = vector.load %arg11[%c0_117, %c0_118, %c0_119] : memref<8x8x8xf32, #tpu.memory_space<vmem>>, vector<8x8x8xf32>
    %187 = arith.truncf %186 : vector<8x8x8xf32> to vector<8x8x8xbf16>
    %c0_120 = arith.constant 0 : index
    %c0_121 = arith.constant 0 : index
    %c0_122 = arith.constant 0 : index
    %188 = vector.load %arg14[%c0_120, %c0_121, %c0_122] : memref<8x8x8xf32, #tpu.memory_space<vmem>>, vector<8x8x8xf32>
    %189 = arith.truncf %188 : vector<8x8x8xf32> to vector<8x8x8xbf16>
    %c0_123 = arith.constant 0 : index
    %c0_124 = arith.constant 0 : index
    %c0_125 = arith.constant 0 : index
    %190 = vector.load %arg15[%c0_123, %c0_124, %c0_125] : memref<8x8x8xf32, #tpu.memory_space<vmem>>, vector<8x8x8xf32>
    %191 = arith.truncf %190 : vector<8x8x8xf32> to vector<8x8x8xbf16>
    "tpu.trace_start"() <{level = 10 : i32, message = "nqd,nkd->nqk"}> : () -> ()
    %cst_126 = arith.constant dense<0.000000e+00> : vector<8x8x8xf32>
    %192 = tpu.matmul %187, %189, %cst_126 {dimension_numbers = #tpu.dot_dimension_numbers<[2], [2], [1], [1], [0, 0, 0, 1, 1, 1], [0], [0]>} : vector<8x8x8xbf16>, vector<8x8x8xbf16>, vector<8x8x8xf32> -> vector<8x8x8xf32>
    "tpu.trace_stop"() : () -> ()
    %cst_127 = arith.constant 0.353553385 : f32
    %193 = vector.broadcast %cst_127 : f32 to vector<8x8x8xf32>
    %194 = arith.mulf %192, %193 : vector<8x8x8xf32>
    %195 = arith.addf %194, %3 : vector<8x8x8xf32>
    %cst_128 = arith.constant dense<0xFF800000> : vector<8x8xf32>
    %196 = vector.multi_reduction <maximumf>, %195, %cst_128 [2] : vector<8x8x8xf32> to vector<8x8xf32>
    %197 = vector.shape_cast %196 : vector<8x8xf32> to vector<8x8x1xf32>
    %198 = vector.broadcast %197 : vector<8x8x1xf32> to vector<8x8x8xf32>
    %199 = arith.subf %195, %198 : vector<8x8x8xf32>
    %200 = math.exp %199 : vector<8x8x8xf32>
    %cst_129 = arith.constant dense<0.000000e+00> : vector<8x8xf32>
    %201 = vector.multi_reduction <add>, %200, %cst_129 [2] : vector<8x8x8xf32> to vector<8x8xf32>
    %202 = vector.shape_cast %201 : vector<8x8xf32> to vector<8x8x1xf32>
    %203 = vector.broadcast %202 : vector<8x8x1xf32> to vector<8x8x8xf32>
    %204 = arith.divf %200, %203 : vector<8x8x8xf32>
    %205 = arith.truncf %204 : vector<8x8x8xf32> to vector<8x8x8xbf16>
    "tpu.trace_start"() <{level = 10 : i32, message = "nqk,nkd->nqd"}> : () -> ()
    %cst_130 = arith.constant dense<0.000000e+00> : vector<8x8x8xf32>
    %206 = tpu.matmul %205, %191, %cst_130 {dimension_numbers = #tpu.dot_dimension_numbers<[2], [1], [1], [2], [0, 0, 0, 1, 1, 2], [0], [0]>} : vector<8x8x8xbf16>, vector<8x8x8xbf16>, vector<8x8x8xf32> -> vector<8x8x8xf32>
    "tpu.trace_stop"() : () -> ()
    %c0_131 = arith.constant 0 : index
    %c0_132 = arith.constant 0 : index
    %c0_133 = arith.constant 0 : index
    %c0_134 = arith.constant 0 : index
    %207 = vector.load %arg10[%c0_131, %c0_132, %c0_133, %c0_134] : memref<2x8x8x8xf32, #tpu.memory_space<vmem>>, vector<1x8x8x8xf32>
    %208 = vector.shape_cast %207 : vector<1x8x8x8xf32> to vector<8x8x8xf32>
    %209 = vector.shape_cast %204 : vector<8x8x8xf32> to vector<1x8x8x8xf32>
    tpu.vector_store %arg10[%c0_131, %c0_132, %c0_133, %c0_134], %209 {strides = array<i32>} : memref<2x8x8x8xf32, #tpu.memory_space<vmem>>, vector<1x8x8x8xf32>,
    %210 = vector.extract_strided_slice %206 {offsets = [0, 0, 0], sizes = [2, 8, 8], strides = [1, 1, 1]} : vector<8x8x8xf32> to vector<2x8x8xf32>
    %211 = vector.shape_cast %210 : vector<2x8x8xf32> to vector<16x8xf32>
    %212 = arith.truncf %211 : vector<16x8xf32> to vector<16x8xbf16>
    %213 = vector.extract_strided_slice %26 {offsets = [0, 0], sizes = [8, 32], strides = [1, 1]} : vector<32x32xbf16> to vector<8x32xbf16>
    %cst_135 = arith.constant dense<0.000000e+00> : vector<16x32xf32>
    %214 = tpu.matmul %212, %213, %cst_135 {dimension_numbers = #tpu.dot_dimension_numbers<[1], [0], [0], [1], [0, 0, 1, 1], [], []>} : vector<16x8xbf16>, vector<8x32xbf16>, vector<16x32xf32> -> vector<16x32xf32>
    %215 = vector.broadcast %20 : vector<1x32xf32> to vector<16x32xf32>
    %216 = arith.addf %215, %214 : vector<16x32xf32>
    %217 = vector.extract_strided_slice %206 {offsets = [2, 0, 0], sizes = [2, 8, 8], strides = [1, 1, 1]} : vector<8x8x8xf32> to vector<2x8x8xf32>
    %218 = vector.shape_cast %217 : vector<2x8x8xf32> to vector<16x8xf32>
    %219 = arith.truncf %218 : vector<16x8xf32> to vector<16x8xbf16>
    %220 = vector.extract_strided_slice %26 {offsets = [8, 0], sizes = [8, 32], strides = [1, 1]} : vector<32x32xbf16> to vector<8x32xbf16>
    %cst_136 = arith.constant dense<0.000000e+00> : vector<16x32xf32>
    %221 = tpu.matmul %219, %220, %cst_136 {dimension_numbers = #tpu.dot_dimension_numbers<[1], [0], [0], [1], [0, 0, 1, 1], [], []>} : vector<16x8xbf16>, vector<8x32xbf16>, vector<16x32xf32> -> vector<16x32xf32>
    %222 = arith.addf %216, %221 : vector<16x32xf32>
    %223 = vector.extract_strided_slice %206 {offsets = [4, 0, 0], sizes = [2, 8, 8], strides = [1, 1, 1]} : vector<8x8x8xf32> to vector<2x8x8xf32>
    %224 = vector.shape_cast %223 : vector<2x8x8xf32> to vector<16x8xf32>
    %225 = arith.truncf %224 : vector<16x8xf32> to vector<16x8xbf16>
    %226 = vector.extract_strided_slice %26 {offsets = [16, 0], sizes = [8, 32], strides = [1, 1]} : vector<32x32xbf16> to vector<8x32xbf16>
    %cst_137 = arith.constant dense<0.000000e+00> : vector<16x32xf32>
    %227 = tpu.matmul %225, %226, %cst_137 {dimension_numbers = #tpu.dot_dimension_numbers<[1], [0], [0], [1], [0, 0, 1, 1], [], []>} : vector<16x8xbf16>, vector<8x32xbf16>, vector<16x32xf32> -> vector<16x32xf32>
    %228 = arith.addf %222, %227 : vector<16x32xf32>
    %229 = vector.extract_strided_slice %206 {offsets = [6, 0, 0], sizes = [2, 8, 8], strides = [1, 1, 1]} : vector<8x8x8xf32> to vector<2x8x8xf32>
    %230 = vector.shape_cast %229 : vector<2x8x8xf32> to vector<16x8xf32>
    %231 = arith.truncf %230 : vector<16x8xf32> to vector<16x8xbf16>
    %232 = vector.extract_strided_slice %26 {offsets = [24, 0], sizes = [8, 32], strides = [1, 1]} : vector<32x32xbf16> to vector<8x32xbf16>
    %cst_138 = arith.constant dense<0.000000e+00> : vector<16x32xf32>
    %233 = tpu.matmul %231, %232, %cst_138 {dimension_numbers = #tpu.dot_dimension_numbers<[1], [0], [0], [1], [0, 0, 1, 1], [], []>} : vector<16x8xbf16>, vector<8x32xbf16>, vector<16x32xf32> -> vector<16x32xf32>
    %234 = arith.addf %228, %233 : vector<16x32xf32>
    %235 = arith.addf %127, %234 : vector<16x32xf32>
    %cst_139 = arith.constant dense<0.000000e+00> : vector<16xf32>
    %236 = vector.multi_reduction <add>, %235, %cst_139 [1] : vector<16x32xf32> to vector<16xf32>
    %237 = vector.shape_cast %236 : vector<16xf32> to vector<16x1xf32>
    %cst_140 = arith.constant 3.200000e+01 : f32
    %238 = vector.broadcast %cst_140 : f32 to vector<16x1xf32>
    %239 = arith.divf %237, %238 : vector<16x1xf32>
    %240 = vector.broadcast %239 : vector<16x1xf32> to vector<16x32xf32>
    %241 = arith.subf %235, %240 : vector<16x32xf32>
    %242 = arith.mulf %241, %241 : vector<16x32xf32>
    %cst_141 = arith.constant dense<0.000000e+00> : vector<16xf32>
    %243 = vector.multi_reduction <add>, %242, %cst_141 [1] : vector<16x32xf32> to vector<16xf32>
    %244 = vector.shape_cast %243 : vector<16xf32> to vector<16x1xf32>
    %cst_142 = arith.constant 3.200000e+01 : f32
    %245 = vector.broadcast %cst_142 : f32 to vector<16x1xf32>
    %246 = arith.divf %244, %245 : vector<16x1xf32>
    %247 = vector.broadcast %239 : vector<16x1xf32> to vector<16x32xf32>
    %248 = arith.subf %235, %247 : vector<16x32xf32>
    %cst_143 = arith.constant 9.99999974E-6 : f32
    %249 = vector.broadcast %cst_143 : f32 to vector<16x1xf32>
    %250 = arith.addf %246, %249 : vector<16x1xf32>
    %251 = math.rsqrt %250 : vector<16x1xf32>
    %252 = vector.broadcast %251 : vector<16x1xf32> to vector<16x32xf32>
    %253 = arith.mulf %248, %252 : vector<16x32xf32>
    %254 = vector.broadcast %14 : vector<1x32xf32> to vector<16x32xf32>
    %255 = arith.mulf %253, %254 : vector<16x32xf32>
    %256 = vector.broadcast %15 : vector<1x32xf32> to vector<16x32xf32>
    %257 = arith.addf %255, %256 : vector<16x32xf32>
    %258 = arith.truncf %257 : vector<16x32xf32> to vector<16x32xbf16>
    %cst_144 = arith.constant dense<0.000000e+00> : vector<16x128xf32>
    %259 = tpu.matmul %258, %21, %cst_144 {dimension_numbers = #tpu.dot_dimension_numbers<[1], [0], [0], [1], [0, 0, 1, 1], [], []>} : vector<16x32xbf16>, vector<32x128xbf16>, vector<16x128xf32> -> vector<16x128xf32>
    %260 = vector.extract_strided_slice %259 {offsets = [0, 0], sizes = [16, 64], strides = [1, 1]} : vector<16x128xf32> to vector<16x64xf32>
    %261 = vector.extract_strided_slice %259 {offsets = [0, 64], sizes = [16, 64], strides = [1, 1]} : vector<16x128xf32> to vector<16x64xf32>
    %262 = arith.negf %260 : vector<16x64xf32>
    %263 = math.exp %262 : vector<16x64xf32>
    %cst_145 = arith.constant 1.000000e+00 : f32
    %264 = vector.broadcast %cst_145 : f32 to vector<16x64xf32>
    %265 = arith.addf %264, %263 : vector<16x64xf32>
    %266 = arith.divf %264, %265 : vector<16x64xf32>
    %267 = arith.mulf %260, %266 : vector<16x64xf32>
    %268 = arith.mulf %267, %261 : vector<16x64xf32>
    %269 = arith.truncf %268 : vector<16x64xf32> to vector<16x64xbf16>
    %cst_146 = arith.constant dense<0.000000e+00> : vector<16x32xf32>
    %270 = tpu.matmul %269, %9, %cst_146 {dimension_numbers = #tpu.dot_dimension_numbers<[1], [0], [0], [1], [0, 0, 1, 1], [], []>} : vector<16x64xbf16>, vector<64x32xbf16>, vector<16x32xf32> -> vector<16x32xf32>
    %271 = arith.addf %235, %270 : vector<16x32xf32>
    %c1 = arith.constant 1 : index
    %c0_147 = arith.constant 0 : index
    %c0_148 = arith.constant 0 : index
    %272 = vector.load %arg4[%c1, %c0_147, %c0_148] : memref<2x11x64xf32, #tpu.memory_space<vmem>>, vector<1x11x64xf32>
    %273 = vector.shape_cast %272 : vector<1x11x64xf32> to vector<11x64xf32>
    %c1_149 = arith.constant 1 : index
    %c0_150 = arith.constant 0 : index
    %c0_151 = arith.constant 0 : index
    %274 = vector.load %arg5[%c1_149, %c0_150, %c0_151] : memref<2x32x320xbf16, #tpu.memory_space<vmem>>, vector<1x32x320xbf16>
    %275 = vector.shape_cast %274 : vector<1x32x320xbf16> to vector<32x320xbf16>
    %c1_152 = arith.constant 1 : index
    %c0_153 = arith.constant 0 : index
    %c0_154 = arith.constant 0 : index
    %276 = vector.load %arg6[%c1_152, %c0_153, %c0_154] : memref<2x64x32xbf16, #tpu.memory_space<vmem>>, vector<1x64x32xbf16>
    %277 = vector.shape_cast %276 : vector<1x64x32xbf16> to vector<64x32xbf16>
    %278 = vector.extract_strided_slice %273 {offsets = [0, 0], sizes = [1, 32], strides = [1, 1]} : vector<11x64xf32> to vector<1x32xf32>
    %279 = vector.extract_strided_slice %273 {offsets = [1, 0], sizes = [1, 32], strides = [1, 1]} : vector<11x64xf32> to vector<1x32xf32>
    %280 = vector.extract_strided_slice %273 {offsets = [2, 0], sizes = [1, 32], strides = [1, 1]} : vector<11x64xf32> to vector<1x32xf32>
    %281 = vector.extract_strided_slice %273 {offsets = [3, 0], sizes = [1, 32], strides = [1, 1]} : vector<11x64xf32> to vector<1x32xf32>
    %282 = vector.extract_strided_slice %273 {offsets = [4, 0], sizes = [1, 32], strides = [1, 1]} : vector<11x64xf32> to vector<1x32xf32>
    %283 = vector.extract_strided_slice %273 {offsets = [5, 0], sizes = [1, 32], strides = [1, 1]} : vector<11x64xf32> to vector<1x32xf32>
    %284 = vector.extract_strided_slice %273 {offsets = [6, 0], sizes = [1, 64], strides = [1, 1]} : vector<11x64xf32> to vector<1x64xf32>
    %285 = vector.extract_strided_slice %273 {offsets = [7, 0], sizes = [1, 32], strides = [1, 1]} : vector<11x64xf32> to vector<1x32xf32>
    %286 = vector.extract_strided_slice %273 {offsets = [8, 0], sizes = [1, 32], strides = [1, 1]} : vector<11x64xf32> to vector<1x32xf32>
    %287 = vector.extract_strided_slice %273 {offsets = [9, 0], sizes = [1, 32], strides = [1, 1]} : vector<11x64xf32> to vector<1x32xf32>
    %288 = vector.extract_strided_slice %273 {offsets = [10, 0], sizes = [1, 32], strides = [1, 1]} : vector<11x64xf32> to vector<1x32xf32>
    %289 = vector.extract_strided_slice %275 {offsets = [0, 0], sizes = [32, 128], strides = [1, 1]} : vector<32x320xbf16> to vector<32x128xbf16>
    %290 = vector.extract_strided_slice %275 {offsets = [0, 128], sizes = [32, 64], strides = [1, 1]} : vector<32x320xbf16> to vector<32x64xbf16>
    %291 = vector.extract_strided_slice %275 {offsets = [0, 192], sizes = [32, 32], strides = [1, 1]} : vector<32x320xbf16> to vector<32x32xbf16>
    %292 = vector.extract_strided_slice %275 {offsets = [0, 224], sizes = [32, 32], strides = [1, 1]} : vector<32x320xbf16> to vector<32x32xbf16>
    %293 = vector.extract_strided_slice %275 {offsets = [0, 256], sizes = [32, 32], strides = [1, 1]} : vector<32x320xbf16> to vector<32x32xbf16>
    %294 = vector.extract_strided_slice %275 {offsets = [0, 288], sizes = [32, 32], strides = [1, 1]} : vector<32x320xbf16> to vector<32x32xbf16>
    %cst_155 = arith.constant dense<0.000000e+00> : vector<16xf32>
    %295 = vector.multi_reduction <add>, %271, %cst_155 [1] : vector<16x32xf32> to vector<16xf32>
    %296 = vector.shape_cast %295 : vector<16xf32> to vector<16x1xf32>
    %cst_156 = arith.constant 3.200000e+01 : f32
    %297 = vector.broadcast %cst_156 : f32 to vector<16x1xf32>
    %298 = arith.divf %296, %297 : vector<16x1xf32>
    %299 = vector.broadcast %298 : vector<16x1xf32> to vector<16x32xf32>
    %300 = arith.subf %271, %299 : vector<16x32xf32>
    %301 = arith.mulf %300, %300 : vector<16x32xf32>
    %cst_157 = arith.constant dense<0.000000e+00> : vector<16xf32>
    %302 = vector.multi_reduction <add>, %301, %cst_157 [1] : vector<16x32xf32> to vector<16xf32>
    %303 = vector.shape_cast %302 : vector<16xf32> to vector<16x1xf32>
    %cst_158 = arith.constant 3.200000e+01 : f32
    %304 = vector.broadcast %cst_158 : f32 to vector<16x1xf32>
    %305 = arith.divf %303, %304 : vector<16x1xf32>
    %306 = vector.broadcast %298 : vector<16x1xf32> to vector<16x32xf32>
    %307 = arith.subf %271, %306 : vector<16x32xf32>
    %cst_159 = arith.constant 9.99999974E-6 : f32
    %308 = vector.broadcast %cst_159 : f32 to vector<16x1xf32>
    %309 = arith.addf %305, %308 : vector<16x1xf32>
    %310 = math.rsqrt %309 : vector<16x1xf32>
    %311 = vector.broadcast %310 : vector<16x1xf32> to vector<16x32xf32>
    %312 = arith.mulf %307, %311 : vector<16x32xf32>
    %313 = vector.broadcast %278 : vector<1x32xf32> to vector<16x32xf32>
    %314 = arith.mulf %312, %313 : vector<16x32xf32>
    %315 = vector.broadcast %279 : vector<1x32xf32> to vector<16x32xf32>
    %316 = arith.addf %314, %315 : vector<16x32xf32>
    %317 = arith.truncf %316 : vector<16x32xf32> to vector<16x32xbf16>
    %cst_160 = arith.constant dense<0.000000e+00> : vector<16x64xf32>
    %318 = tpu.matmul %317, %290, %cst_160 {dimension_numbers = #tpu.dot_dimension_numbers<[1], [0], [0], [1], [0, 0, 1, 1], [], []>} : vector<16x32xbf16>, vector<32x64xbf16>, vector<16x64xf32> -> vector<16x64xf32>
    %319 = vector.broadcast %284 : vector<1x64xf32> to vector<16x64xf32>
    %320 = arith.addf %318, %319 : vector<16x64xf32>
    %321 = vector.extract_strided_slice %320 {offsets = [0, 0], sizes = [16, 8], strides = [1, 1]} : vector<16x64xf32> to vector<16x8xf32>
    %322 = vector.shape_cast %321 : vector<16x8xf32> to vector<2x8x8xf32>
    %c0_161 = arith.constant 0 : index
    %c0_162 = arith.constant 0 : index
    %c0_163 = arith.constant 0 : index
    %323 = vector.load %arg11[%c0_161, %c0_162, %c0_163] : memref<8x8x8xf32, #tpu.memory_space<vmem>>, vector<2x8x8xf32>
    tpu.vector_store %arg11[%c0_161, %c0_162, %c0_163], %322 {strides = array<i32>} : memref<8x8x8xf32, #tpu.memory_space<vmem>>, vector<2x8x8xf32>,
    %324 = vector.extract_strided_slice %320 {offsets = [0, 8], sizes = [16, 8], strides = [1, 1]} : vector<16x64xf32> to vector<16x8xf32>
    %325 = vector.shape_cast %324 : vector<16x8xf32> to vector<2x8x8xf32>
    %c2_164 = arith.constant 2 : index
    %c0_165 = arith.constant 0 : index
    %c0_166 = arith.constant 0 : index
    %326 = vector.load %arg11[%c2_164, %c0_165, %c0_166] : memref<8x8x8xf32, #tpu.memory_space<vmem>>, vector<2x8x8xf32>
    tpu.vector_store %arg11[%c2_164, %c0_165, %c0_166], %325 {strides = array<i32>} : memref<8x8x8xf32, #tpu.memory_space<vmem>>, vector<2x8x8xf32>,
    %327 = vector.extract_strided_slice %320 {offsets = [0, 16], sizes = [16, 8], strides = [1, 1]} : vector<16x64xf32> to vector<16x8xf32>
    %328 = vector.shape_cast %327 : vector<16x8xf32> to vector<2x8x8xf32>
    %c4_167 = arith.constant 4 : index
    %c0_168 = arith.constant 0 : index
    %c0_169 = arith.constant 0 : index
    %329 = vector.load %arg11[%c4_167, %c0_168, %c0_169] : memref<8x8x8xf32, #tpu.memory_space<vmem>>, vector<2x8x8xf32>
    tpu.vector_store %arg11[%c4_167, %c0_168, %c0_169], %328 {strides = array<i32>} : memref<8x8x8xf32, #tpu.memory_space<vmem>>, vector<2x8x8xf32>,
    %330 = vector.extract_strided_slice %320 {offsets = [0, 24], sizes = [16, 8], strides = [1, 1]} : vector<16x64xf32> to vector<16x8xf32>
    %331 = vector.shape_cast %330 : vector<16x8xf32> to vector<2x8x8xf32>
    %c6_170 = arith.constant 6 : index
    %c0_171 = arith.constant 0 : index
    %c0_172 = arith.constant 0 : index
    %332 = vector.load %arg11[%c6_170, %c0_171, %c0_172] : memref<8x8x8xf32, #tpu.memory_space<vmem>>, vector<2x8x8xf32>
    tpu.vector_store %arg11[%c6_170, %c0_171, %c0_172], %331 {strides = array<i32>} : memref<8x8x8xf32, #tpu.memory_space<vmem>>, vector<2x8x8xf32>,
    %333 = vector.extract_strided_slice %320 {offsets = [0, 32], sizes = [16, 8], strides = [1, 1]} : vector<16x64xf32> to vector<16x8xf32>
    %334 = vector.shape_cast %333 : vector<16x8xf32> to vector<2x8x8xf32>
    %c0_173 = arith.constant 0 : index
    %c0_174 = arith.constant 0 : index
    %c0_175 = arith.constant 0 : index
    %335 = vector.load %arg12[%c0_173, %c0_174, %c0_175] : memref<8x8x8xf32, #tpu.memory_space<vmem>>, vector<2x8x8xf32>
    tpu.vector_store %arg12[%c0_173, %c0_174, %c0_175], %334 {strides = array<i32>} : memref<8x8x8xf32, #tpu.memory_space<vmem>>, vector<2x8x8xf32>,
    %c2_176 = arith.constant 2 : index
    %c0_177 = arith.constant 0 : index
    %c0_178 = arith.constant 0 : index
    %336 = vector.load %arg12[%c2_176, %c0_177, %c0_178] : memref<8x8x8xf32, #tpu.memory_space<vmem>>, vector<2x8x8xf32>
    tpu.vector_store %arg12[%c2_176, %c0_177, %c0_178], %334 {strides = array<i32>} : memref<8x8x8xf32, #tpu.memory_space<vmem>>, vector<2x8x8xf32>,
    %337 = vector.extract_strided_slice %320 {offsets = [0, 40], sizes = [16, 8], strides = [1, 1]} : vector<16x64xf32> to vector<16x8xf32>
    %338 = vector.shape_cast %337 : vector<16x8xf32> to vector<2x8x8xf32>
    %c4_179 = arith.constant 4 : index
    %c0_180 = arith.constant 0 : index
    %c0_181 = arith.constant 0 : index
    %339 = vector.load %arg12[%c4_179, %c0_180, %c0_181] : memref<8x8x8xf32, #tpu.memory_space<vmem>>, vector<2x8x8xf32>
    tpu.vector_store %arg12[%c4_179, %c0_180, %c0_181], %338 {strides = array<i32>} : memref<8x8x8xf32, #tpu.memory_space<vmem>>, vector<2x8x8xf32>,
    %c6_182 = arith.constant 6 : index
    %c0_183 = arith.constant 0 : index
    %c0_184 = arith.constant 0 : index
    %340 = vector.load %arg12[%c6_182, %c0_183, %c0_184] : memref<8x8x8xf32, #tpu.memory_space<vmem>>, vector<2x8x8xf32>
    tpu.vector_store %arg12[%c6_182, %c0_183, %c0_184], %338 {strides = array<i32>} : memref<8x8x8xf32, #tpu.memory_space<vmem>>, vector<2x8x8xf32>,
    %341 = vector.extract_strided_slice %320 {offsets = [0, 48], sizes = [16, 8], strides = [1, 1]} : vector<16x64xf32> to vector<16x8xf32>
    %342 = vector.shape_cast %341 : vector<16x8xf32> to vector<2x8x8xf32>
    %c0_185 = arith.constant 0 : index
    %c0_186 = arith.constant 0 : index
    %c0_187 = arith.constant 0 : index
    %343 = vector.load %arg13[%c0_185, %c0_186, %c0_187] : memref<8x8x8xf32, #tpu.memory_space<vmem>>, vector<2x8x8xf32>
    tpu.vector_store %arg13[%c0_185, %c0_186, %c0_187], %342 {strides = array<i32>} : memref<8x8x8xf32, #tpu.memory_space<vmem>>, vector<2x8x8xf32>,
    %c2_188 = arith.constant 2 : index
    %c0_189 = arith.constant 0 : index
    %c0_190 = arith.constant 0 : index
    %344 = vector.load %arg13[%c2_188, %c0_189, %c0_190] : memref<8x8x8xf32, #tpu.memory_space<vmem>>, vector<2x8x8xf32>
    tpu.vector_store %arg13[%c2_188, %c0_189, %c0_190], %342 {strides = array<i32>} : memref<8x8x8xf32, #tpu.memory_space<vmem>>, vector<2x8x8xf32>,
    %345 = vector.extract_strided_slice %320 {offsets = [0, 56], sizes = [16, 8], strides = [1, 1]} : vector<16x64xf32> to vector<16x8xf32>
    %346 = vector.shape_cast %345 : vector<16x8xf32> to vector<2x8x8xf32>
    %c4_191 = arith.constant 4 : index
    %c0_192 = arith.constant 0 : index
    %c0_193 = arith.constant 0 : index
    %347 = vector.load %arg13[%c4_191, %c0_192, %c0_193] : memref<8x8x8xf32, #tpu.memory_space<vmem>>, vector<2x8x8xf32>
    tpu.vector_store %arg13[%c4_191, %c0_192, %c0_193], %346 {strides = array<i32>} : memref<8x8x8xf32, #tpu.memory_space<vmem>>, vector<2x8x8xf32>,
    %c6_194 = arith.constant 6 : index
    %c0_195 = arith.constant 0 : index
    %c0_196 = arith.constant 0 : index
    %348 = vector.load %arg13[%c6_194, %c0_195, %c0_196] : memref<8x8x8xf32, #tpu.memory_space<vmem>>, vector<2x8x8xf32>
    tpu.vector_store %arg13[%c6_194, %c0_195, %c0_196], %346 {strides = array<i32>} : memref<8x8x8xf32, #tpu.memory_space<vmem>>, vector<2x8x8xf32>,
    %c0_197 = arith.constant 0 : index
    %c0_198 = arith.constant 0 : index
    %c0_199 = arith.constant 0 : index
    %349 = vector.load %arg11[%c0_197, %c0_198, %c0_199] : memref<8x8x8xf32, #tpu.memory_space<vmem>>, vector<8x8x8xf32>
    %350 = arith.truncf %349 : vector<8x8x8xf32> to vector<8x8x8xbf16>
    %c0_200 = arith.constant 0 : index
    %c0_201 = arith.constant 0 : index
    %c0_202 = arith.constant 0 : index
    %351 = vector.load %arg12[%c0_200, %c0_201, %c0_202] : memref<8x8x8xf32, #tpu.memory_space<vmem>>, vector<8x8x8xf32>
    %352 = arith.truncf %351 : vector<8x8x8xf32> to vector<8x8x8xbf16>
    %c0_203 = arith.constant 0 : index
    %c0_204 = arith.constant 0 : index
    %c0_205 = arith.constant 0 : index
    %353 = vector.load %arg13[%c0_203, %c0_204, %c0_205] : memref<8x8x8xf32, #tpu.memory_space<vmem>>, vector<8x8x8xf32>
    %354 = arith.truncf %353 : vector<8x8x8xf32> to vector<8x8x8xbf16>
    "tpu.trace_start"() <{level = 10 : i32, message = "nqd,nkd->nqk"}> : () -> ()
    %cst_206 = arith.constant dense<0.000000e+00> : vector<8x8x8xf32>
    %355 = tpu.matmul %350, %352, %cst_206 {dimension_numbers = #tpu.dot_dimension_numbers<[2], [2], [1], [1], [0, 0, 0, 1, 1, 1], [0], [0]>} : vector<8x8x8xbf16>, vector<8x8x8xbf16>, vector<8x8x8xf32> -> vector<8x8x8xf32>
    "tpu.trace_stop"() : () -> ()
    %cst_207 = arith.constant 0.353553385 : f32
    %356 = vector.broadcast %cst_207 : f32 to vector<8x8x8xf32>
    %357 = arith.mulf %355, %356 : vector<8x8x8xf32>
    %358 = arith.addf %357, %2 : vector<8x8x8xf32>
    %cst_208 = arith.constant dense<0xFF800000> : vector<8x8xf32>
    %359 = vector.multi_reduction <maximumf>, %358, %cst_208 [2] : vector<8x8x8xf32> to vector<8x8xf32>
    %360 = vector.shape_cast %359 : vector<8x8xf32> to vector<8x8x1xf32>
    %361 = vector.broadcast %360 : vector<8x8x1xf32> to vector<8x8x8xf32>
    %362 = arith.subf %358, %361 : vector<8x8x8xf32>
    %363 = math.exp %362 : vector<8x8x8xf32>
    %cst_209 = arith.constant dense<0.000000e+00> : vector<8x8xf32>
    %364 = vector.multi_reduction <add>, %363, %cst_209 [2] : vector<8x8x8xf32> to vector<8x8xf32>
    %365 = vector.shape_cast %364 : vector<8x8xf32> to vector<8x8x1xf32>
    %366 = vector.broadcast %365 : vector<8x8x1xf32> to vector<8x8x8xf32>
    %367 = arith.divf %363, %366 : vector<8x8x8xf32>
    %368 = arith.truncf %367 : vector<8x8x8xf32> to vector<8x8x8xbf16>
    "tpu.trace_start"() <{level = 10 : i32, message = "nqk,nkd->nqd"}> : () -> ()
    %cst_210 = arith.constant dense<0.000000e+00> : vector<8x8x8xf32>
    %369 = tpu.matmul %368, %354, %cst_210 {dimension_numbers = #tpu.dot_dimension_numbers<[2], [1], [1], [2], [0, 0, 0, 1, 1, 2], [0], [0]>} : vector<8x8x8xbf16>, vector<8x8x8xbf16>, vector<8x8x8xf32> -> vector<8x8x8xf32>
    "tpu.trace_stop"() : () -> ()
    %370 = vector.extract_strided_slice %369 {offsets = [0, 0, 0], sizes = [2, 8, 8], strides = [1, 1, 1]} : vector<8x8x8xf32> to vector<2x8x8xf32>
    %371 = vector.shape_cast %370 : vector<2x8x8xf32> to vector<16x8xf32>
    %372 = arith.truncf %371 : vector<16x8xf32> to vector<16x8xbf16>
    %373 = vector.extract_strided_slice %291 {offsets = [0, 0], sizes = [8, 32], strides = [1, 1]} : vector<32x32xbf16> to vector<8x32xbf16>
    %cst_211 = arith.constant dense<0.000000e+00> : vector<16x32xf32>
    %374 = tpu.matmul %372, %373, %cst_211 {dimension_numbers = #tpu.dot_dimension_numbers<[1], [0], [0], [1], [0, 0, 1, 1], [], []>} : vector<16x8xbf16>, vector<8x32xbf16>, vector<16x32xf32> -> vector<16x32xf32>
    %375 = vector.broadcast %285 : vector<1x32xf32> to vector<16x32xf32>
    %376 = arith.addf %375, %374 : vector<16x32xf32>
    %377 = vector.extract_strided_slice %369 {offsets = [2, 0, 0], sizes = [2, 8, 8], strides = [1, 1, 1]} : vector<8x8x8xf32> to vector<2x8x8xf32>
    %378 = vector.shape_cast %377 : vector<2x8x8xf32> to vector<16x8xf32>
    %379 = arith.truncf %378 : vector<16x8xf32> to vector<16x8xbf16>
    %380 = vector.extract_strided_slice %291 {offsets = [8, 0], sizes = [8, 32], strides = [1, 1]} : vector<32x32xbf16> to vector<8x32xbf16>
    %cst_212 = arith.constant dense<0.000000e+00> : vector<16x32xf32>
    %381 = tpu.matmul %379, %380, %cst_212 {dimension_numbers = #tpu.dot_dimension_numbers<[1], [0], [0], [1], [0, 0, 1, 1], [], []>} : vector<16x8xbf16>, vector<8x32xbf16>, vector<16x32xf32> -> vector<16x32xf32>
    %382 = arith.addf %376, %381 : vector<16x32xf32>
    %383 = vector.extract_strided_slice %369 {offsets = [4, 0, 0], sizes = [2, 8, 8], strides = [1, 1, 1]} : vector<8x8x8xf32> to vector<2x8x8xf32>
    %384 = vector.shape_cast %383 : vector<2x8x8xf32> to vector<16x8xf32>
    %385 = arith.truncf %384 : vector<16x8xf32> to vector<16x8xbf16>
    %386 = vector.extract_strided_slice %291 {offsets = [16, 0], sizes = [8, 32], strides = [1, 1]} : vector<32x32xbf16> to vector<8x32xbf16>
    %cst_213 = arith.constant dense<0.000000e+00> : vector<16x32xf32>
    %387 = tpu.matmul %385, %386, %cst_213 {dimension_numbers = #tpu.dot_dimension_numbers<[1], [0], [0], [1], [0, 0, 1, 1], [], []>} : vector<16x8xbf16>, vector<8x32xbf16>, vector<16x32xf32> -> vector<16x32xf32>
    %388 = arith.addf %382, %387 : vector<16x32xf32>
    %389 = vector.extract_strided_slice %369 {offsets = [6, 0, 0], sizes = [2, 8, 8], strides = [1, 1, 1]} : vector<8x8x8xf32> to vector<2x8x8xf32>
    %390 = vector.shape_cast %389 : vector<2x8x8xf32> to vector<16x8xf32>
    %391 = arith.truncf %390 : vector<16x8xf32> to vector<16x8xbf16>
    %392 = vector.extract_strided_slice %291 {offsets = [24, 0], sizes = [8, 32], strides = [1, 1]} : vector<32x32xbf16> to vector<8x32xbf16>
    %cst_214 = arith.constant dense<0.000000e+00> : vector<16x32xf32>
    %393 = tpu.matmul %391, %392, %cst_214 {dimension_numbers = #tpu.dot_dimension_numbers<[1], [0], [0], [1], [0, 0, 1, 1], [], []>} : vector<16x8xbf16>, vector<8x32xbf16>, vector<16x32xf32> -> vector<16x32xf32>
    %394 = arith.addf %388, %393 : vector<16x32xf32>
    %395 = arith.addf %271, %394 : vector<16x32xf32>
    %cst_215 = arith.constant dense<0.000000e+00> : vector<16xf32>
    %396 = vector.multi_reduction <add>, %395, %cst_215 [1] : vector<16x32xf32> to vector<16xf32>
    %397 = vector.shape_cast %396 : vector<16xf32> to vector<16x1xf32>
    %cst_216 = arith.constant 3.200000e+01 : f32
    %398 = vector.broadcast %cst_216 : f32 to vector<16x1xf32>
    %399 = arith.divf %397, %398 : vector<16x1xf32>
    %400 = vector.broadcast %399 : vector<16x1xf32> to vector<16x32xf32>
    %401 = arith.subf %395, %400 : vector<16x32xf32>
    %402 = arith.mulf %401, %401 : vector<16x32xf32>
    %cst_217 = arith.constant dense<0.000000e+00> : vector<16xf32>
    %403 = vector.multi_reduction <add>, %402, %cst_217 [1] : vector<16x32xf32> to vector<16xf32>
    %404 = vector.shape_cast %403 : vector<16xf32> to vector<16x1xf32>
    %cst_218 = arith.constant 3.200000e+01 : f32
    %405 = vector.broadcast %cst_218 : f32 to vector<16x1xf32>
    %406 = arith.divf %404, %405 : vector<16x1xf32>
    %407 = vector.broadcast %399 : vector<16x1xf32> to vector<16x32xf32>
    %408 = arith.subf %395, %407 : vector<16x32xf32>
    %cst_219 = arith.constant 9.99999974E-6 : f32
    %409 = vector.broadcast %cst_219 : f32 to vector<16x1xf32>
    %410 = arith.addf %406, %409 : vector<16x1xf32>
    %411 = math.rsqrt %410 : vector<16x1xf32>
    %412 = vector.broadcast %411 : vector<16x1xf32> to vector<16x32xf32>
    %413 = arith.mulf %408, %412 : vector<16x32xf32>
    %414 = vector.broadcast %280 : vector<1x32xf32> to vector<16x32xf32>
    %415 = arith.mulf %413, %414 : vector<16x32xf32>
    %416 = vector.broadcast %281 : vector<1x32xf32> to vector<16x32xf32>
    %417 = arith.addf %415, %416 : vector<16x32xf32>
    %418 = arith.truncf %417 : vector<16x32xf32> to vector<16x32xbf16>
    %cst_220 = arith.constant dense<0.000000e+00> : vector<16x32xf32>
    %419 = tpu.matmul %418, %292, %cst_220 {dimension_numbers = #tpu.dot_dimension_numbers<[1], [0], [0], [1], [0, 0, 1, 1], [], []>} : vector<16x32xbf16>, vector<32x32xbf16>, vector<16x32xf32> -> vector<16x32xf32>
    %420 = vector.broadcast %286 : vector<1x32xf32> to vector<16x32xf32>
    %421 = arith.addf %419, %420 : vector<16x32xf32>
    %422 = arith.truncf %1 : vector<16x32xf32> to vector<16x32xbf16>
    %cst_221 = arith.constant dense<0.000000e+00> : vector<16x32xf32>
    %423 = tpu.matmul %422, %293, %cst_221 {dimension_numbers = #tpu.dot_dimension_numbers<[1], [0], [0], [1], [0, 0, 1, 1], [], []>} : vector<16x32xbf16>, vector<32x32xbf16>, vector<16x32xf32> -> vector<16x32xf32>
    %424 = vector.broadcast %287 : vector<1x32xf32> to vector<16x32xf32>
    %425 = arith.addf %423, %424 : vector<16x32xf32>
    %426 = vector.extract_strided_slice %421 {offsets = [0, 0], sizes = [16, 8], strides = [1, 1]} : vector<16x32xf32> to vector<16x8xf32>
    %427 = vector.shape_cast %426 : vector<16x8xf32> to vector<2x8x8xf32>
    %c0_222 = arith.constant 0 : index
    %c0_223 = arith.constant 0 : index
    %c0_224 = arith.constant 0 : index
    %428 = vector.load %arg11[%c0_222, %c0_223, %c0_224] : memref<8x8x8xf32, #tpu.memory_space<vmem>>, vector<2x8x8xf32>
    tpu.vector_store %arg11[%c0_222, %c0_223, %c0_224], %427 {strides = array<i32>} : memref<8x8x8xf32, #tpu.memory_space<vmem>>, vector<2x8x8xf32>,
    %429 = vector.extract_strided_slice %421 {offsets = [0, 8], sizes = [16, 8], strides = [1, 1]} : vector<16x32xf32> to vector<16x8xf32>
    %430 = vector.shape_cast %429 : vector<16x8xf32> to vector<2x8x8xf32>
    %c2_225 = arith.constant 2 : index
    %c0_226 = arith.constant 0 : index
    %c0_227 = arith.constant 0 : index
    %431 = vector.load %arg11[%c2_225, %c0_226, %c0_227] : memref<8x8x8xf32, #tpu.memory_space<vmem>>, vector<2x8x8xf32>
    tpu.vector_store %arg11[%c2_225, %c0_226, %c0_227], %430 {strides = array<i32>} : memref<8x8x8xf32, #tpu.memory_space<vmem>>, vector<2x8x8xf32>,
    %432 = vector.extract_strided_slice %421 {offsets = [0, 16], sizes = [16, 8], strides = [1, 1]} : vector<16x32xf32> to vector<16x8xf32>
    %433 = vector.shape_cast %432 : vector<16x8xf32> to vector<2x8x8xf32>
    %c4_228 = arith.constant 4 : index
    %c0_229 = arith.constant 0 : index
    %c0_230 = arith.constant 0 : index
    %434 = vector.load %arg11[%c4_228, %c0_229, %c0_230] : memref<8x8x8xf32, #tpu.memory_space<vmem>>, vector<2x8x8xf32>
    tpu.vector_store %arg11[%c4_228, %c0_229, %c0_230], %433 {strides = array<i32>} : memref<8x8x8xf32, #tpu.memory_space<vmem>>, vector<2x8x8xf32>,
    %435 = vector.extract_strided_slice %421 {offsets = [0, 24], sizes = [16, 8], strides = [1, 1]} : vector<16x32xf32> to vector<16x8xf32>
    %436 = vector.shape_cast %435 : vector<16x8xf32> to vector<2x8x8xf32>
    %c6_231 = arith.constant 6 : index
    %c0_232 = arith.constant 0 : index
    %c0_233 = arith.constant 0 : index
    %437 = vector.load %arg11[%c6_231, %c0_232, %c0_233] : memref<8x8x8xf32, #tpu.memory_space<vmem>>, vector<2x8x8xf32>
    tpu.vector_store %arg11[%c6_231, %c0_232, %c0_233], %436 {strides = array<i32>} : memref<8x8x8xf32, #tpu.memory_space<vmem>>, vector<2x8x8xf32>,
    %438 = vector.extract_strided_slice %425 {offsets = [0, 0], sizes = [16, 8], strides = [1, 1]} : vector<16x32xf32> to vector<16x8xf32>
    %439 = vector.shape_cast %438 : vector<16x8xf32> to vector<2x8x8xf32>
    %c0_234 = arith.constant 0 : index
    %c0_235 = arith.constant 0 : index
    %c0_236 = arith.constant 0 : index
    %440 = vector.load %arg14[%c0_234, %c0_235, %c0_236] : memref<8x8x8xf32, #tpu.memory_space<vmem>>, vector<2x8x8xf32>
    tpu.vector_store %arg14[%c0_234, %c0_235, %c0_236], %439 {strides = array<i32>} : memref<8x8x8xf32, #tpu.memory_space<vmem>>, vector<2x8x8xf32>,
    %c2_237 = arith.constant 2 : index
    %c0_238 = arith.constant 0 : index
    %c0_239 = arith.constant 0 : index
    %441 = vector.load %arg14[%c2_237, %c0_238, %c0_239] : memref<8x8x8xf32, #tpu.memory_space<vmem>>, vector<2x8x8xf32>
    tpu.vector_store %arg14[%c2_237, %c0_238, %c0_239], %439 {strides = array<i32>} : memref<8x8x8xf32, #tpu.memory_space<vmem>>, vector<2x8x8xf32>,
    %442 = vector.extract_strided_slice %425 {offsets = [0, 8], sizes = [16, 8], strides = [1, 1]} : vector<16x32xf32> to vector<16x8xf32>
    %443 = vector.shape_cast %442 : vector<16x8xf32> to vector<2x8x8xf32>
    %c4_240 = arith.constant 4 : index
    %c0_241 = arith.constant 0 : index
    %c0_242 = arith.constant 0 : index
    %444 = vector.load %arg14[%c4_240, %c0_241, %c0_242] : memref<8x8x8xf32, #tpu.memory_space<vmem>>, vector<2x8x8xf32>
    tpu.vector_store %arg14[%c4_240, %c0_241, %c0_242], %443 {strides = array<i32>} : memref<8x8x8xf32, #tpu.memory_space<vmem>>, vector<2x8x8xf32>,
    %c6_243 = arith.constant 6 : index
    %c0_244 = arith.constant 0 : index
    %c0_245 = arith.constant 0 : index
    %445 = vector.load %arg14[%c6_243, %c0_244, %c0_245] : memref<8x8x8xf32, #tpu.memory_space<vmem>>, vector<2x8x8xf32>
    tpu.vector_store %arg14[%c6_243, %c0_244, %c0_245], %443 {strides = array<i32>} : memref<8x8x8xf32, #tpu.memory_space<vmem>>, vector<2x8x8xf32>,
    %446 = vector.extract_strided_slice %425 {offsets = [0, 16], sizes = [16, 8], strides = [1, 1]} : vector<16x32xf32> to vector<16x8xf32>
    %447 = vector.shape_cast %446 : vector<16x8xf32> to vector<2x8x8xf32>
    %c0_246 = arith.constant 0 : index
    %c0_247 = arith.constant 0 : index
    %c0_248 = arith.constant 0 : index
    %448 = vector.load %arg15[%c0_246, %c0_247, %c0_248] : memref<8x8x8xf32, #tpu.memory_space<vmem>>, vector<2x8x8xf32>
    tpu.vector_store %arg15[%c0_246, %c0_247, %c0_248], %447 {strides = array<i32>} : memref<8x8x8xf32, #tpu.memory_space<vmem>>, vector<2x8x8xf32>,
    %c2_249 = arith.constant 2 : index
    %c0_250 = arith.constant 0 : index
    %c0_251 = arith.constant 0 : index
    %449 = vector.load %arg15[%c2_249, %c0_250, %c0_251] : memref<8x8x8xf32, #tpu.memory_space<vmem>>, vector<2x8x8xf32>
    tpu.vector_store %arg15[%c2_249, %c0_250, %c0_251], %447 {strides = array<i32>} : memref<8x8x8xf32, #tpu.memory_space<vmem>>, vector<2x8x8xf32>,
    %450 = vector.extract_strided_slice %425 {offsets = [0, 24], sizes = [16, 8], strides = [1, 1]} : vector<16x32xf32> to vector<16x8xf32>
    %451 = vector.shape_cast %450 : vector<16x8xf32> to vector<2x8x8xf32>
    %c4_252 = arith.constant 4 : index
    %c0_253 = arith.constant 0 : index
    %c0_254 = arith.constant 0 : index
    %452 = vector.load %arg15[%c4_252, %c0_253, %c0_254] : memref<8x8x8xf32, #tpu.memory_space<vmem>>, vector<2x8x8xf32>
    tpu.vector_store %arg15[%c4_252, %c0_253, %c0_254], %451 {strides = array<i32>} : memref<8x8x8xf32, #tpu.memory_space<vmem>>, vector<2x8x8xf32>,
    %c6_255 = arith.constant 6 : index
    %c0_256 = arith.constant 0 : index
    %c0_257 = arith.constant 0 : index
    %453 = vector.load %arg15[%c6_255, %c0_256, %c0_257] : memref<8x8x8xf32, #tpu.memory_space<vmem>>, vector<2x8x8xf32>
    tpu.vector_store %arg15[%c6_255, %c0_256, %c0_257], %451 {strides = array<i32>} : memref<8x8x8xf32, #tpu.memory_space<vmem>>, vector<2x8x8xf32>,
    %c0_258 = arith.constant 0 : index
    %c0_259 = arith.constant 0 : index
    %c0_260 = arith.constant 0 : index
    %454 = vector.load %arg11[%c0_258, %c0_259, %c0_260] : memref<8x8x8xf32, #tpu.memory_space<vmem>>, vector<8x8x8xf32>
    %455 = arith.truncf %454 : vector<8x8x8xf32> to vector<8x8x8xbf16>
    %c0_261 = arith.constant 0 : index
    %c0_262 = arith.constant 0 : index
    %c0_263 = arith.constant 0 : index
    %456 = vector.load %arg14[%c0_261, %c0_262, %c0_263] : memref<8x8x8xf32, #tpu.memory_space<vmem>>, vector<8x8x8xf32>
    %457 = arith.truncf %456 : vector<8x8x8xf32> to vector<8x8x8xbf16>
    %c0_264 = arith.constant 0 : index
    %c0_265 = arith.constant 0 : index
    %c0_266 = arith.constant 0 : index
    %458 = vector.load %arg15[%c0_264, %c0_265, %c0_266] : memref<8x8x8xf32, #tpu.memory_space<vmem>>, vector<8x8x8xf32>
    %459 = arith.truncf %458 : vector<8x8x8xf32> to vector<8x8x8xbf16>
    "tpu.trace_start"() <{level = 10 : i32, message = "nqd,nkd->nqk"}> : () -> ()
    %cst_267 = arith.constant dense<0.000000e+00> : vector<8x8x8xf32>
    %460 = tpu.matmul %455, %457, %cst_267 {dimension_numbers = #tpu.dot_dimension_numbers<[2], [2], [1], [1], [0, 0, 0, 1, 1, 1], [0], [0]>} : vector<8x8x8xbf16>, vector<8x8x8xbf16>, vector<8x8x8xf32> -> vector<8x8x8xf32>
    "tpu.trace_stop"() : () -> ()
    %cst_268 = arith.constant 0.353553385 : f32
    %461 = vector.broadcast %cst_268 : f32 to vector<8x8x8xf32>
    %462 = arith.mulf %460, %461 : vector<8x8x8xf32>
    %463 = arith.addf %462, %3 : vector<8x8x8xf32>
    %cst_269 = arith.constant dense<0xFF800000> : vector<8x8xf32>
    %464 = vector.multi_reduction <maximumf>, %463, %cst_269 [2] : vector<8x8x8xf32> to vector<8x8xf32>
    %465 = vector.shape_cast %464 : vector<8x8xf32> to vector<8x8x1xf32>
    %466 = vector.broadcast %465 : vector<8x8x1xf32> to vector<8x8x8xf32>
    %467 = arith.subf %463, %466 : vector<8x8x8xf32>
    %468 = math.exp %467 : vector<8x8x8xf32>
    %cst_270 = arith.constant dense<0.000000e+00> : vector<8x8xf32>
    %469 = vector.multi_reduction <add>, %468, %cst_270 [2] : vector<8x8x8xf32> to vector<8x8xf32>
    %470 = vector.shape_cast %469 : vector<8x8xf32> to vector<8x8x1xf32>
    %471 = vector.broadcast %470 : vector<8x8x1xf32> to vector<8x8x8xf32>
    %472 = arith.divf %468, %471 : vector<8x8x8xf32>
    %473 = arith.truncf %472 : vector<8x8x8xf32> to vector<8x8x8xbf16>
    "tpu.trace_start"() <{level = 10 : i32, message = "nqk,nkd->nqd"}> : () -> ()
    %cst_271 = arith.constant dense<0.000000e+00> : vector<8x8x8xf32>
    %474 = tpu.matmul %473, %459, %cst_271 {dimension_numbers = #tpu.dot_dimension_numbers<[2], [1], [1], [2], [0, 0, 0, 1, 1, 2], [0], [0]>} : vector<8x8x8xbf16>, vector<8x8x8xbf16>, vector<8x8x8xf32> -> vector<8x8x8xf32>
    "tpu.trace_stop"() : () -> ()
    %c1_272 = arith.constant 1 : index
    %c0_273 = arith.constant 0 : index
    %c0_274 = arith.constant 0 : index
    %c0_275 = arith.constant 0 : index
    %475 = vector.load %arg10[%c1_272, %c0_273, %c0_274, %c0_275] : memref<2x8x8x8xf32, #tpu.memory_space<vmem>>, vector<1x8x8x8xf32>
    %476 = vector.shape_cast %475 : vector<1x8x8x8xf32> to vector<8x8x8xf32>
    %477 = vector.shape_cast %472 : vector<8x8x8xf32> to vector<1x8x8x8xf32>
    tpu.vector_store %arg10[%c1_272, %c0_273, %c0_274, %c0_275], %477 {strides = array<i32>} : memref<2x8x8x8xf32, #tpu.memory_space<vmem>>, vector<1x8x8x8xf32>,
    %478 = vector.extract_strided_slice %474 {offsets = [0, 0, 0], sizes = [2, 8, 8], strides = [1, 1, 1]} : vector<8x8x8xf32> to vector<2x8x8xf32>
    %479 = vector.shape_cast %478 : vector<2x8x8xf32> to vector<16x8xf32>
    %480 = arith.truncf %479 : vector<16x8xf32> to vector<16x8xbf16>
    %481 = vector.extract_strided_slice %294 {offsets = [0, 0], sizes = [8, 32], strides = [1, 1]} : vector<32x32xbf16> to vector<8x32xbf16>
    %cst_276 = arith.constant dense<0.000000e+00> : vector<16x32xf32>
    %482 = tpu.matmul %480, %481, %cst_276 {dimension_numbers = #tpu.dot_dimension_numbers<[1], [0], [0], [1], [0, 0, 1, 1], [], []>} : vector<16x8xbf16>, vector<8x32xbf16>, vector<16x32xf32> -> vector<16x32xf32>
    %483 = vector.broadcast %288 : vector<1x32xf32> to vector<16x32xf32>
    %484 = arith.addf %483, %482 : vector<16x32xf32>
    %485 = vector.extract_strided_slice %474 {offsets = [2, 0, 0], sizes = [2, 8, 8], strides = [1, 1, 1]} : vector<8x8x8xf32> to vector<2x8x8xf32>
    %486 = vector.shape_cast %485 : vector<2x8x8xf32> to vector<16x8xf32>
    %487 = arith.truncf %486 : vector<16x8xf32> to vector<16x8xbf16>
    %488 = vector.extract_strided_slice %294 {offsets = [8, 0], sizes = [8, 32], strides = [1, 1]} : vector<32x32xbf16> to vector<8x32xbf16>
    %cst_277 = arith.constant dense<0.000000e+00> : vector<16x32xf32>
    %489 = tpu.matmul %487, %488, %cst_277 {dimension_numbers = #tpu.dot_dimension_numbers<[1], [0], [0], [1], [0, 0, 1, 1], [], []>} : vector<16x8xbf16>, vector<8x32xbf16>, vector<16x32xf32> -> vector<16x32xf32>
    %490 = arith.addf %484, %489 : vector<16x32xf32>
    %491 = vector.extract_strided_slice %474 {offsets = [4, 0, 0], sizes = [2, 8, 8], strides = [1, 1, 1]} : vector<8x8x8xf32> to vector<2x8x8xf32>
    %492 = vector.shape_cast %491 : vector<2x8x8xf32> to vector<16x8xf32>
    %493 = arith.truncf %492 : vector<16x8xf32> to vector<16x8xbf16>
    %494 = vector.extract_strided_slice %294 {offsets = [16, 0], sizes = [8, 32], strides = [1, 1]} : vector<32x32xbf16> to vector<8x32xbf16>
    %cst_278 = arith.constant dense<0.000000e+00> : vector<16x32xf32>
    %495 = tpu.matmul %493, %494, %cst_278 {dimension_numbers = #tpu.dot_dimension_numbers<[1], [0], [0], [1], [0, 0, 1, 1], [], []>} : vector<16x8xbf16>, vector<8x32xbf16>, vector<16x32xf32> -> vector<16x32xf32>
    %496 = arith.addf %490, %495 : vector<16x32xf32>
    %497 = vector.extract_strided_slice %474 {offsets = [6, 0, 0], sizes = [2, 8, 8], strides = [1, 1, 1]} : vector<8x8x8xf32> to vector<2x8x8xf32>
    %498 = vector.shape_cast %497 : vector<2x8x8xf32> to vector<16x8xf32>
    %499 = arith.truncf %498 : vector<16x8xf32> to vector<16x8xbf16>
    %500 = vector.extract_strided_slice %294 {offsets = [24, 0], sizes = [8, 32], strides = [1, 1]} : vector<32x32xbf16> to vector<8x32xbf16>
    %cst_279 = arith.constant dense<0.000000e+00> : vector<16x32xf32>
    %501 = tpu.matmul %499, %500, %cst_279 {dimension_numbers = #tpu.dot_dimension_numbers<[1], [0], [0], [1], [0, 0, 1, 1], [], []>} : vector<16x8xbf16>, vector<8x32xbf16>, vector<16x32xf32> -> vector<16x32xf32>
    %502 = arith.addf %496, %501 : vector<16x32xf32>
    %503 = arith.addf %395, %502 : vector<16x32xf32>
    %cst_280 = arith.constant dense<0.000000e+00> : vector<16xf32>
    %504 = vector.multi_reduction <add>, %503, %cst_280 [1] : vector<16x32xf32> to vector<16xf32>
    %505 = vector.shape_cast %504 : vector<16xf32> to vector<16x1xf32>
    %cst_281 = arith.constant 3.200000e+01 : f32
    %506 = vector.broadcast %cst_281 : f32 to vector<16x1xf32>
    %507 = arith.divf %505, %506 : vector<16x1xf32>
    %508 = vector.broadcast %507 : vector<16x1xf32> to vector<16x32xf32>
    %509 = arith.subf %503, %508 : vector<16x32xf32>
    %510 = arith.mulf %509, %509 : vector<16x32xf32>
    %cst_282 = arith.constant dense<0.000000e+00> : vector<16xf32>
    %511 = vector.multi_reduction <add>, %510, %cst_282 [1] : vector<16x32xf32> to vector<16xf32>
    %512 = vector.shape_cast %511 : vector<16xf32> to vector<16x1xf32>
    %cst_283 = arith.constant 3.200000e+01 : f32
    %513 = vector.broadcast %cst_283 : f32 to vector<16x1xf32>
    %514 = arith.divf %512, %513 : vector<16x1xf32>
    %515 = vector.broadcast %507 : vector<16x1xf32> to vector<16x32xf32>
    %516 = arith.subf %503, %515 : vector<16x32xf32>
    %cst_284 = arith.constant 9.99999974E-6 : f32
    %517 = vector.broadcast %cst_284 : f32 to vector<16x1xf32>
    %518 = arith.addf %514, %517 : vector<16x1xf32>
    %519 = math.rsqrt %518 : vector<16x1xf32>
    %520 = vector.broadcast %519 : vector<16x1xf32> to vector<16x32xf32>
    %521 = arith.mulf %516, %520 : vector<16x32xf32>
    %522 = vector.broadcast %282 : vector<1x32xf32> to vector<16x32xf32>
    %523 = arith.mulf %521, %522 : vector<16x32xf32>
    %524 = vector.broadcast %283 : vector<1x32xf32> to vector<16x32xf32>
    %525 = arith.addf %523, %524 : vector<16x32xf32>
    %526 = arith.truncf %525 : vector<16x32xf32> to vector<16x32xbf16>
    %cst_285 = arith.constant dense<0.000000e+00> : vector<16x128xf32>
    %527 = tpu.matmul %526, %289, %cst_285 {dimension_numbers = #tpu.dot_dimension_numbers<[1], [0], [0], [1], [0, 0, 1, 1], [], []>} : vector<16x32xbf16>, vector<32x128xbf16>, vector<16x128xf32> -> vector<16x128xf32>
    %528 = vector.extract_strided_slice %527 {offsets = [0, 0], sizes = [16, 64], strides = [1, 1]} : vector<16x128xf32> to vector<16x64xf32>
    %529 = vector.extract_strided_slice %527 {offsets = [0, 64], sizes = [16, 64], strides = [1, 1]} : vector<16x128xf32> to vector<16x64xf32>
    %530 = arith.negf %528 : vector<16x64xf32>
    %531 = math.exp %530 : vector<16x64xf32>
    %cst_286 = arith.constant 1.000000e+00 : f32
    %532 = vector.broadcast %cst_286 : f32 to vector<16x64xf32>
    %533 = arith.addf %532, %531 : vector<16x64xf32>
    %534 = arith.divf %532, %533 : vector<16x64xf32>
    %535 = arith.mulf %528, %534 : vector<16x64xf32>
    %536 = arith.mulf %535, %529 : vector<16x64xf32>
    %537 = arith.truncf %536 : vector<16x64xf32> to vector<16x64xbf16>
    %cst_287 = arith.constant dense<0.000000e+00> : vector<16x32xf32>
    %538 = tpu.matmul %537, %277, %cst_287 {dimension_numbers = #tpu.dot_dimension_numbers<[1], [0], [0], [1], [0, 0, 1, 1], [], []>} : vector<16x64xbf16>, vector<64x32xbf16>, vector<16x32xf32> -> vector<16x32xf32>
    %539 = arith.addf %503, %538 : vector<16x32xf32>
    %c0_288 = arith.constant 0 : index
    %c0_289 = arith.constant 0 : index
    %540 = vector.load %arg7[%c0_288, %c0_289] : memref<2x32xf32, #tpu.memory_space<vmem>>, vector<1x32xf32>
    %c1_290 = arith.constant 1 : index
    %c0_291 = arith.constant 0 : index
    %541 = vector.load %arg7[%c1_290, %c0_291] : memref<2x32xf32, #tpu.memory_space<vmem>>, vector<1x32xf32>
    %cst_292 = arith.constant dense<0.000000e+00> : vector<16xf32>
    %542 = vector.multi_reduction <add>, %539, %cst_292 [1] : vector<16x32xf32> to vector<16xf32>
    %543 = vector.shape_cast %542 : vector<16xf32> to vector<16x1xf32>
    %cst_293 = arith.constant 3.200000e+01 : f32
    %544 = vector.broadcast %cst_293 : f32 to vector<16x1xf32>
    %545 = arith.divf %543, %544 : vector<16x1xf32>
    %546 = vector.broadcast %545 : vector<16x1xf32> to vector<16x32xf32>
    %547 = arith.subf %539, %546 : vector<16x32xf32>
    %548 = arith.mulf %547, %547 : vector<16x32xf32>
    %cst_294 = arith.constant dense<0.000000e+00> : vector<16xf32>
    %549 = vector.multi_reduction <add>, %548, %cst_294 [1] : vector<16x32xf32> to vector<16xf32>
    %550 = vector.shape_cast %549 : vector<16xf32> to vector<16x1xf32>
    %cst_295 = arith.constant 3.200000e+01 : f32
    %551 = vector.broadcast %cst_295 : f32 to vector<16x1xf32>
    %552 = arith.divf %550, %551 : vector<16x1xf32>
    %553 = vector.broadcast %545 : vector<16x1xf32> to vector<16x32xf32>
    %554 = arith.subf %539, %553 : vector<16x32xf32>
    %cst_296 = arith.constant 9.99999974E-6 : f32
    %555 = vector.broadcast %cst_296 : f32 to vector<16x1xf32>
    %556 = arith.addf %552, %555 : vector<16x1xf32>
    %557 = math.rsqrt %556 : vector<16x1xf32>
    %558 = vector.broadcast %557 : vector<16x1xf32> to vector<16x32xf32>
    %559 = arith.mulf %554, %558 : vector<16x32xf32>
    %560 = vector.broadcast %540 : vector<1x32xf32> to vector<16x32xf32>
    %561 = arith.mulf %559, %560 : vector<16x32xf32>
    %562 = vector.broadcast %541 : vector<1x32xf32> to vector<16x32xf32>
    %563 = arith.addf %561, %562 : vector<16x32xf32>
    %564 = arith.truncf %563 : vector<16x32xf32> to vector<16x32xbf16>
    %c0_297 = arith.constant 0 : index
    %c0_298 = arith.constant 0 : index
    %565 = vector.load %arg8[%c0_297, %c0_298] : memref<32x64xbf16, #tpu.memory_space<vmem>>, vector<32x64xbf16>
    %cst_299 = arith.constant dense<0.000000e+00> : vector<16x64xf32>
    %566 = tpu.matmul %564, %565, %cst_299 {dimension_numbers = #tpu.dot_dimension_numbers<[1], [0], [0], [1], [0, 0, 1, 1], [], []>} : vector<16x32xbf16>, vector<32x64xbf16>, vector<16x64xf32> -> vector<16x64xf32>
    %c0_300 = arith.constant 0 : index
    %c0_301 = arith.constant 0 : index
    %567 = vector.load %arg9[%c0_300, %c0_301] : memref<16x64xf32, #tpu.memory_space<vmem>>, vector<16x64xf32>
    tpu.vector_store %arg9[%c0_300, %c0_301], %566 {strides = array<i32>} : memref<16x64xf32, #tpu.memory_space<vmem>>, vector<16x64xf32>,
    return
  }
}

</mosaic_0001>

<bundles_post_ra>
// kernel: tpu_custom_call.1
= control target key start
LH: loop header
LB: loop body
LE: loop exit
PB: predicated region body
PF: predicated region fallthrough
CT: control target
= control target key end

     0   :  { %16 = vsyncpa [#allocation8], 0  ;;  %s8768_s0 = inlined_call_operand.hbm [shape: f32[16,32], index: 0, kind: input, shape index: {}]   ;;  %s8769_s1 = inlined_call_operand.hbm [shape: f32[16,32], index: 1, kind: input, shape index: {}]   ;;  %s8770_s2 = inlined_call_operand.vmem [shape: f32[8,8,8], index: 2, kind: input, shape index: {}]   ;;  %s8771_s3 = inlined_call_operand.hbm [shape: f32[8,8,8], index: 3, kind: input, shape index: {}]   ;;  %s8772_s4 = inlined_call_operand.vmem [shape: f32[2,11,64], index: 4, kind: input, shape index: {}]   ;;  %s8773_s5 = inlined_call_operand.vmem [shape: bf16[2,32,320], index: 5, kind: input, shape index: {}]   ;;  %s8774_s6 = inlined_call_operand.vmem [shape: bf16[2,64,32], index: 6, kind: input, shape index: {}]   ;;  %s8775_s7 = inlined_call_operand.hbm [shape: f32[2,32], index: 7, kind: input, shape index: {}]   ;;  %s8776_s8 = inlined_call_operand.vmem [shape: bf16[32,64], index: 8, kind: input, shape index: {}]   ;;  %s8777_s9 = inlined_call_operand.hbm [shape: f32[16,64], index: 9, kind: output, shape index: {0}]   ;;  %s8778_s10 = inlined_call_operand.hbm [shape: f32[2,8,8,8], index: 10, kind: output, shape index: {1}]  }
   0x1   :  { %17 = vsyncpa [#allocation11], 0 }
   0x2   :  { %18 = vsyncpa [#allocation14], 0 }
   0x3   :  { %19 = vsyncpa [#allocation9], 0 }
   0x4   :  { %20 = vsyncpa [#allocation17], 0  ;;  %s7225_s13 = smov [#allocation10]   ;;  %s7226_s15 = smov [#allocation7]  }
   0x5   :  { %s38_s14 = sshll.u32 %s7225_s13, 4  ;;  %s26_s16 = sshll.u32 %s7226_s15, 4  ;;  %s39_s14 = int_to_ptr.vmem [resolvable:$true] %s38_s14  ;;  %s7299_s16 = int_to_ptr.vmem [resolvable:$true] %s26_s16 }
   0x6   :  { %s7083_s19 = scalar_lea.hbm %s8769_s1, 256 }
   0x7   :  { %p7084_p0 = scmp.ne.s32.totalorder %s8769_s1, %s7083_s19  ;;  %p7087_p1 = scmp.lt.u32.totalorder %s7083_s19, %s8769_s1 }
   0x9   :  { %p7089_p2 = pnand %p7087_p1, %p7084_p0 }
   0xb   :  { %7092 = shalt.err (!%p7089_p2)
}
   0xc   :  { %s7093_s24 = scalar_lea.vmem %s39_s14, 256  ;;  %p7098_p4 = scmp.lt.s32.totalorder %s39_s14, %s39_s14 }
   0xd   :  { %p7094_p3 = scmp.ne.s32.totalorder %s39_s14, %s7093_s24  ;;  %p7099_p5 = scmp.lt.s32.totalorder %s7093_s24, %s7093_s24 }
   0xf   :  { %p7100_p6 = por %p7099_p5, %p7098_p4 }
  0x11   :  { %p7101_p7 = pnand %p7100_p6, %p7094_p3 }
  0x13   :  { %7104 = shalt.err (!%p7101_p7)
}
  0x14   :  { %s7227_s25 = smov 128   ;;  %s7228_s26 = smov 8  }
  0x15   :  { %44 = dma.hbm_to_vmem [thread:$0]  %s8769_s1, 256, %s39_s14, [#allocation11], %s7227_s25, %s7227_s25, %s7228_s26  }
  0x16   :  { %s7105_s11 = scalar_lea.hbm %s8768_s0, 256 }
  0x17   :  { %p7106_p8 = scmp.ne.s32.totalorder %s8768_s0, %s7105_s11  ;;  %p7109_p9 = scmp.lt.u32.totalorder %s7105_s11, %s8768_s0 }
  0x19   :  { %p7111_p10 = pnand %p7109_p9, %p7106_p8 }
  0x1b   :  { %7114 = shalt.err (!%p7111_p10)
}
  0x1c   :  { %s7115_s18 = scalar_lea.vmem %s7299_s16, 256  ;;  %p7120_p12 = scmp.lt.s32.totalorder %s7299_s16, %s7299_s16 }
  0x1d   :  { %p7116_p11 = scmp.ne.s32.totalorder %s7299_s16, %s7115_s18  ;;  %p7121_p13 = scmp.lt.s32.totalorder %s7115_s18, %s7115_s18 }
  0x1f   :  { %p7122_p0 = por %p7121_p13, %p7120_p12 }
  0x21   :  { %p7123_p1 = pnand %p7122_p0, %p7116_p11 }
  0x23   :  { %7126 = shalt.err (!%p7123_p1)
}
  0x24   :  { %32 = dma.hbm_to_vmem [thread:$0]  %s8768_s0, 256, %s7299_s16, [#allocation8], %s7227_s25, %s7227_s25, %s7228_s26  }
  0x25   :  { %s7229_s19 = smov [#allocation12]   ;;  %s7230_s21 = smov [#allocation13]  }
  0x26   :  { %s52_s20 = sshll.u32 %s7229_s19, 4  ;;  %s71_s22 = sshll.u32 %s7230_s21, 4  ;;  %s53_s20 = int_to_ptr.vmem [resolvable:$true] %s52_s20  ;;  %s72_s22 = int_to_ptr.vmem [resolvable:$true] %s71_s22 }
  0x27   :  { %s7127_s27 = scalar_lea.hbm %s8771_s3, 1024 }
  0x28   :  { %p7128_p2 = scmp.ne.s32.totalorder %s8771_s3, %s7127_s27  ;;  %p7131_p3 = scmp.lt.u32.totalorder %s7127_s27, %s8771_s3 }
  0x2a   :  { %p7133_p4 = pnand %p7131_p3, %p7128_p2 }
  0x2c   :  { %7136 = shalt.err (!%p7133_p4)
}
  0x2d   :  { %s7137_s0 = scalar_lea.vmem %s53_s20, 1024  ;;  %p7142_p6 = scmp.lt.s32.totalorder %s53_s20, %s53_s20 }
  0x2e   :  { %p7138_p5 = scmp.ne.s32.totalorder %s53_s20, %s7137_s0  ;;  %p7143_p7 = scmp.lt.s32.totalorder %s7137_s0, %s7137_s0 }
  0x30   :  { %p7144_p8 = por %p7143_p7, %p7142_p6 }
  0x32   :  { %p7145_p9 = pnand %p7144_p8, %p7138_p5 }
  0x34   :  { %7148 = shalt.err (!%p7145_p9)
}
  0x35   :  { %58 = dma.hbm_to_vmem [thread:$0]  %s8771_s3, 1024, %s53_s20, [#allocation11], %s7227_s25, %s7227_s25, %s7228_s26  }
  0x36   :  { %s7149_s17 = scalar_lea.hbm %s8775_s7, 32 }
  0x37   :  { %p7150_p10 = scmp.ne.s32.totalorder %s8775_s7, %s7149_s17  ;;  %p7153_p11 = scmp.lt.u32.totalorder %s7149_s17, %s8775_s7 }
  0x39   :  { %p7155_p12 = pnand %p7153_p11, %p7150_p10 }
  0x3b   :  { %7158 = shalt.err (!%p7155_p12)
}
  0x3c   :  { %s7159_s21 = scalar_lea.vmem %s72_s22, 32  ;;  %p7164_p0 = scmp.lt.s32.totalorder %s72_s22, %s72_s22 }
  0x3d   :  { %p7160_p13 = scmp.ne.s32.totalorder %s72_s22, %s7159_s21  ;;  %p7165_p1 = scmp.lt.s32.totalorder %s7159_s21, %s7159_s21 }
  0x3f   :  { %p7166_p2 = por %p7165_p1, %p7164_p0 }
  0x41   :  { %p7167_p3 = pnand %p7166_p2, %p7160_p13 }
  0x43   :  { %7170 = shalt.err (!%p7167_p3)
}
  0x44   :  { %74 = dma.hbm_to_vmem [thread:$0]  %s8775_s7, 32, %s72_s22, [#allocation14]  }
  0x45   :  { %7215 = dma.done.wait [#allocation8], 256  }
  0x46   :  { %7216 = vsyncadd [#allocation8], 4294967040 }
  0x47   :  { %7217 = dma.done.wait [#allocation11], 1280  }
  0x48   :  { %7218 = vsyncadd [#allocation11], 4294966016 }
  0x49   :  { %7219 = dma.done.wait [#allocation14], 32  }
  0x4a   :  { %7220 = vsyncadd [#allocation14], 4294967264  ;;  %vm128_vm0 = vcmask 261120   ;;  %v90_v0 = vld [vmem:[#allocation7] sm:$0xff]  ;;  %v91_v1 = vld [vmem:[#allocation7 + $0x8] sm:$0xff]  ;;  %v7231_v17 = vmov 0.0   ;;  %v156_v25 = vlaneseq }
  0x4b   :  { %v129_v2 = vsel %vm128_vm0, %v90_v0, 0.0  ;;  %v132_v3 = vsel %vm128_vm0, %v91_v1, 0.0  ;;  %v7370_v14 = vld [vmem:[%s8773_s5] sm:$0xff]  ;;  %v7375_v15 = vld [vmem:[%s8773_s5 + $0xc] sm:$0xff]  ;;  %v7380_v16 = vld [vmem:[%s8773_s5 + $0x18] sm:$0xff]  ;;  %6268 = vmatprep.subr.bf16.mxu0 %v7231_v17  ;;  %vm7232_vm1 = vmmov 0   ;;  %6276 = vmatprep.subr.bf16.mxu1 %v7231_v17 }
  0x4c   :  { %130 = vadd.xlane.f32.xlu0 %v129_v2  ;;  %v7385_v18 = vcombine.high %v7370_v14, %v7375_v15  ;;  %v7390_v19 = vld [vmem:[%s8773_s5 + $0x24] sm:$0xff]  ;;  %6272 = vmatprep.mubr.msk.bf16.mxu0 %vm7232_vm1, %v7231_v17  ;;  %v7405_v28 = vshrl.u32 %v156_v25, 7  ;;  %vm229_vm2 = vcmask 64512   ;;  %s7233_s16 = smov 96   ;;  %s7234_s12 = smov 88   ;;  %vm838_vm3 = vcmask 1043456  }
  0x4d   :  { %6278 = vmatprep.mubr.msk.bf16.mxu1 %vm7232_vm1, %v7231_v17  ;;  %v7400_v20 = vcombine.high %v7380_v16, %v7390_v19  ;;  %v7413_v30 = vld [vmem:[%s8772_s4] sm:$0xff]  ;;  %s7235_s13 = smov 120   ;;  %s7236_s15 = smov 112   ;;  %vm2908_vm4 = vcmask 523264  }
  0x4e   :  { %6269 = vmatpush3.bf16.msra.mxu0 %v7385_v18  ;;  %v7408_v29 = vsub.s32 0, %v7405_v28  ;;  %v7418_v34 = vsub.s32 1, %v7405_v28  ;;  %v171_v43 = vsub.s32 6, %v7405_v28  ;;  %s7237_s17 = smov 104   ;;  %s7238_s0 = smov 80  }
  0x4f   :  { %6270 = vmatprep.subr.bf16.mxu0 %v7231_v17  ;;  %s7239_s18 = smov 72   ;;  %s7240_s1 = smov 64  }
  0x50   :  { %133 = vadd.xlane.f32.xlu0 %v132_v3  ;;  %v159_v33 = vrot.slane %v7413_v30, %v7408_v29  ;;  %v165_v38 = vrot.slane %v7413_v30, %v7418_v34  ;;  %v172_v44 = vrot.slane %v7413_v30, %v171_v43  ;;  %s7241_s14 = smov 32  }
  0x52   :  { %6271 = vmatpush3.bf16.msra.mxu0 %v7400_v20 }
  0x53   :  { %6282 = vmatprep.subr.bf16.mxu0 %v7231_v17 }
  0xd9   :  { %v131_v4 = vpop.xlane.xlu0 %130 }
  0xda   :  { %v136_v5 = vmul.f32 0.03125, %v131_v4 }
  0xdc   :  { %v138_v6 = vsub.f32 %v90_v0, %v136_v5 }
  0xdd   :  { %v134_v7 = vpop.xlane.xlu0 %133 }
  0xde   :  { %v137_v8 = vmul.f32 0.03125, %v134_v7  ;;  %v140_v9 = vmul.f32 %v138_v6, %v138_v6 }
  0xe0   :  { %v139_v10 = vsub.f32 %v91_v1, %v137_v8  ;;  %v142_v11 = vsel %vm128_vm0, %v140_v9, 0.0 }
  0xe1   :  { %143 = vadd.xlane.f32.xlu1 %v142_v11 }
  0xe2   :  { %v141_v12 = vmul.f32 %v139_v10, %v139_v10 }
  0xe4   :  { %v145_v13 = vsel %vm128_vm0, %v141_v12, 0.0 }
  0xe5   :  { %146 = vadd.xlane.f32.xlu1 %v145_v13 }
 0x16e   :  { %v144_v21 = vpop.xlane.xlu1 %143 }
 0x16f   :  { %v148_v22 = vmul.f32 0.03125, %v144_v21 }
 0x171   :  { %v150_v23 = vadd.f32 1e-05, %v148_v22 }
 0x172   :  { %v147_v24 = vpop.xlane.xlu1 %146 }
 0x173   :  { %6882 = vrsqrt.f32 %v150_v23  ;;  %v149_v26 = vmul.f32 0.03125, %v147_v24 }
 0x175   :  { %v151_v27 = vadd.f32 1e-05, %v149_v26 }
 0x177   :  { %6884 = vrsqrt.f32 %v151_v27 }
 0x17d   :  { %v6883_v31 = vpop.eup %6882 }
 0x17e   :  { %v154_v32 = vmul.f32 %v6883_v31, %v138_v6 }
 0x180   :  { %v160_v37 = vmul.f32 %v159_v33, %v154_v32 }
 0x181   :  { %v6885_v35 = vpop.eup %6884 }
 0x182   :  { %v155_v36 = vmul.f32 %v6885_v35, %v139_v10  ;;  %v166_v40 = vadd.f32 %v165_v38, %v160_v37 }
 0x184   :  { %v161_v39 = vmul.f32 %v159_v33, %v155_v36 }
 0x186   :  { %v167_v41 = vadd.f32 %v165_v38, %v161_v39 }
 0x188   :  { %v168_v42 = vpack.c.bf16 %v167_v41, %v166_v40 }
 0x18a   :  { %6273 = vmatmul.mubr.msk.bf16.vlgmr.msra.gmra.mrb[0].mxu0 %vm128_vm0, %v168_v42 }
 0x18b   :  { %6284 = vmatprep.mubr.msk.bf16.mxu0 %vm7232_vm1, %v7231_v17 }
 0x25d   :  { %v222_v45 = vpop.f32.mrb[0].mxu0 }
 0x25e   :  { %v7429_v46 = vadd.f32 %v222_v45, %v172_v44  ;;  %v6274_v47 = vpop.f32.mrb[1].mxu0 }
 0x25f   :  { %v225_v48 = vpop.f32.mrb[2].mxu0 }
 0x260   :  { %230 = vst.msk [vmem:[#allocation2] sm:$0xff] %vm229_vm2, %v7429_v46  ;;  %v7433_v49 = vadd.f32 %v225_v48, %v172_v44  ;;  %261 = vrot.lane.b32.xlu0 %v7429_v46, %s7233_s16  ;;  %v6275_v50 = vpop.f32.mrb[3].mxu0 }
 0x262   :  { %231 = vst.msk [vmem:[#allocation2 + $0x8] sm:$0xff] %vm229_vm2, %v7433_v49  ;;  %263 = vrot.lane.b32.xlu1 %v7433_v49, %s7233_s16 }
 0x264   :  { %272 = vrot.lane.b32.xlu0 %v7429_v46, %s7234_s12 }
 0x266   :  { %234 = vrot.lane.b32.xlu1 %v7429_v46, %s7235_s13 }
 0x267   :  { %v307_v2 = vld [vmem:[#allocation2] sm:$0xff] }
 0x268   :  { %243 = vrot.lane.b32.xlu0 %v7429_v46, %s7236_s15  ;;  %v315_v6 = vpack.c.bf16 %v307_v2, %v307_v2 }
 0x269   :  { %v308_v5 = vld [vmem:[#allocation2 + $0x8] sm:$0xff] }
 0x26a   :  { %236 = vrot.lane.b32.xlu1 %v7433_v49, %s7235_s13  ;;  %v316_v10 = vpack.c.bf16 %v308_v5, %v308_v5 }
 0x26c   :  { %252 = vrot.lane.b32.xlu0 %v7429_v46, %s7237_s17 }
 0x26e   :  { %274 = vrot.lane.b32.xlu1 %v7433_v49, %s7234_s12 }
 0x272   :  { %245 = vrot.lane.b32.xlu1 %v7433_v49, %s7236_s15 }
 0x276   :  { %254 = vrot.lane.b32.xlu1 %v7433_v49, %s7237_s17 }
 0x2d2   :  { %v262_v51 = vpop.permute.xlu0 %261 }
 0x2d3   :  { %267 = vst.msk [vmem:[#allocation3] sm:$0xff] %vm229_vm2, %v262_v51  ;;  %270 = vst.msk [vmem:[#allocation3 + $0x10] sm:$0xff] %vm229_vm2, %v262_v51 }
 0x2d4   :  { %v264_v52 = vpop.permute.xlu1 %263 }
 0x2d5   :  { %268 = vst.msk [vmem:[#allocation3 + $0x8] sm:$0xff] %vm229_vm2, %v264_v52  ;;  %271 = vst.msk [vmem:[#allocation3 + $0x18] sm:$0xff] %vm229_vm2, %v264_v52  ;;  %v94_v52 = vld [vmem:[%s8770_s2] sm:$0xff] }
 0x2d6   :  { %v273_v53 = vpop.permute.xlu0 %272 }
 0x2d7   :  { %279 = vst.msk [vmem:[#allocation3 + $0x20] sm:$0xff] %vm229_vm2, %v273_v53  ;;  %282 = vst.msk [vmem:[#allocation3 + $0x30] sm:$0xff] %vm229_vm2, %v273_v53 }
 0x2d8   :  { %v235_v54 = vpop.permute.xlu1 %234 }
 0x2d9   :  { %241 = vst.msk [vmem:[#allocation2 + $0x10] sm:$0xff] %vm229_vm2, %v235_v54 }
 0x2da   :  { %v244_v55 = vpop.permute.xlu0 %243  ;;  %v323_v56 = vld [vmem:[#allocation3] sm:$0xff]  ;;  %v325_v63 = vld [vmem:[#allocation3 + $0x10] sm:$0xff] }
 0x2db   :  { %250 = vst.msk [vmem:[#allocation2 + $0x20] sm:$0xff] %vm229_vm2, %v244_v55  ;;  %v331_v57 = vpack.c.bf16 %v323_v56, %v323_v56  ;;  %v333_v4 = vpack.c.bf16 %v325_v63, %v325_v63 }
 0x2dc   :  { %v237_v58 = vpop.permute.xlu1 %236  ;;  %v324_v59 = vld [vmem:[#allocation3 + $0x8] sm:$0xff]  ;;  %v326_v3 = vld [vmem:[#allocation3 + $0x18] sm:$0xff] }
 0x2dd   :  { %242 = vst.msk [vmem:[#allocation2 + $0x18] sm:$0xff] %vm229_vm2, %v237_v58  ;;  %v359_v60 = vsel %vm229_vm2, %v331_v57, 0  ;;  %v332_v61 = vpack.c.bf16 %v324_v59, %v324_v59  ;;  %v334_v7 = vpack.c.bf16 %v326_v3, %v326_v3  ;;  %v451_v9 = vsel %vm229_vm2, %v333_v4, 0  ;;  %v95_v57 = vld [vmem:[%s8770_s2 + $0x8] sm:$0xff]  ;;  %v96_v4 = vld [vmem:[%s8770_s2 + $0x10] sm:$0xff] }
 0x2de   :  { %6277 = vmatpush3.bf16.xpose.msra.mxu1 %v359_v60  ;;  %v253_v62 = vpop.permute.xlu0 %252  ;;  %v327_v11 = vld [vmem:[#allocation3 + $0x20] sm:$0xff]  ;;  %v329_v32 = vld [vmem:[#allocation3 + $0x30] sm:$0xff] }
 0x2df   :  { %259 = vst.msk [vmem:[#allocation2 + $0x30] sm:$0xff] %vm229_vm2, %v253_v62  ;;  %v405_v0 = vsel %vm229_vm2, %v332_v61, 0  ;;  %6288 = vmatprep.subr.bf16.mxu1 %v7231_v17  ;;  %v497_v12 = vsel %vm229_vm2, %v334_v7, 0  ;;  %v335_v23 = vpack.c.bf16 %v327_v11, %v327_v11  ;;  %v337_v37 = vpack.c.bf16 %v329_v32, %v329_v32 }
 0x2e0   :  { %6283 = vmatpush3.bf16.xpose.msra.mxu0 %v405_v0  ;;  %v275_v1 = vpop.permute.xlu1 %274  ;;  %v309_v21 = vld [vmem:[#allocation2 + $0x10] sm:$0xff] }
 0x2e1   :  { %280 = vst.msk [vmem:[#allocation3 + $0x28] sm:$0xff] %vm229_vm2, %v275_v1  ;;  %283 = vst.msk [vmem:[#allocation3 + $0x38] sm:$0xff] %vm229_vm2, %v275_v1  ;;  %6294 = vmatprep.subr.bf16.mxu0 %v7231_v17  ;;  %v317_v25 = vpack.c.bf16 %v309_v21, %v309_v21  ;;  %v543_v27 = vsel %vm229_vm2, %v335_v23, 0  ;;  %v635_v41 = vsel %vm229_vm2, %v337_v37, 0 }
 0x2e2   :  { %v311_v35 = vld [vmem:[#allocation2 + $0x20] sm:$0xff] }
 0x2e3   :  { %v319_v39 = vpack.c.bf16 %v311_v35, %v311_v35 }
 0x2e4   :  { %v246_v8 = vpop.permute.xlu1 %245  ;;  %v310_v24 = vld [vmem:[#allocation2 + $0x18] sm:$0xff] }
 0x2e5   :  { %251 = vst.msk [vmem:[#allocation2 + $0x28] sm:$0xff] %vm229_vm2, %v246_v8  ;;  %6279 = vmatmul.mubr.msk.bf16.vlgmr.msra.gmra.mrb[0].mxu1 %vm229_vm2, %v315_v6  ;;  %v318_v31 = vpack.c.bf16 %v310_v24, %v310_v24 }
 0x2e6   :  { %6289 = vmatpush3.bf16.xpose.msra.mxu1 %v451_v9  ;;  %6290 = vmatprep.mubr.msk.bf16.mxu1 %vm7232_vm1, %v7231_v17  ;;  %v313_v45 = vld [vmem:[#allocation2 + $0x30] sm:$0xff]  ;;  %v97_v9 = vld [vmem:[%s8770_s2 + $0x18] sm:$0xff] }
 0x2e7   :  { %6285 = vmatmul.mubr.msk.bf16.vlgmr.msra.gmra.mrb[4].mxu0 %vm229_vm2, %v316_v10  ;;  %6300 = vmatprep.subr.bf16.mxu1 %v7231_v17  ;;  %v321_v48 = vpack.c.bf16 %v313_v45, %v313_v45 }
 0x2e8   :  { %v255_v13 = vpop.permute.xlu1 %254  ;;  %6295 = vmatpush3.bf16.xpose.msra.mxu0 %v497_v12  ;;  %6296 = vmatprep.mubr.msk.bf16.mxu0 %vm7232_vm1, %v7231_v17  ;;  %v328_v22 = vld [vmem:[#allocation3 + $0x28] sm:$0xff]  ;;  %v330_v36 = vld [vmem:[#allocation3 + $0x38] sm:$0xff] }
 0x2e9   :  { %260 = vst.msk [vmem:[#allocation2 + $0x38] sm:$0xff] %vm229_vm2, %v255_v13  ;;  %6306 = vmatprep.subr.bf16.mxu0 %v7231_v17  ;;  %v336_v26 = vpack.c.bf16 %v328_v22, %v328_v22  ;;  %v338_v40 = vpack.c.bf16 %v330_v36, %v330_v36  ;;  %v99_v36 = vld [vmem:[%s8770_s2 + $0x28] sm:$0xff] }
 0x2eb   :  { %v589_v33 = vsel %vm229_vm2, %v336_v26, 0  ;;  %v681_v44 = vsel %vm229_vm2, %v338_v40, 0  ;;  %v98_v26 = vld [vmem:[%s8770_s2 + $0x20] sm:$0xff] }
 0x2ec   :  { %v312_v38 = vld [vmem:[#allocation2 + $0x28] sm:$0xff] }
 0x2ed   :  { %6291 = vmatmul.mubr.msk.bf16.vlgmr.msra.gmra.mrb[4].mxu1 %vm229_vm2, %v317_v25  ;;  %v320_v42 = vpack.c.bf16 %v312_v38, %v312_v38 }
 0x2ee   :  { %6301 = vmatpush3.bf16.xpose.msra.mxu1 %v543_v27  ;;  %6302 = vmatprep.mubr.msk.bf16.mxu1 %vm7232_vm1, %v7231_v17 }
 0x2ef   :  { %6297 = vmatmul.mubr.msk.bf16.vlgmr.msra.gmra.mrb[8].mxu0 %vm229_vm2, %v318_v31  ;;  %6312 = vmatprep.subr.bf16.mxu1 %v7231_v17 }
 0x2f0   :  { %6307 = vmatpush3.bf16.xpose.msra.mxu0 %v589_v33  ;;  %6308 = vmatprep.mubr.msk.bf16.mxu0 %vm7232_vm1, %v7231_v17  ;;  %v314_v47 = vld [vmem:[#allocation2 + $0x38] sm:$0xff] }
 0x2f1   :  { %6318 = vmatprep.subr.bf16.mxu0 %v7231_v17  ;;  %v322_v50 = vpack.c.bf16 %v314_v47, %v314_v47 }
 0x2f5   :  { %6303 = vmatmul.mubr.msk.bf16.vlgmr.msra.gmra.mrb[8].mxu1 %vm229_vm2, %v319_v39 }
 0x2f6   :  { %6313 = vmatpush3.bf16.xpose.msra.mxu1 %v635_v41  ;;  %6314 = vmatprep.mubr.msk.bf16.mxu1 %vm7232_vm1, %v7231_v17 }
 0x2f7   :  { %6309 = vmatmul.mubr.msk.bf16.vlgmr.msra.gmra.mrb[12].mxu0 %vm229_vm2, %v320_v42  ;;  %6324 = vmatprep.subr.bf16.mxu1 %v7231_v17 }
 0x2f8   :  { %6319 = vmatpush3.bf16.xpose.msra.mxu0 %v681_v44  ;;  %6320 = vmatprep.mubr.msk.bf16.mxu0 %vm7232_vm1, %v7231_v17 }
 0x2f9   :  { %6330 = vmatprep.subr.bf16.mxu0 %v7231_v17 }
 0x2fd   :  { %6315 = vmatmul.mubr.msk.bf16.vlgmr.msra.gmra.mrb[12].mxu1 %vm229_vm2, %v321_v48 }
 0x2fe   :  { %6326 = vmatprep.mubr.msk.bf16.mxu1 %vm7232_vm1, %v7231_v17 }
 0x2ff   :  { %6321 = vmatmul.mubr.msk.bf16.vlgmr.msra.gmra.mrb[16].mxu0 %vm229_vm2, %v322_v50  ;;  %v100_v50 = vld [vmem:[%s8770_s2 + $0x30] sm:$0xff] }
 0x300   :  { %6332 = vmatprep.mubr.msk.bf16.mxu0 %vm7232_vm1, %v7231_v17 }
 0x3b8   :  { %v395_v51 = vpop.f32.mrb[0].mxu1 }
 0x3b9   :  { %v723_v53 = vmul.f32 0.35355338, %v395_v51  ;;  %v6280_v54 = vpop.f32.mrb[1].mxu1 }
 0x3ba   :  { %v398_v55 = vpop.f32.mrb[2].mxu1  ;;  %v441_v56 = vpop.f32.mrb[4].mxu0 }
 0x3bb   :  { %v724_v58 = vmul.f32 0.35355338, %v441_v56  ;;  %v6281_v59 = vpop.f32.mrb[3].mxu1  ;;  %v6286_v60 = vpop.f32.mrb[5].mxu0  ;;  %v7517_v61 = vadd.f32 %v723_v53, %v94_v52  ;;  %v101_v55 = vld [vmem:[%s8770_s2 + $0x38] sm:$0xff] }
 0x3bc   :  { %v444_v62 = vpop.f32.mrb[6].mxu0 }
 0x3bd   :  { %v6287_v63 = vpop.f32.mrb[7].mxu0  ;;  %v739_v0 = vsel %vm229_vm2, %v7517_v61, -inf  ;;  %v7521_v1 = vadd.f32 %v724_v58, %v95_v57 }
 0x3be   :  { %740 = vmax.xlane.f32.xlu0 %v739_v0 }
 0x3bf   :  { %v742_v2 = vsel %vm229_vm2, %v7521_v1, -inf }
 0x3c0   :  { %v487_v3 = vpop.f32.mrb[4].mxu1  ;;  %743 = vmax.xlane.f32.xlu1 %v742_v2 }
 0x3c1   :  { %v725_v5 = vmul.f32 0.35355338, %v487_v3  ;;  %v6292_v6 = vpop.f32.mrb[5].mxu1 }
 0x3c2   :  { %v490_v7 = vpop.f32.mrb[6].mxu1  ;;  %v533_v8 = vpop.f32.mrb[8].mxu0 }
 0x3c3   :  { %v726_v10 = vmul.f32 0.35355338, %v533_v8  ;;  %v6293_v11 = vpop.f32.mrb[7].mxu1  ;;  %v6298_v12 = vpop.f32.mrb[9].mxu0  ;;  %v733_v13 = vadd.f32 %v725_v5, %v96_v4 }
 0x3c4   :  { %v536_v21 = vpop.f32.mrb[10].mxu0 }
 0x3c5   :  { %v6299_v22 = vpop.f32.mrb[11].mxu0  ;;  %v745_v23 = vsel %vm229_vm2, %v733_v13, -inf  ;;  %v734_v24 = vadd.f32 %v726_v10, %v97_v9 }
 0x3c6   :  { %746 = vmax.xlane.f32.xlu0 %v745_v23 }
 0x3c7   :  { %v748_v32 = vsel %vm229_vm2, %v734_v24, -inf }
 0x3c8   :  { %v579_v25 = vpop.f32.mrb[8].mxu1 }
 0x3c9   :  { %v727_v27 = vmul.f32 0.35355338, %v579_v25  ;;  %v6304_v31 = vpop.f32.mrb[9].mxu1 }
 0x3ca   :  { %v582_v33 = vpop.f32.mrb[10].mxu1  ;;  %749 = vmax.xlane.f32.xlu0 %v748_v32  ;;  %v625_v35 = vpop.f32.mrb[12].mxu0 }
 0x3cb   :  { %v728_v37 = vmul.f32 0.35355338, %v625_v35  ;;  %v6305_v38 = vpop.f32.mrb[11].mxu1  ;;  %v6310_v39 = vpop.f32.mrb[13].mxu0  ;;  %v735_v40 = vadd.f32 %v727_v27, %v98_v26 }
 0x3cc   :  { %v628_v41 = vpop.f32.mrb[14].mxu0 }
 0x3cd   :  { %v6311_v42 = vpop.f32.mrb[15].mxu0  ;;  %v751_v44 = vsel %vm229_vm2, %v735_v40, -inf  ;;  %v736_v45 = vadd.f32 %v728_v37, %v99_v36 }
 0x3ce   :  { %752 = vmax.xlane.f32.xlu0 %v751_v44 }
 0x3cf   :  { %v754_v47 = vsel %vm229_vm2, %v736_v45, -inf }
 0x3d0   :  { %v671_v48 = vpop.f32.mrb[12].mxu1  ;;  %755 = vmax.xlane.f32.xlu1 %v754_v47 }
 0x3d1   :  { %v729_v51 = vmul.f32 0.35355338, %v671_v48  ;;  %v6316_v52 = vpop.f32.mrb[13].mxu1 }
 0x3d2   :  { %v674_v53 = vpop.f32.mrb[14].mxu1  ;;  %v717_v54 = vpop.f32.mrb[16].mxu0 }
 0x3d3   :  { %v730_v56 = vmul.f32 0.35355338, %v717_v54  ;;  %v6317_v57 = vpop.f32.mrb[15].mxu1  ;;  %v6322_v58 = vpop.f32.mrb[17].mxu0  ;;  %v737_v59 = vadd.f32 %v729_v51, %v100_v50 }
 0x3d4   :  { %v720_v60 = vpop.f32.mrb[18].mxu0 }
 0x3d5   :  { %v6323_v62 = vpop.f32.mrb[19].mxu0  ;;  %v757_v63 = vsel %vm229_vm2, %v737_v59, -inf  ;;  %v738_v0 = vadd.f32 %v730_v56, %v101_v55 }
 0x3d6   :  { %758 = vmax.xlane.f32.xlu0 %v757_v63 }
 0x3d7   :  { %v760_v2 = vsel %vm229_vm2, %v738_v0, -inf }
 0x3d8   :  { %761 = vmax.xlane.f32.xlu1 %v760_v2  ;;  %v5941_v2 = vcombine.high %v7380_v16, %v7380_v16 }
 0x3e9   :  { %286 = vrot.lane.b32.xlu1 %v7433_v49, %s7238_s0 }
 0x3ec   :  { %284 = vrot.lane.b32.xlu0 %v7429_v46, %s7238_s0 }
 0x44b   :  { %v741_v3 = vpop.xlane.xlu0 %740 }
 0x44c   :  { %v763_v4 = vsub.f32 %v7517_v61, %v741_v3  ;;  %v5939_v3 = vcombine.high %v7375_v15, %v7375_v15 }
 0x44d   :  { %v744_v5 = vpop.xlane.xlu1 %743 }
 0x44e   :  { %v771_v6 = vmul.f32 1.442695, %v763_v4  ;;  %v764_v7 = vsub.f32 %v7521_v1, %v744_v5 }
 0x450   :  { %6886 = vpow2.f32 %v771_v6  ;;  %v773_v8 = vmul.f32 1.442695, %v764_v7 }
 0x452   :  { %6888 = vpow2.f32 %v773_v8 }
 0x453   :  { %v747_v9 = vpop.xlane.xlu0 %746 }
 0x454   :  { %v765_v10 = vsub.f32 %v733_v13, %v747_v9 }
 0x456   :  { %v775_v11 = vmul.f32 1.442695, %v765_v10 }
 0x457   :  { %v750_v12 = vpop.xlane.xlu0 %749 }
 0x458   :  { %6890 = vpow2.f32 %v775_v11  ;;  %v766_v21 = vsub.f32 %v734_v24, %v750_v12 }
 0x45a   :  { %v7555_v22 = vpop.eup %6886  ;;  %v777_v23 = vmul.f32 1.442695, %v766_v21 }
 0x45b   :  { %v753_v25 = vpop.xlane.xlu0 %752  ;;  %v787_v61 = vsel %vm229_vm2, %v7555_v22, 0.0 }
 0x45c   :  { %v7559_v26 = vpop.eup %6888  ;;  %6892 = vpow2.f32 %v777_v23  ;;  %v767_v1 = vsub.f32 %v735_v40, %v753_v25  ;;  %788 = vadd.xlane.f32.xlu0 %v787_v61 }
 0x45d   :  { %v756_v27 = vpop.xlane.xlu1 %755  ;;  %v790_v13 = vsel %vm229_vm2, %v7559_v26, 0.0 }
 0x45e   :  { %v779_v31 = vmul.f32 1.442695, %v767_v1  ;;  %v768_v32 = vsub.f32 %v736_v45, %v756_v27  ;;  %791 = vadd.xlane.f32.xlu1 %v790_v13 }
 0x460   :  { %6894 = vpow2.f32 %v779_v31  ;;  %v781_v24 = vmul.f32 1.442695, %v768_v32 }
 0x462   :  { %v7563_v33 = vpop.eup %6890  ;;  %6896 = vpow2.f32 %v781_v24 }
 0x463   :  { %v759_v35 = vpop.xlane.xlu0 %758  ;;  %v793_v36 = vsel %vm229_vm2, %v7563_v33, 0.0 }
 0x464   :  { %v769_v37 = vsub.f32 %v737_v59, %v759_v35  ;;  %794 = vadd.xlane.f32.xlu0 %v793_v36 }
 0x465   :  { %v762_v38 = vpop.xlane.xlu1 %761 }
 0x466   :  { %v7567_v39 = vpop.eup %6892  ;;  %v783_v40 = vmul.f32 1.442695, %v769_v37  ;;  %v770_v41 = vsub.f32 %v738_v0, %v762_v38  ;;  %v5937_v0 = vcombine.high %v7370_v14, %v7370_v14 }
 0x467   :  { %v285_v42 = vpop.permute.xlu0 %284  ;;  %v796_v44 = vsel %vm229_vm2, %v7567_v39, 0.0 }
 0x468   :  { %6898 = vpow2.f32 %v783_v40  ;;  %v785_v45 = vmul.f32 1.442695, %v770_v41  ;;  %290 = vst.msk [vmem:[#allocation4] sm:$0xff] %vm229_vm2, %v285_v42  ;;  %293 = vst.msk [vmem:[#allocation4 + $0x10] sm:$0xff] %vm229_vm2, %v285_v42  ;;  %797 = vadd.xlane.f32.xlu1 %v796_v44 }
 0x469   :  { %v287_v47 = vpop.permute.xlu1 %286 }
 0x46a   :  { %v7573_v48 = vpop.eup %6894  ;;  %6900 = vpow2.f32 %v785_v45  ;;  %291 = vst.msk [vmem:[#allocation4 + $0x8] sm:$0xff] %vm229_vm2, %v287_v47  ;;  %294 = vst.msk [vmem:[#allocation4 + $0x18] sm:$0xff] %vm229_vm2, %v287_v47 }
 0x46b   :  { %v799_v50 = vsel %vm229_vm2, %v7573_v48, 0.0 }
 0x46c   :  { %v7579_v51 = vpop.eup %6896  ;;  %800 = vadd.xlane.f32.xlu1 %v799_v50 }
 0x46d   :  { %v802_v52 = vsel %vm229_vm2, %v7579_v51, 0.0 }
 0x46e   :  { %803 = vadd.xlane.f32.xlu0 %v802_v52 }
 0x46f   :  { %v339_v53 = vld [vmem:[#allocation4] sm:$0xff]  ;;  %v341_v4 = vld [vmem:[#allocation4 + $0x10] sm:$0xff] }
 0x470   :  { %v347_v54 = vpack.c.bf16 %v339_v53, %v339_v53  ;;  %v349_v8 = vpack.c.bf16 %v341_v4, %v341_v4 }
 0x471   :  { %v340_v55 = vld [vmem:[#allocation4 + $0x8] sm:$0xff]  ;;  %v342_v6 = vld [vmem:[#allocation4 + $0x18] sm:$0xff] }
 0x472   :  { %v7583_v56 = vpop.eup %6898  ;;  %v840_v57 = vsel %vm838_vm3, %v347_v54, 0  ;;  %v348_v58 = vpack.c.bf16 %v340_v55, %v340_v55  ;;  %v350_v11 = vpack.c.bf16 %v342_v6, %v342_v6  ;;  %v932_v12 = vsel %vm838_vm3, %v349_v8, 0 }
 0x473   :  { %6325 = vmatpush3.bf16.msra.mxu1 %v840_v57  ;;  %v805_v59 = vsel %vm229_vm2, %v7583_v56, 0.0 }
 0x474   :  { %v7588_v60 = vpop.eup %6900  ;;  %806 = vadd.xlane.f32.xlu0 %v805_v59  ;;  %v886_v62 = vsel %vm838_vm3, %v348_v58, 0  ;;  %6336 = vmatprep.subr.bf16.mxu1 %v7231_v17 }
 0x475   :  { %6331 = vmatpush3.bf16.msra.mxu0 %v886_v62  ;;  %v808_v63 = vsel %vm229_vm2, %v7588_v60, 0.0 }
 0x476   :  { %809 = vadd.xlane.f32.xlu1 %v808_v63  ;;  %6342 = vmatprep.subr.bf16.mxu0 %v7231_v17 }
 0x487   :  { %297 = vrot.lane.b32.xlu1 %v7433_v49, %s7239_s18  ;;  %v5943_v49 = vcombine.high %v7390_v19, %v7390_v19 }
 0x48a   :  { %295 = vrot.lane.b32.xlu0 %v7429_v46, %s7239_s18 }
 0x48b   :  { %1206 = vrot.lane.b32.xlu1 %v5937_v0, %s7240_s1 }
 0x48e   :  { %1316 = vrot.lane.b32.xlu0 %v5941_v2, %s7240_s1 }
 0x48f   :  { %1263 = vrot.lane.b32.xlu1 %v5939_v3, %s7240_s1 }
 0x493   :  { %1369 = vrot.lane.b32.xlu1 %v5943_v49, %s7240_s1 }
 0x4e9   :  { %v789_v46 = vpop.xlane.xlu0 %788 }
 0x4ea   :  { %6902 = vrcp.f32 %v789_v46 }
 0x4eb   :  { %v792_v14 = vpop.xlane.xlu1 %791 }
 0x4ec   :  { %6904 = vrcp.f32 %v792_v14 }
 0x4f1   :  { %v795_v16 = vpop.xlane.xlu0 %794 }
 0x4f2   :  { %6906 = vrcp.f32 %v795_v16 }
 0x4f4   :  { %v6903_v5 = vpop.eup %6902 }
 0x4f5   :  { %v798_v7 = vpop.xlane.xlu1 %797  ;;  %v812_v15 = vmul.f32 %v6903_v5, %v7555_v22  ;;  %v978_v22 = vsel %vm838_vm3, %v350_v11, 0 }
 0x4f6   :  { %v6905_v9 = vpop.eup %6904  ;;  %6908 = vrcp.f32 %v798_v7 }
 0x4f7   :  { %v827_v10 = vpack.c.bf16 %v812_v15, %v812_v15  ;;  %v814_v19 = vmul.f32 %v6905_v9, %v7559_v26 }
 0x4f9   :  { %6327 = vmatmul.mubr.msk.bf16.vlgmr.msra.gmra.mrb[16].mxu1 %vm229_vm2, %v827_v10  ;;  %v828_v21 = vpack.c.bf16 %v814_v19, %v814_v19  ;;  %v801_v26 = vpop.xlane.xlu1 %800 }
 0x4fa   :  { %6337 = vmatpush3.bf16.msra.mxu1 %v932_v12  ;;  %6338 = vmatprep.mubr.msk.bf16.mxu1 %vm7232_vm1, %v7231_v17  ;;  %6910 = vrcp.f32 %v801_v26 }
 0x4fb   :  { %6333 = vmatmul.mubr.msk.bf16.vlgmr.msra.gmra.mrb[20].mxu0 %vm229_vm2, %v828_v21  ;;  %6348 = vmatprep.subr.bf16.mxu1 %v7231_v17  ;;  %v804_v25 = vpop.xlane.xlu0 %803 }
 0x4fc   :  { %v6907_v23 = vpop.eup %6906  ;;  %6343 = vmatpush3.bf16.msra.mxu0 %v978_v22  ;;  %6344 = vmatprep.mubr.msk.bf16.mxu0 %vm7232_vm1, %v7231_v17  ;;  %6912 = vrcp.f32 %v804_v25 }
 0x4fd   :  { %v816_v61 = vmul.f32 %v6907_v23, %v7563_v33  ;;  %6354 = vmatprep.subr.bf16.mxu0 %v7231_v17 }
 0x4ff   :  { %v829_v1 = vpack.c.bf16 %v816_v61, %v816_v61 }
 0x500   :  { %v6909_v27 = vpop.eup %6908 }
 0x501   :  { %6339 = vmatmul.mubr.msk.bf16.vlgmr.msra.gmra.mrb[20].mxu1 %vm229_vm2, %v829_v1  ;;  %v807_v13 = vpop.xlane.xlu0 %806  ;;  %v818_v31 = vmul.f32 %v6909_v27, %v7567_v39 }
 0x502   :  { %6350 = vmatprep.mubr.msk.bf16.mxu1 %vm7232_vm1, %v7231_v17  ;;  %6914 = vrcp.f32 %v807_v13 }
 0x503   :  { %v810_v32 = vpop.xlane.xlu1 %809  ;;  %v830_v24 = vpack.c.bf16 %v818_v31, %v818_v31 }
 0x504   :  { %v6911_v36 = vpop.eup %6910  ;;  %6916 = vrcp.f32 %v810_v32 }
 0x505   :  { %v296_v35 = vpop.permute.xlu0 %295  ;;  %6345 = vmatmul.mubr.msk.bf16.vlgmr.msra.gmra.mrb[24].mxu0 %vm229_vm2, %v830_v24  ;;  %v820_v41 = vmul.f32 %v6911_v36, %v7573_v48 }
 0x506   :  { %302 = vst.msk [vmem:[#allocation4 + $0x20] sm:$0xff] %vm229_vm2, %v296_v35  ;;  %305 = vst.msk [vmem:[#allocation4 + $0x30] sm:$0xff] %vm229_vm2, %v296_v35  ;;  %6356 = vmatprep.mubr.msk.bf16.mxu0 %vm7232_vm1, %v7231_v17  ;;  %v6913_v37 = vpop.eup %6912 }
 0x507   :  { %v298_v33 = vpop.permute.xlu1 %297  ;;  %v822_v52 = vmul.f32 %v6913_v37, %v7579_v51  ;;  %v831_v54 = vpack.c.bf16 %v820_v41, %v820_v41 }
 0x508   :  { %303 = vst.msk [vmem:[#allocation4 + $0x28] sm:$0xff] %vm229_vm2, %v298_v33  ;;  %306 = vst.msk [vmem:[#allocation4 + $0x38] sm:$0xff] %vm229_vm2, %v298_v33 }
 0x509   :  { %v832_v58 = vpack.c.bf16 %v822_v52, %v822_v52  ;;  %v1317_v14 = vpop.permute.xlu0 %1316 }
 0x50a   :  { %v1322_v8 = vsel %vm838_vm3, %v1317_v14, 0 }
 0x50c   :  { %v6915_v57 = vpop.eup %6914 }
 0x50d   :  { %v343_v38 = vld [vmem:[#allocation4 + $0x20] sm:$0xff]  ;;  %v345_v39 = vld [vmem:[#allocation4 + $0x30] sm:$0xff]  ;;  %v824_v62 = vmul.f32 %v6915_v57, %v7583_v56  ;;  %v1207_v56 = vpop.permute.xlu1 %1206 }
 0x50e   :  { %v351_v40 = vpack.c.bf16 %v343_v38, %v343_v38  ;;  %v353_v50 = vpack.c.bf16 %v345_v39, %v345_v39  ;;  %v6917_v59 = vpop.eup %6916  ;;  %v1212_v3 = vsel %vm838_vm3, %v1207_v56, 0 }
 0x50f   :  { %v344_v42 = vld [vmem:[#allocation4 + $0x28] sm:$0xff]  ;;  %v346_v44 = vld [vmem:[#allocation4 + $0x38] sm:$0xff]  ;;  %v826_v63 = vmul.f32 %v6917_v59, %v7588_v60  ;;  %v833_v0 = vpack.c.bf16 %v824_v62, %v824_v62 }
 0x510   :  { %v1024_v45 = vsel %vm838_vm3, %v351_v40, 0  ;;  %v352_v47 = vpack.c.bf16 %v344_v42, %v344_v42  ;;  %v354_v55 = vpack.c.bf16 %v346_v44, %v346_v44  ;;  %v1116_v48 = vsel %vm838_vm3, %v353_v50, 0 }
 0x511   :  { %6349 = vmatpush3.bf16.msra.mxu1 %v1024_v45  ;;  %v834_v2 = vpack.c.bf16 %v826_v63, %v826_v63  ;;  %v1264_v60 = vpop.permute.xlu1 %1263 }
 0x512   :  { %v1070_v53 = vsel %vm838_vm3, %v352_v47, 0  ;;  %6360 = vmatprep.subr.bf16.mxu1 %v7231_v17  ;;  %v1162_v51 = vsel %vm838_vm3, %v354_v55, 0  ;;  %v1269_v49 = vsel %vm838_vm3, %v1264_v60, 0 }
 0x513   :  { %6355 = vmatpush3.bf16.msra.mxu0 %v1070_v53 }
 0x514   :  { %6351 = vmatmul.mubr.msk.bf16.vlgmr.msra.gmra.mrb[24].mxu1 %vm229_vm2, %v831_v54  ;;  %6366 = vmatprep.subr.bf16.mxu0 %v7231_v17  ;;  %v1257_v54 = vsub.s32 7, %v7405_v28 }
 0x515   :  { %6361 = vmatpush3.bf16.msra.mxu1 %v1116_v48  ;;  %6362 = vmatprep.mubr.msk.bf16.mxu1 %vm7232_vm1, %v7231_v17  ;;  %v1370_v21 = vpop.permute.xlu1 %1369 }
 0x516   :  { %6357 = vmatmul.mubr.msk.bf16.vlgmr.msra.gmra.mrb[28].mxu0 %vm229_vm2, %v832_v58  ;;  %6372 = vmatprep.subr.bf16.mxu1 %v7231_v17  ;;  %v1375_v26 = vsel %vm838_vm3, %v1370_v21, 0  ;;  %v1258_v58 = vrot.slane %v7413_v30, %v1257_v54 }
 0x517   :  { %6367 = vmatpush3.bf16.msra.mxu0 %v1162_v51  ;;  %6368 = vmatprep.mubr.msk.bf16.mxu0 %vm7232_vm1, %v7231_v17 }
 0x518   :  { %6378 = vmatprep.subr.bf16.mxu0 %v7231_v17 }
 0x51c   :  { %6363 = vmatmul.mubr.msk.bf16.vlgmr.msra.gmra.mrb[28].mxu1 %vm229_vm2, %v833_v0 }
 0x51d   :  { %6374 = vmatprep.mubr.msk.bf16.mxu1 %vm7232_vm1, %v7231_v17  ;;  %6373 = vmatpush3.bf16.msra.mxu1 %v1212_v3 }
 0x51e   :  { %6369 = vmatmul.mubr.msk.bf16.vlgmr.msra.gmra.mrb[32].mxu0 %vm229_vm2, %v834_v2  ;;  %6384 = vmatprep.subr.bf16.mxu1 %v7231_v17 }
 0x51f   :  { %6380 = vmatprep.mubr.msk.bf16.mxu0 %vm7232_vm1, %v7231_v17  ;;  %6379 = vmatpush3.bf16.msra.mxu0 %v1269_v49 }
 0x520   :  { %6390 = vmatprep.subr.bf16.mxu0 %v7231_v17 }
 0x5cc   :  { %v876_v46 = vpop.f32.mrb[16].mxu1 }
 0x5cd   :  { %v6328_v16 = vpop.f32.mrb[17].mxu1 }
 0x5ce   :  { %v879_v4 = vpop.f32.mrb[18].mxu1  ;;  %v922_v5 = vpop.f32.mrb[20].mxu0 }
 0x5cf   :  { %v1204_v6 = vpack.c.bf16 %v922_v5, %v876_v46  ;;  %v6329_v7 = vpop.f32.mrb[19].mxu1  ;;  %v6334_v15 = vpop.f32.mrb[21].mxu0 }
 0x5d0   :  { %v925_v9 = vpop.f32.mrb[22].mxu0 }
 0x5d1   :  { %v6335_v10 = vpop.f32.mrb[23].mxu0  ;;  %6375 = vmatmul.mubr.msk.bf16.vlgmr.msra.gmra.mrb[32].mxu1 %vm229_vm2, %v1204_v6 }
 0x5d2   :  { %6385 = vmatpush3.bf16.msra.mxu1 %v1322_v8  ;;  %6386 = vmatprep.mubr.msk.bf16.mxu1 %vm7232_vm1, %v7231_v17  ;;  %v7054_v8 = vld [vmem:[#allocation7] sm:$0xff] }
 0x5d3   :  { %6396 = vmatprep.subr.bf16.mxu1 %v7231_v17 }
 0x5d4   :  { %v968_v19 = vpop.f32.mrb[20].mxu1 }
 0x5d5   :  { %v6340_v11 = vpop.f32.mrb[21].mxu1 }
 0x5d6   :  { %v971_v12 = vpop.f32.mrb[22].mxu1 }
 0x5d7   :  { %v6341_v22 = vpop.f32.mrb[23].mxu1 }
 0x5d8   :  { %v1014_v23 = vpop.f32.mrb[24].mxu0 }
 0x5d9   :  { %v1261_v25 = vpack.c.bf16 %v1014_v23, %v968_v19  ;;  %v6346_v61 = vpop.f32.mrb[25].mxu0  ;;  %v7055_v19 = vld [vmem:[#allocation7 + $0x8] sm:$0xff] }
 0x5da   :  { %v1017_v1 = vpop.f32.mrb[26].mxu0 }
 0x5db   :  { %v6347_v27 = vpop.f32.mrb[27].mxu0  ;;  %6381 = vmatmul.mubr.msk.bf16.vlgmr.msra.gmra.mrb[36].mxu0 %vm229_vm2, %v1261_v25 }
 0x5dc   :  { %6391 = vmatpush3.bf16.msra.mxu0 %v1375_v26  ;;  %6392 = vmatprep.mubr.msk.bf16.mxu0 %vm7232_vm1, %v7231_v17 }
 0x5dd   :  { %6404 = vmatprep.subr.bf16.mxu0 %v7231_v17 }
 0x5e7   :  { %v1060_v13 = vpop.f32.mrb[24].mxu1 }
 0x5e8   :  { %v6352_v31 = vpop.f32.mrb[25].mxu1 }
 0x5e9   :  { %v1063_v32 = vpop.f32.mrb[26].mxu1  ;;  %v1106_v24 = vpop.f32.mrb[28].mxu0 }
 0x5ea   :  { %v1314_v35 = vpack.c.bf16 %v1106_v24, %v1060_v13  ;;  %v6353_v33 = vpop.f32.mrb[27].mxu1  ;;  %v6358_v36 = vpop.f32.mrb[29].mxu0  ;;  %v7705_v24 = vld [vmem:[%s8773_s5 + $0x14] sm:$0xf] }
 0x5eb   :  { %v1109_v37 = vpop.f32.mrb[30].mxu0  ;;  %v7715_v33 = vld [vmem:[%s8773_s5 + $0x20] sm:$0xf]  ;;  %v7720_v36 = vld [vmem:[%s8773_s5 + $0x2c] sm:$0xf] }
 0x5ec   :  { %v6359_v38 = vpop.f32.mrb[31].mxu0  ;;  %6387 = vmatmul.mubr.msk.bf16.vlgmr.msra.gmra.mrb[36].mxu1 %vm229_vm2, %v1314_v35  ;;  %v5947_v37 = vcombine.low %v7715_v33, %v7720_v36 }
 0x5ed   :  { %6400 = vmatprep.mubr.msk.bf16.mxu1 %vm7232_vm1, %v7231_v17  ;;  %v92_v38 = vld [vmem:[#allocation10] sm:$0xff] }
 0x5ef   :  { %v1152_v39 = vpop.f32.mrb[28].mxu1 }
 0x5f0   :  { %v6364_v40 = vpop.f32.mrb[29].mxu1 }
 0x5f1   :  { %v1155_v41 = vpop.f32.mrb[30].mxu1  ;;  %v1198_v42 = vpop.f32.mrb[32].mxu0 }
 0x5f2   :  { %v1367_v44 = vpack.c.bf16 %v1198_v42, %v1152_v39  ;;  %v6365_v45 = vpop.f32.mrb[31].mxu1  ;;  %v6370_v47 = vpop.f32.mrb[33].mxu0  ;;  %v93_v39 = vld [vmem:[#allocation10 + $0x8] sm:$0xff] }
 0x5f3   :  { %v1201_v50 = vpop.f32.mrb[34].mxu0 }
 0x5f4   :  { %v6371_v52 = vpop.f32.mrb[35].mxu0  ;;  %6393 = vmatmul.mubr.msk.bf16.vlgmr.msra.gmra.mrb[40].mxu0 %vm229_vm2, %v1367_v44 }
 0x5f5   :  { %6408 = vmatprep.mubr.msk.bf16.mxu0 %vm7232_vm1, %v7231_v17 }
 0x6a4   :  { %v1248_v53 = vpop.f32.mrb[32].mxu1 }
 0x6a5   :  { %v6376_v55 = vpop.f32.mrb[33].mxu1  ;;  %v1259_v59 = vadd.f32 %v1258_v58, %v1248_v53  ;;  %v7733_v53 = vsub.s32 2, %v7405_v28 }
 0x6a6   :  { %v1251_v57 = vpop.f32.mrb[34].mxu1 }
 0x6a7   :  { %v6377_v48 = vpop.f32.mrb[35].mxu1  ;;  %v1260_v62 = vadd.f32 %v1258_v58, %v1251_v57  ;;  %v7739_v57 = vld [vmem:[%s8772_s4] sm:$0xff] }
 0x6a8   :  { %v1451_v48 = vrot.slane %v7739_v57, %v7733_v53 }
 0x6ae   :  { %v1305_v51 = vpop.f32.mrb[36].mxu0 }
 0x6af   :  { %v1312_v63 = vadd.f32 %v1305_v51, %v1259_v59  ;;  %v6382_v0 = vpop.f32.mrb[37].mxu0  ;;  %v1456_v59 = vsub.s32 3, %v7405_v28 }
 0x6b0   :  { %v1308_v2 = vpop.f32.mrb[38].mxu0 }
 0x6b1   :  { %v1313_v56 = vadd.f32 %v1308_v2, %v1260_v62  ;;  %v6383_v3 = vpop.f32.mrb[39].mxu0  ;;  %v1457_v0 = vrot.slane %v7739_v57, %v1456_v59 }
 0x6bf   :  { %v1358_v60 = vpop.f32.mrb[36].mxu1 }
 0x6c0   :  { %v1365_v49 = vadd.f32 %v1358_v60, %v1312_v63  ;;  %v6388_v46 = vpop.f32.mrb[37].mxu1 }
 0x6c1   :  { %v1361_v14 = vpop.f32.mrb[38].mxu1 }
 0x6c2   :  { %v1366_v16 = vadd.f32 %v1361_v14, %v1313_v56  ;;  %v6389_v4 = vpop.f32.mrb[39].mxu1 }
 0x6c7   :  { %v1411_v5 = vpop.f32.mrb[40].mxu0 }
 0x6c8   :  { %v1418_v6 = vadd.f32 %v1411_v5, %v1365_v49  ;;  %v6394_v7 = vpop.f32.mrb[41].mxu0  ;;  %v7753_v49 = vld [vmem:[%s8772_s4 + $0x8] sm:$0x7] }
 0x6c9   :  { %v1414_v15 = vpop.f32.mrb[42].mxu0  ;;  %v1519_v46 = vrot.slane %v7753_v49, %v7418_v34 }
 0x6ca   :  { %v7683_v30 = vadd.f32 %v7054_v8, %v1418_v6  ;;  %v1419_v9 = vadd.f32 %v1414_v15, %v1366_v16  ;;  %v6395_v10 = vpop.f32.mrb[43].mxu0 }
 0x6cc   :  { %v7685_v11 = vadd.f32 %v7055_v19, %v1419_v9  ;;  %v1422_v12 = vsel %vm128_vm0, %v7683_v30, 0.0 }
 0x6cd   :  { %1423 = vadd.xlane.f32.xlu0 %v1422_v12 }
 0x6ce   :  { %v1425_v21 = vsel %vm128_vm0, %v7685_v11, 0.0 }
 0x6cf   :  { %1426 = vadd.xlane.f32.xlu1 %v1425_v21 }
 0x6e0   :  { %1467 = vrot.lane.b32.xlu1 %v7400_v20, %s7241_s14  ;;  %v7700_v20 = vld [vmem:[%s8773_s5 + $0x8] sm:$0xf] }
 0x6e1   :  { %v5946_v35 = vcombine.low %v7700_v20, %v7705_v24 }
 0x6e3   :  { %6405 = vmatpush3.bf16.msra.mxu0 %v5946_v35 }
 0x6e4   :  { %6406 = vmatprep.subr.bf16.mxu0 %v7231_v17 }
 0x6e7   :  { %6407 = vmatpush3.bf16.msra.mxu0 %v5947_v37 }
 0x6e8   :  { %6418 = vmatprep.subr.bf16.mxu0 %v7231_v17 }
 0x75a   :  { %v1424_v22 = vpop.xlane.xlu0 %1423 }
 0x75b   :  { %v1428_v23 = vmul.f32 0.03125, %v1424_v22  ;;  %v1464_v22 = vrot.slane %v7753_v49, %v7408_v29 }
 0x75c   :  { %v1427_v25 = vpop.xlane.xlu1 %1426 }
 0x75d   :  { %v1430_v61 = vsub.f32 %v7683_v30, %v1428_v23  ;;  %v1429_v26 = vmul.f32 0.03125, %v1427_v25 }
 0x75f   :  { %v1431_v1 = vsub.f32 %v7685_v11, %v1429_v26  ;;  %v1432_v27 = vmul.f32 %v1430_v61, %v1430_v61 }
 0x760   :  { %v1468_v52 = vpop.permute.xlu1 %1467 }
 0x761   :  { %v1434_v13 = vsel %vm128_vm0, %v1432_v27, 0.0  ;;  %v1433_v31 = vmul.f32 %v1431_v1, %v1431_v1 }
 0x762   :  { %1435 = vadd.xlane.f32.xlu0 %v1434_v13 }
 0x763   :  { %v1437_v32 = vsel %vm128_vm0, %v1433_v31, 0.0 }
 0x766   :  { %1438 = vadd.xlane.f32.xlu0 %v1437_v32 }
 0x77c   :  { %1465 = vrot.lane.b32.xlu0 %v7385_v18, %s7241_s14  ;;  %v7724_v18 = vpack.c.bf16 %v93_v39, %v92_v38 }
 0x77e   :  { %6409 = vmatmul.mubr.msk.bf16.vlgmr.msra.gmra.mrb[44].mxu0 %vm128_vm0, %v7724_v18 }
 0x77f   :  { %6420 = vmatprep.mubr.msk.bf16.mxu0 %vm7232_vm1, %v7231_v17 }
 0x7ef   :  { %v1436_v40 = vpop.xlane.xlu0 %1435 }
 0x7f0   :  { %v1440_v41 = vmul.f32 0.03125, %v1436_v40 }
 0x7f2   :  { %v1442_v42 = vadd.f32 1e-05, %v1440_v41 }
 0x7f3   :  { %v1439_v44 = vpop.xlane.xlu0 %1438 }
 0x7f4   :  { %6918 = vrsqrt.f32 %v1442_v42  ;;  %v1441_v45 = vmul.f32 0.03125, %v1439_v44 }
 0x7f6   :  { %v1443_v47 = vadd.f32 1e-05, %v1441_v45 }
 0x7f7   :  { %v1466_v50 = vpop.permute.xlu0 %1465 }
 0x7f8   :  { %6920 = vrsqrt.f32 %v1443_v47  ;;  %6397 = vmatpush3.bf16.msra.mxu1 %v1466_v50 }
 0x7f9   :  { %6398 = vmatprep.subr.bf16.mxu1 %v7231_v17 }
 0x7fc   :  { %6399 = vmatpush3.bf16.msra.mxu1 %v1468_v52 }
 0x7fd   :  { %6412 = vmatprep.subr.bf16.mxu1 %v7231_v17 }
 0x7fe   :  { %v6919_v55 = vpop.eup %6918 }
 0x7ff   :  { %v1446_v58 = vmul.f32 %v6919_v55, %v1430_v61 }
 0x801   :  { %v1452_v62 = vmul.f32 %v1451_v48, %v1446_v58 }
 0x802   :  { %v6921_v51 = vpop.eup %6920 }
 0x803   :  { %v1447_v63 = vmul.f32 %v6921_v51, %v1431_v1  ;;  %v1458_v56 = vadd.f32 %v1457_v0, %v1452_v62 }
 0x805   :  { %v1453_v2 = vmul.f32 %v1451_v48, %v1447_v63 }
 0x807   :  { %v1459_v3 = vadd.f32 %v1457_v0, %v1453_v2 }
 0x809   :  { %v1460_v60 = vpack.c.bf16 %v1459_v3, %v1458_v56 }
 0x80b   :  { %6401 = vmatmul.mubr.msk.bf16.vlgmr.msra.gmra.mrb[40].mxu1 %vm128_vm0, %v1460_v60 }
 0x80c   :  { %6414 = vmatprep.mubr.msk.bf16.mxu1 %vm7232_vm1, %v7231_v17 }
 0x851   :  { %v1569_v14 = vpop.f32.mrb[44].mxu0 }
 0x852   :  { %v7757_v16 = vadd.f32 %v1569_v14, %v1519_v46  ;;  %v6410_v4 = vpop.f32.mrb[45].mxu0 }
 0x853   :  { %v1572_v5 = vpop.f32.mrb[46].mxu0 }
 0x854   :  { %1604 = vst.msk [vmem:[#allocation5] sm:$0xff] %vm229_vm2, %v7757_v16  ;;  %1607 = vst.msk [vmem:[#allocation5 + $0x10] sm:$0xff] %vm229_vm2, %v7757_v16  ;;  %v7763_v6 = vadd.f32 %v1572_v5, %v1519_v46  ;;  %1611 = vrot.lane.b32.xlu0 %v7757_v16, %s7235_s13  ;;  %v6411_v7 = vpop.f32.mrb[47].mxu0 }
 0x856   :  { %1605 = vst.msk [vmem:[#allocation5 + $0x8] sm:$0xff] %vm229_vm2, %v7763_v6  ;;  %1608 = vst.msk [vmem:[#allocation5 + $0x18] sm:$0xff] %vm229_vm2, %v7763_v6 }
 0x85b   :  { %v1662_v15 = vld [vmem:[#allocation5] sm:$0xff]  ;;  %v1664_v13 = vld [vmem:[#allocation5 + $0x10] sm:$0xff] }
 0x85c   :  { %v1670_v8 = vpack.c.bf16 %v1662_v15, %v1662_v15  ;;  %v1672_v32 = vpack.c.bf16 %v1664_v13, %v1664_v13 }
 0x85d   :  { %v1663_v9 = vld [vmem:[#allocation5 + $0x8] sm:$0xff]  ;;  %v1665_v31 = vld [vmem:[#allocation5 + $0x18] sm:$0xff] }
 0x85e   :  { %v1698_v10 = vsel %vm229_vm2, %v1670_v8, 0  ;;  %v1671_v19 = vpack.c.bf16 %v1663_v9, %v1663_v9  ;;  %v1673_v35 = vpack.c.bf16 %v1665_v31, %v1665_v31  ;;  %v1790_v39 = vsel %vm229_vm2, %v1672_v32, 0  ;;  %v103_v32 = vld [vmem:[#allocation12 + $0x8] sm:$0xff] }
 0x85f   :  { %6413 = vmatpush3.bf16.xpose.msra.mxu1 %v1698_v10 }
 0x860   :  { %v1744_v12 = vsel %vm229_vm2, %v1671_v19, 0  ;;  %6424 = vmatprep.subr.bf16.mxu1 %v7231_v17  ;;  %v1836_v42 = vsel %vm229_vm2, %v1673_v35, 0 }
 0x861   :  { %6419 = vmatpush3.bf16.xpose.msra.mxu0 %v1744_v12 }
 0x862   :  { %6430 = vmatprep.subr.bf16.mxu0 %v7231_v17 }
 0x8c6   :  { %v1612_v21 = vpop.permute.xlu0 %1611 }
 0x8c7   :  { %1618 = vst.msk [vmem:[#allocation5 + $0x20] sm:$0xff] %vm229_vm2, %v1612_v21  ;;  %1621 = vst.msk [vmem:[#allocation5 + $0x30] sm:$0xff] %vm229_vm2, %v1612_v21 }
 0x8ce   :  { %v1666_v47 = vld [vmem:[#allocation5 + $0x20] sm:$0xff]  ;;  %v1668_v63 = vld [vmem:[#allocation5 + $0x30] sm:$0xff] }
 0x8cf   :  { %v1674_v55 = vpack.c.bf16 %v1666_v47, %v1666_v47  ;;  %v1676_v3 = vpack.c.bf16 %v1668_v63, %v1668_v63  ;;  %v105_v63 = vld [vmem:[#allocation12 + $0x18] sm:$0xff] }
 0x8d1   :  { %v1882_v62 = vsel %vm229_vm2, %v1674_v55, 0  ;;  %v1974_v5 = vsel %vm229_vm2, %v1676_v3, 0 }
 0x8de   :  { %v1508_v23 = vpop.f32.mrb[40].mxu1 }
 0x8df   :  { %v1509_v25 = vadd.f32 %v1508_v23, %v1464_v22  ;;  %v6402_v61 = vpop.f32.mrb[41].mxu1 }
 0x8e0   :  { %v1511_v26 = vpop.f32.mrb[42].mxu1 }
 0x8e1   :  { %1576 = vst.msk [vmem:[#allocation2] sm:$0xff] %vm229_vm2, %v1509_v25  ;;  %v1512_v1 = vadd.f32 %v1511_v26, %v1464_v22  ;;  %1580 = vrot.lane.b32.xlu1 %v1509_v25, %s7235_s13  ;;  %v6403_v27 = vpop.f32.mrb[43].mxu1  ;;  %1588 = vrot.lane.b32.xlu0 %v1509_v25, %s7236_s15  ;;  %v102_v26 = vld [vmem:[#allocation12] sm:$0xff] }
 0x8e3   :  { %1577 = vst.msk [vmem:[#allocation2 + $0x8] sm:$0xff] %vm229_vm2, %v1512_v1 }
 0x8e5   :  { %1582 = vrot.lane.b32.xlu1 %v1512_v1, %s7235_s13  ;;  %1596 = vrot.lane.b32.xlu0 %v1509_v25, %s7237_s17 }
 0x8e8   :  { %v1646_v37 = vld [vmem:[#allocation2] sm:$0xff] }
 0x8e9   :  { %1613 = vrot.lane.b32.xlu1 %v7763_v6, %s7235_s13  ;;  %v1654_v38 = vpack.c.bf16 %v1646_v37, %v1646_v37 }
 0x8ea   :  { %v1647_v40 = vld [vmem:[#allocation2 + $0x8] sm:$0xff] }
 0x8eb   :  { %6415 = vmatmul.mubr.msk.bf16.vlgmr.msra.gmra.mrb[44].mxu1 %vm229_vm2, %v1654_v38  ;;  %v1655_v41 = vpack.c.bf16 %v1647_v40, %v1647_v40 }
 0x8ec   :  { %6425 = vmatpush3.bf16.xpose.msra.mxu1 %v1790_v39  ;;  %6426 = vmatprep.mubr.msk.bf16.mxu1 %vm7232_vm1, %v7231_v17 }
 0x8ed   :  { %1590 = vrot.lane.b32.xlu1 %v1512_v1, %s7236_s15  ;;  %6421 = vmatmul.mubr.msk.bf16.vlgmr.msra.gmra.mrb[48].mxu0 %vm229_vm2, %v1655_v41 }
 0x8ee   :  { %6431 = vmatpush3.bf16.xpose.msra.mxu0 %v1836_v42  ;;  %6436 = vmatprep.subr.bf16.mxu1 %v7231_v17 }
 0x8ef   :  { %6432 = vmatprep.mubr.msk.bf16.mxu0 %vm7232_vm1, %v7231_v17  ;;  %6442 = vmatprep.subr.bf16.mxu0 %v7231_v17 }
 0x8f1   :  { %1598 = vrot.lane.b32.xlu1 %v1512_v1, %s7237_s17 }
 0x953   :  { %v1581_v44 = vpop.permute.xlu1 %1580  ;;  %v1589_v45 = vpop.permute.xlu0 %1588 }
 0x954   :  { %1586 = vst.msk [vmem:[#allocation2 + $0x10] sm:$0xff] %vm229_vm2, %v1581_v44  ;;  %1594 = vst.msk [vmem:[#allocation2 + $0x20] sm:$0xff] %vm229_vm2, %v1589_v45 }
 0x957   :  { %v1583_v50 = vpop.permute.xlu1 %1582  ;;  %v1597_v52 = vpop.permute.xlu0 %1596 }
 0x958   :  { %1587 = vst.msk [vmem:[#allocation2 + $0x18] sm:$0xff] %vm229_vm2, %v1583_v50  ;;  %1602 = vst.msk [vmem:[#allocation2 + $0x30] sm:$0xff] %vm229_vm2, %v1597_v52  ;;  %v104_v50 = vld [vmem:[#allocation12 + $0x10] sm:$0xff] }
 0x95b   :  { %v1614_v48 = vpop.permute.xlu1 %1613  ;;  %v1648_v58 = vld [vmem:[#allocation2 + $0x10] sm:$0xff]  ;;  %v1650_v60 = vld [vmem:[#allocation2 + $0x20] sm:$0xff] }
 0x95c   :  { %1619 = vst.msk [vmem:[#allocation5 + $0x28] sm:$0xff] %vm229_vm2, %v1614_v48  ;;  %1622 = vst.msk [vmem:[#allocation5 + $0x38] sm:$0xff] %vm229_vm2, %v1614_v48  ;;  %v1656_v51 = vpack.c.bf16 %v1648_v58, %v1648_v58  ;;  %v1658_v4 = vpack.c.bf16 %v1650_v60, %v1650_v60 }
 0x95e   :  { %6427 = vmatmul.mubr.msk.bf16.vlgmr.msra.gmra.mrb[48].mxu1 %vm229_vm2, %v1656_v51 }
 0x95f   :  { %6437 = vmatpush3.bf16.xpose.msra.mxu1 %v1882_v62  ;;  %v1591_v0 = vpop.permute.xlu1 %1590  ;;  %v1649_v2 = vld [vmem:[#allocation2 + $0x18] sm:$0xff]  ;;  %6438 = vmatprep.mubr.msk.bf16.mxu1 %vm7232_vm1, %v7231_v17  ;;  %v1652_v10 = vld [vmem:[#allocation2 + $0x30] sm:$0xff] }
 0x960   :  { %1595 = vst.msk [vmem:[#allocation2 + $0x28] sm:$0xff] %vm229_vm2, %v1591_v0  ;;  %v1657_v56 = vpack.c.bf16 %v1649_v2, %v1649_v2  ;;  %6448 = vmatprep.subr.bf16.mxu1 %v7231_v17  ;;  %v1660_v21 = vpack.c.bf16 %v1652_v10, %v1652_v10 }
 0x962   :  { %6433 = vmatmul.mubr.msk.bf16.vlgmr.msra.gmra.mrb[52].mxu0 %vm229_vm2, %v1657_v56 }
 0x963   :  { %v1599_v46 = vpop.permute.xlu1 %1598  ;;  %v1667_v14 = vld [vmem:[#allocation5 + $0x28] sm:$0xff]  ;;  %6444 = vmatprep.mubr.msk.bf16.mxu0 %vm7232_vm1, %v7231_v17  ;;  %v1669_v8 = vld [vmem:[#allocation5 + $0x38] sm:$0xff] }
 0x964   :  { %1603 = vst.msk [vmem:[#allocation2 + $0x38] sm:$0xff] %vm229_vm2, %v1599_v46  ;;  %v1675_v7 = vpack.c.bf16 %v1667_v14, %v1667_v14  ;;  %v1677_v19 = vpack.c.bf16 %v1669_v8, %v1669_v8 }
 0x966   :  { %6439 = vmatmul.mubr.msk.bf16.vlgmr.msra.gmra.mrb[52].mxu1 %vm229_vm2, %v1658_v4  ;;  %v1928_v15 = vsel %vm229_vm2, %v1675_v7, 0  ;;  %v2020_v22 = vsel %vm229_vm2, %v1677_v19, 0  ;;  %v106_v4 = vld [vmem:[#allocation12 + $0x20] sm:$0xff] }
 0x967   :  { %6449 = vmatpush3.bf16.xpose.msra.mxu1 %v1974_v5  ;;  %6443 = vmatpush3.bf16.xpose.msra.mxu0 %v1928_v15  ;;  %v1651_v9 = vld [vmem:[#allocation2 + $0x28] sm:$0xff] }
 0x968   :  { %6450 = vmatprep.mubr.msk.bf16.mxu1 %vm7232_vm1, %v7231_v17  ;;  %6454 = vmatprep.subr.bf16.mxu0 %v7231_v17  ;;  %v1659_v12 = vpack.c.bf16 %v1651_v9, %v1651_v9 }
 0x969   :  { %6460 = vmatprep.subr.bf16.mxu1 %v7231_v17 }
 0x96b   :  { %v1653_v23 = vld [vmem:[#allocation2 + $0x38] sm:$0xff] }
 0x96c   :  { %v1661_v25 = vpack.c.bf16 %v1653_v23, %v1653_v23  ;;  %v107_v23 = vld [vmem:[#allocation12 + $0x28] sm:$0xff] }
 0x96e   :  { %6445 = vmatmul.mubr.msk.bf16.vlgmr.msra.gmra.mrb[56].mxu0 %vm229_vm2, %v1659_v12  ;;  %6451 = vmatmul.mubr.msk.bf16.vlgmr.msra.gmra.mrb[56].mxu1 %vm229_vm2, %v1660_v21 }
 0x96f   :  { %6455 = vmatpush3.bf16.xpose.msra.mxu0 %v2020_v22  ;;  %6456 = vmatprep.mubr.msk.bf16.mxu0 %vm7232_vm1, %v7231_v17  ;;  %v108_v22 = vld [vmem:[#allocation12 + $0x30] sm:$0xff] }
 0x970   :  { %6466 = vmatprep.subr.bf16.mxu0 %v7231_v17  ;;  %6462 = vmatprep.mubr.msk.bf16.mxu1 %vm7232_vm1, %v7231_v17 }
 0x976   :  { %6457 = vmatmul.mubr.msk.bf16.vlgmr.msra.gmra.mrb[60].mxu0 %vm229_vm2, %v1661_v25 }
 0x977   :  { %6468 = vmatprep.mubr.msk.bf16.mxu0 %vm7232_vm1, %v7231_v17 }
 0x9be   :  { %v1734_v61 = vpop.f32.mrb[44].mxu1 }
 0x9bf   :  { %v2062_v1 = vmul.f32 0.35355338, %v1734_v61  ;;  %v6416_v27 = vpop.f32.mrb[45].mxu1 }
 0x9c0   :  { %v1737_v13 = vpop.f32.mrb[46].mxu1  ;;  %v1780_v31 = vpop.f32.mrb[48].mxu0 }
 0x9c1   :  { %v2063_v35 = vmul.f32 0.35355338, %v1780_v31  ;;  %v6417_v37 = vpop.f32.mrb[47].mxu1  ;;  %v6422_v38 = vpop.f32.mrb[49].mxu0  ;;  %v7833_v39 = vadd.f32 %v2062_v1, %v102_v26 }
 0x9c2   :  { %v1783_v40 = vpop.f32.mrb[50].mxu0 }
 0x9c3   :  { %v6423_v41 = vpop.f32.mrb[51].mxu0  ;;  %v2078_v42 = vsel %vm229_vm2, %v7833_v39, -inf  ;;  %v7837_v44 = vadd.f32 %v2063_v35, %v103_v32 }
 0x9c4   :  { %2079 = vmax.xlane.f32.xlu0 %v2078_v42  ;;  %v109_v42 = vld [vmem:[#allocation12 + $0x38] sm:$0xff] }
 0x9c5   :  { %v2081_v45 = vsel %vm229_vm2, %v7837_v44, -inf }
 0x9c6   :  { %2082 = vmax.xlane.f32.xlu1 %v2081_v45 }
 0xa31   :  { %v1826_v47 = vpop.f32.mrb[48].mxu1 }
 0xa32   :  { %v2064_v52 = vmul.f32 0.35355338, %v1826_v47  ;;  %v6428_v55 = vpop.f32.mrb[49].mxu1 }
 0xa33   :  { %v1829_v48 = vpop.f32.mrb[50].mxu1 }
 0xa34   :  { %v6429_v58 = vpop.f32.mrb[51].mxu1  ;;  %v7841_v51 = vadd.f32 %v2064_v52, %v104_v50 }
 0xa35   :  { %v1872_v62 = vpop.f32.mrb[52].mxu0 }
 0xa36   :  { %v2065_v0 = vmul.f32 0.35355338, %v1872_v62  ;;  %v6434_v2 = vpop.f32.mrb[53].mxu0  ;;  %v2084_v56 = vsel %vm229_vm2, %v7841_v51, -inf }
 0xa37   :  { %2085 = vmax.xlane.f32.xlu0 %v2084_v56  ;;  %v1875_v3 = vpop.f32.mrb[54].mxu0 }
 0xa38   :  { %v6435_v60 = vpop.f32.mrb[55].mxu0  ;;  %v2073_v46 = vadd.f32 %v2065_v0, %v105_v63 }
 0xa39   :  { %v1918_v14 = vpop.f32.mrb[52].mxu1 }
 0xa3a   :  { %v2066_v5 = vmul.f32 0.35355338, %v1918_v14  ;;  %v6440_v7 = vpop.f32.mrb[53].mxu1  ;;  %v2087_v15 = vsel %vm229_vm2, %v2073_v46, -inf }
 0xa3b   :  { %v1921_v8 = vpop.f32.mrb[54].mxu1  ;;  %2088 = vmax.xlane.f32.xlu0 %v2087_v15 }
 0xa3c   :  { %v6441_v9 = vpop.f32.mrb[55].mxu1  ;;  %v2074_v10 = vadd.f32 %v2066_v5, %v106_v4 }
 0xa3e   :  { %v2090_v19 = vsel %vm229_vm2, %v2074_v10, -inf }
 0xa3f   :  { %2091 = vmax.xlane.f32.xlu0 %v2090_v19 }
 0xa41   :  { %v1964_v12 = vpop.f32.mrb[56].mxu0  ;;  %v2010_v21 = vpop.f32.mrb[56].mxu1 }
 0xa42   :  { %v2067_v25 = vmul.f32 0.35355338, %v1964_v12  ;;  %v2068_v61 = vmul.f32 0.35355338, %v2010_v21  ;;  %v6446_v26 = vpop.f32.mrb[57].mxu0  ;;  %v6452_v1 = vpop.f32.mrb[57].mxu1 }
 0xa43   :  { %v1967_v27 = vpop.f32.mrb[58].mxu0  ;;  %v2013_v13 = vpop.f32.mrb[58].mxu1 }
 0xa44   :  { %v6447_v31 = vpop.f32.mrb[59].mxu0  ;;  %v6453_v32 = vpop.f32.mrb[59].mxu1  ;;  %v2076_v35 = vadd.f32 %v2068_v61, %v108_v22  ;;  %v2075_v37 = vadd.f32 %v2067_v25, %v107_v23 }
 0xa46   :  { %v2096_v38 = vsel %vm229_vm2, %v2076_v35, -inf  ;;  %v2093_v40 = vsel %vm229_vm2, %v2075_v37, -inf }
 0xa47   :  { %2097 = vmax.xlane.f32.xlu0 %v2096_v38  ;;  %2094 = vmax.xlane.f32.xlu1 %v2093_v40 }
 0xa49   :  { %v2056_v41 = vpop.f32.mrb[60].mxu0 }
 0xa4a   :  { %v2069_v45 = vmul.f32 0.35355338, %v2056_v41  ;;  %v6458_v47 = vpop.f32.mrb[61].mxu0 }
 0xa4b   :  { %v2059_v50 = vpop.f32.mrb[62].mxu0 }
 0xa4c   :  { %v6459_v52 = vpop.f32.mrb[63].mxu0  ;;  %v2077_v55 = vadd.f32 %v2069_v45, %v109_v42 }
 0xa4e   :  { %v2099_v48 = vsel %vm229_vm2, %v2077_v55, -inf }
 0xa4f   :  { %2100 = vmax.xlane.f32.xlu1 %v2099_v48 }
 0xa51   :  { %v2080_v58 = vpop.xlane.xlu0 %2079 }
 0xa52   :  { %v2102_v62 = vsub.f32 %v7833_v39, %v2080_v58 }
 0xa53   :  { %v2083_v0 = vpop.xlane.xlu1 %2082 }
 0xa54   :  { %v2110_v63 = vmul.f32 1.442695, %v2102_v62  ;;  %v2103_v2 = vsub.f32 %v7837_v44, %v2083_v0  ;;  %v5965_v0 = vcombine.low %v7700_v20, %v7700_v20 }
 0xa56   :  { %6922 = vpow2.f32 %v2110_v63  ;;  %v2112_v56 = vmul.f32 1.442695, %v2103_v2 }
 0xa58   :  { %6924 = vpow2.f32 %v2112_v56 }
 0xa5d   :  { %1623 = vrot.lane.b32.xlu0 %v7757_v16, %s7236_s15 }
 0xa60   :  { %1625 = vrot.lane.b32.xlu1 %v7763_v6, %s7236_s15  ;;  %v7856_v3 = vpop.eup %6922 }
 0xa61   :  { %v2126_v60 = vsel %vm229_vm2, %v7856_v3, 0.0 }
 0xa62   :  { %v7860_v14 = vpop.eup %6924 }
 0xa63   :  { %v2129_v4 = vsel %vm229_vm2, %v7860_v14, 0.0 }
 0xa7c   :  { %2127 = vadd.xlane.f32.xlu0 %v2126_v60 }
 0xa84   :  { %2130 = vadd.xlane.f32.xlu1 %v2129_v4 }
 0xac4   :  { %v2086_v39 = vpop.xlane.xlu0 %2085 }
 0xac5   :  { %v2104_v5 = vsub.f32 %v7841_v51, %v2086_v39 }
 0xac7   :  { %v2114_v7 = vmul.f32 1.442695, %v2104_v5 }
 0xac8   :  { %v2089_v15 = vpop.xlane.xlu0 %2088 }
 0xac9   :  { %6926 = vpow2.f32 %v2114_v7  ;;  %v2105_v44 = vsub.f32 %v2073_v46, %v2089_v15 }
 0xacb   :  { %v2116_v8 = vmul.f32 1.442695, %v2105_v44 }
 0xacc   :  { %v2092_v9 = vpop.xlane.xlu0 %2091 }
 0xacd   :  { %6928 = vpow2.f32 %v2116_v8  ;;  %v2106_v19 = vsub.f32 %v2074_v10, %v2092_v9 }
 0xacf   :  { %v2118_v12 = vmul.f32 1.442695, %v2106_v19 }
 0xad1   :  { %6930 = vpow2.f32 %v2118_v12 }
 0xad3   :  { %v7865_v21 = vpop.eup %6926 }
 0xad4   :  { %v2098_v22 = vpop.xlane.xlu0 %2097  ;;  %v2095_v23 = vpop.xlane.xlu1 %2094  ;;  %v2132_v25 = vsel %vm229_vm2, %v7865_v21, 0.0 }
 0xad5   :  { %v2108_v61 = vsub.f32 %v2076_v35, %v2098_v22  ;;  %v2107_v26 = vsub.f32 %v2075_v37, %v2095_v23  ;;  %2133 = vadd.xlane.f32.xlu0 %v2132_v25  ;;  %v5971_v25 = vcombine.low %v7720_v36, %v7720_v36 }
 0xad7   :  { %v7869_v51 = vpop.eup %6928  ;;  %v2120_v1 = vmul.f32 1.442695, %v2107_v26  ;;  %v2122_v46 = vmul.f32 1.442695, %v2108_v61 }
 0xad8   :  { %v1624_v27 = vpop.permute.xlu0 %1623  ;;  %v2135_v10 = vsel %vm229_vm2, %v7869_v51, 0.0 }
 0xad9   :  { %1629 = vst.msk [vmem:[#allocation6] sm:$0xff] %vm229_vm2, %v1624_v27  ;;  %1632 = vst.msk [vmem:[#allocation6 + $0x10] sm:$0xff] %vm229_vm2, %v1624_v27  ;;  %2136 = vadd.xlane.f32.xlu1 %v2135_v10  ;;  %6932 = vpow2.f32 %v2120_v1 }
 0xada   :  { %6934 = vpow2.f32 %v2122_v46 }
 0xadb   :  { %v7875_v13 = vpop.eup %6930 }
 0xadc   :  { %v2101_v31 = vpop.xlane.xlu1 %2100  ;;  %v2138_v32 = vsel %vm229_vm2, %v7875_v13, 0.0 }
 0xadd   :  { %v2109_v35 = vsub.f32 %v2077_v55, %v2101_v31  ;;  %2139 = vadd.xlane.f32.xlu1 %v2138_v32 }
 0xadf   :  { %v2124_v37 = vmul.f32 1.442695, %v2109_v35 }
 0xae0   :  { %v1626_v38 = vpop.permute.xlu1 %1625  ;;  %v1678_v40 = vld [vmem:[#allocation6] sm:$0xff]  ;;  %v1680_v60 = vld [vmem:[#allocation6 + $0x10] sm:$0xff] }
 0xae1   :  { %6936 = vpow2.f32 %v2124_v37  ;;  %1630 = vst.msk [vmem:[#allocation6 + $0x8] sm:$0xff] %vm229_vm2, %v1626_v38  ;;  %1633 = vst.msk [vmem:[#allocation6 + $0x18] sm:$0xff] %vm229_vm2, %v1626_v38  ;;  %v1686_v41 = vpack.c.bf16 %v1678_v40, %v1678_v40  ;;  %v1688_v5 = vpack.c.bf16 %v1680_v60, %v1680_v60 }
 0xae3   :  { %v2178_v42 = vsel %vm838_vm3, %v1686_v41, 0  ;;  %v7882_v45 = vpop.eup %6932 }
 0xae4   :  { %6461 = vmatpush3.bf16.msra.mxu1 %v2178_v42  ;;  %v2141_v47 = vsel %vm229_vm2, %v7882_v45, 0.0  ;;  %v7887_v50 = vpop.eup %6934 }
 0xae5   :  { %6472 = vmatprep.subr.bf16.mxu1 %v7231_v17  ;;  %2142 = vadd.xlane.f32.xlu0 %v2141_v47  ;;  %v2144_v55 = vsel %vm229_vm2, %v7887_v50, 0.0 }
 0xae8   :  { %v1679_v52 = vld [vmem:[#allocation6 + $0x8] sm:$0xff]  ;;  %v1681_v7 = vld [vmem:[#allocation6 + $0x18] sm:$0xff] }
 0xae9   :  { %v1687_v48 = vpack.c.bf16 %v1679_v52, %v1679_v52  ;;  %2145 = vadd.xlane.f32.xlu0 %v2144_v55 }
 0xaeb   :  { %v7891_v58 = vpop.eup %6936  ;;  %v2224_v62 = vsel %vm838_vm3, %v1687_v48, 0 }
 0xaec   :  { %6467 = vmatpush3.bf16.msra.mxu0 %v2224_v62  ;;  %v2147_v63 = vsel %vm229_vm2, %v7891_v58, 0.0 }
 0xaed   :  { %2148 = vadd.xlane.f32.xlu1 %v2147_v63  ;;  %6478 = vmatprep.subr.bf16.mxu0 %v7231_v17 }
 0xafe   :  { %1636 = vrot.lane.b32.xlu1 %v7763_v6, %s7237_s17  ;;  %v5967_v6 = vcombine.low %v7705_v24, %v7705_v24  ;;  %v1689_v24 = vpack.c.bf16 %v1681_v7, %v1681_v7 }
 0xaff   :  { %1634 = vrot.lane.b32.xlu0 %v7757_v16, %s7237_s17  ;;  %v2270_v16 = vsel %vm838_vm3, %v1688_v5, 0 }
 0xb00   :  { %v2316_v8 = vsel %vm838_vm3, %v1689_v24, 0 }
 0xb02   :  { %2552 = vrot.lane.b32.xlu1 %v5965_v0, %s7233_s16 }
 0xb06   :  { %2609 = vrot.lane.b32.xlu1 %v5967_v6, %s7233_s16 }
 0xb09   :  { %v2128_v2 = vpop.xlane.xlu0 %2127 }
 0xb0a   :  { %6938 = vrcp.f32 %v2128_v2  ;;  %2715 = vrot.lane.b32.xlu1 %v5971_v25, %s7233_s16 }
 0xb11   :  { %v2131_v56 = vpop.xlane.xlu1 %2130 }
 0xb12   :  { %6940 = vrcp.f32 %v2131_v56 }
 0xb14   :  { %v6939_v4 = vpop.eup %6938 }
 0xb15   :  { %v2151_v39 = vmul.f32 %v6939_v4, %v7856_v3 }
 0xb17   :  { %2542 = vst.msk [vmem:[#allocation16] sm:$0xff] %vm229_vm2, %v2151_v39  ;;  %v2166_v20 = vpack.c.bf16 %v2151_v39, %v2151_v39 }
 0xb19   :  { %6463 = vmatmul.mubr.msk.bf16.vlgmr.msra.gmra.mrb[60].mxu1 %vm229_vm2, %v2166_v20 }
 0xb1a   :  { %6473 = vmatpush3.bf16.msra.mxu1 %v2270_v16  ;;  %6474 = vmatprep.mubr.msk.bf16.mxu1 %vm7232_vm1, %v7231_v17 }
 0xb1b   :  { %6484 = vmatprep.subr.bf16.mxu1 %v7231_v17 }
 0xb1c   :  { %v6941_v3 = vpop.eup %6940 }
 0xb1d   :  { %v2153_v15 = vmul.f32 %v6941_v3, %v7860_v14  ;;  %v5969_v14 = vcombine.low %v7715_v33, %v7715_v33 }
 0xb1f   :  { %2543 = vst.msk [vmem:[#allocation16 + $0x8] sm:$0xff] %vm229_vm2, %v2153_v15  ;;  %v2167_v44 = vpack.c.bf16 %v2153_v15, %v2153_v15  ;;  %2662 = vrot.lane.b32.xlu0 %v5969_v14, %s7233_s16 }
 0xb21   :  { %6469 = vmatmul.mubr.msk.bf16.vlgmr.msra.gmra.mrb[64].mxu0 %vm229_vm2, %v2167_v44 }
 0xb22   :  { %6479 = vmatpush3.bf16.msra.mxu0 %v2316_v8  ;;  %6480 = vmatprep.mubr.msk.bf16.mxu0 %vm7232_vm1, %v7231_v17 }
 0xb23   :  { %6490 = vmatprep.subr.bf16.mxu0 %v7231_v17 }
 0xb62   :  { %v2134_v9 = vpop.xlane.xlu0 %2133 }
 0xb63   :  { %6942 = vrcp.f32 %v2134_v9 }
 0xb66   :  { %v2137_v19 = vpop.xlane.xlu1 %2136 }
 0xb67   :  { %6944 = vrcp.f32 %v2137_v19 }
 0xb6a   :  { %v2140_v12 = vpop.xlane.xlu1 %2139 }
 0xb6b   :  { %6946 = vrcp.f32 %v2140_v12 }
 0xb6d   :  { %v6943_v22 = vpop.eup %6942 }
 0xb6e   :  { %v2155_v23 = vmul.f32 %v6943_v22, %v7865_v21 }
 0xb70   :  { %2544 = vst.msk [vmem:[#allocation16 + $0x10] sm:$0xff] %vm229_vm2, %v2155_v23  ;;  %v2168_v61 = vpack.c.bf16 %v2155_v23, %v2155_v23 }
 0xb71   :  { %v6945_v26 = vpop.eup %6944 }
 0xb72   :  { %v2157_v1 = vmul.f32 %v6945_v26, %v7869_v51  ;;  %6475 = vmatmul.mubr.msk.bf16.vlgmr.msra.gmra.mrb[64].mxu1 %vm229_vm2, %v2168_v61  ;;  %v2143_v46 = vpop.xlane.xlu0 %2142 }
 0xb73   :  { %6486 = vmatprep.mubr.msk.bf16.mxu1 %vm7232_vm1, %v7231_v17  ;;  %6948 = vrcp.f32 %v2143_v46 }
 0xb74   :  { %2545 = vst.msk [vmem:[#allocation16 + $0x18] sm:$0xff] %vm229_vm2, %v2157_v1  ;;  %v2169_v33 = vpack.c.bf16 %v2157_v1, %v2157_v1 }
 0xb75   :  { %v6947_v21 = vpop.eup %6946 }
 0xb76   :  { %v2159_v36 = vmul.f32 %v6947_v21, %v7875_v13  ;;  %6481 = vmatmul.mubr.msk.bf16.vlgmr.msra.gmra.mrb[68].mxu0 %vm229_vm2, %v2169_v33  ;;  %v2146_v27 = vpop.xlane.xlu0 %2145 }
 0xb77   :  { %6492 = vmatprep.mubr.msk.bf16.mxu0 %vm7232_vm1, %v7231_v17  ;;  %6950 = vrcp.f32 %v2146_v27 }
 0xb78   :  { %2546 = vst.msk [vmem:[#allocation16 + $0x20] sm:$0xff] %vm229_vm2, %v2159_v36  ;;  %v2170_v63 = vpack.c.bf16 %v2159_v36, %v2159_v36 }
 0xb7a   :  { %v2149_v51 = vpop.xlane.xlu1 %2148  ;;  %v1635_v10 = vpop.permute.xlu0 %1634 }
 0xb7b   :  { %6952 = vrcp.f32 %v2149_v51  ;;  %1641 = vst.msk [vmem:[#allocation6 + $0x20] sm:$0xff] %vm229_vm2, %v1635_v10  ;;  %1644 = vst.msk [vmem:[#allocation6 + $0x30] sm:$0xff] %vm229_vm2, %v1635_v10 }
 0xb7d   :  { %v6949_v31 = vpop.eup %6948 }
 0xb7e   :  { %v1637_v32 = vpop.permute.xlu1 %1636  ;;  %v2161_v13 = vmul.f32 %v6949_v31, %v7882_v45 }
 0xb7f   :  { %1642 = vst.msk [vmem:[#allocation6 + $0x28] sm:$0xff] %vm229_vm2, %v1637_v32  ;;  %1645 = vst.msk [vmem:[#allocation6 + $0x38] sm:$0xff] %vm229_vm2, %v1637_v32  ;;  %v7057_v32 = vld [vmem:[%s8773_s5] sm:$0xff] }
 0xb80   :  { %2547 = vst.msk [vmem:[#allocation16 + $0x28] sm:$0xff] %vm229_vm2, %v2161_v13  ;;  %v2171_v2 = vpack.c.bf16 %v2161_v13, %v2161_v13  ;;  %v7058_v13 = vld [vmem:[%s8773_s5 + $0xc] sm:$0xff] }
 0xb81   :  { %v6951_v35 = vpop.eup %6950 }
 0xb82   :  { %v2163_v37 = vmul.f32 %v6951_v35, %v7887_v50  ;;  %v1682_v38 = vld [vmem:[#allocation6 + $0x20] sm:$0xff]  ;;  %v1684_v40 = vld [vmem:[#allocation6 + $0x30] sm:$0xff]  ;;  %v2553_v60 = vpop.permute.xlu1 %2552  ;;  %v5973_v35 = vcombine.low %v7057_v32, %v7058_v13 }
 0xb83   :  { %v1690_v41 = vpack.c.bf16 %v1682_v38, %v1682_v38  ;;  %v1692_v55 = vpack.c.bf16 %v1684_v40, %v1684_v40  ;;  %v2558_v39 = vsel %vm838_vm3, %v2553_v60, 0 }
 0xb84   :  { %2548 = vst.msk [vmem:[#allocation16 + $0x30] sm:$0xff] %vm229_vm2, %v2163_v37  ;;  %v2172_v4 = vpack.c.bf16 %v2163_v37, %v2163_v37 }
 0xb85   :  { %v6953_v42 = vpop.eup %6952  ;;  %v2362_v52 = vsel %vm838_vm3, %v1690_v41, 0 }
 0xb86   :  { %v2165_v47 = vmul.f32 %v6953_v42, %v7891_v58  ;;  %v1683_v45 = vld [vmem:[#allocation6 + $0x28] sm:$0xff]  ;;  %v1685_v48 = vld [vmem:[#allocation6 + $0x38] sm:$0xff]  ;;  %6485 = vmatpush3.bf16.msra.mxu1 %v2362_v52  ;;  %v2454_v58 = vsel %vm838_vm3, %v1692_v55, 0  ;;  %v2610_v6 = vpop.permute.xlu1 %2609 }
 0xb87   :  { %v1691_v62 = vpack.c.bf16 %v1683_v45, %v1683_v45  ;;  %6496 = vmatprep.subr.bf16.mxu1 %v7231_v17  ;;  %v1693_v0 = vpack.c.bf16 %v1685_v48, %v1685_v48  ;;  %v2615_v20 = vsel %vm838_vm3, %v2610_v6, 0 }
 0xb88   :  { %2549 = vst.msk [vmem:[#allocation16 + $0x38] sm:$0xff] %vm229_vm2, %v2165_v47  ;;  %v2173_v5 = vpack.c.bf16 %v2165_v47, %v2165_v47 }
 0xb89   :  { %v2408_v50 = vsel %vm838_vm3, %v1691_v62, 0  ;;  %6487 = vmatmul.mubr.msk.bf16.vlgmr.msra.gmra.mrb[68].mxu1 %vm229_vm2, %v2170_v63  ;;  %v2500_v56 = vsel %vm838_vm3, %v1693_v0, 0 }
 0xb8a   :  { %6491 = vmatpush3.bf16.msra.mxu0 %v2408_v50  ;;  %6497 = vmatpush3.bf16.msra.mxu1 %v2454_v58  ;;  %v2716_v61 = vpop.permute.xlu1 %2715 }
 0xb8b   :  { %6502 = vmatprep.subr.bf16.mxu0 %v7231_v17  ;;  %6498 = vmatprep.mubr.msk.bf16.mxu1 %vm7232_vm1, %v7231_v17  ;;  %v2721_v21 = vsel %vm838_vm3, %v2716_v61, 0 }
 0xb8c   :  { %6508 = vmatprep.subr.bf16.mxu1 %v7231_v17 }
 0xb8d   :  { %6493 = vmatmul.mubr.msk.bf16.vlgmr.msra.gmra.mrb[72].mxu0 %vm229_vm2, %v2171_v2 }
 0xb8e   :  { %6503 = vmatpush3.bf16.msra.mxu0 %v2500_v56  ;;  %6504 = vmatprep.mubr.msk.bf16.mxu0 %vm7232_vm1, %v7231_v17 }
 0xb8f   :  { %6514 = vmatprep.subr.bf16.mxu0 %v7231_v17 }
 0xb91   :  { %6499 = vmatmul.mubr.msk.bf16.vlgmr.msra.gmra.mrb[72].mxu1 %vm229_vm2, %v2172_v4  ;;  %v2663_v24 = vpop.permute.xlu0 %2662 }
 0xb92   :  { %6509 = vmatpush3.bf16.msra.mxu1 %v2558_v39  ;;  %6510 = vmatprep.mubr.msk.bf16.mxu1 %vm7232_vm1, %v7231_v17  ;;  %v2668_v19 = vsel %vm838_vm3, %v2663_v24, 0  ;;  %v2604_v39 = vrot.slane %v7753_v49, %v7733_v53 }
 0xb93   :  { %6520 = vmatprep.subr.bf16.mxu1 %v7231_v17 }
 0xb95   :  { %6505 = vmatmul.mubr.msk.bf16.vlgmr.msra.gmra.mrb[76].mxu0 %vm229_vm2, %v2173_v5 }
 0xb96   :  { %6516 = vmatprep.mubr.msk.bf16.mxu0 %vm7232_vm1, %v7231_v17  ;;  %6515 = vmatpush3.bf16.msra.mxu0 %v2615_v20 }
 0xb97   :  { %6526 = vmatprep.subr.bf16.mxu0 %v7231_v17 }
 0xbec   :  { %v2214_v16 = vpop.f32.mrb[60].mxu1 }
 0xbed   :  { %v6464_v7 = vpop.f32.mrb[61].mxu1 }
 0xbee   :  { %v2217_v3 = vpop.f32.mrb[62].mxu1 }
 0xbef   :  { %v6465_v15 = vpop.f32.mrb[63].mxu1 }
 0xbf4   :  { %v2260_v44 = vpop.f32.mrb[64].mxu0 }
 0xbf5   :  { %v2550_v8 = vpack.c.bf16 %v2260_v44, %v2214_v16  ;;  %v6470_v9 = vpop.f32.mrb[65].mxu0 }
 0xbf6   :  { %v2263_v12 = vpop.f32.mrb[66].mxu0 }
 0xbf7   :  { %v6471_v14 = vpop.f32.mrb[67].mxu0  ;;  %6511 = vmatmul.mubr.msk.bf16.vlgmr.msra.gmra.mrb[76].mxu1 %vm229_vm2, %v2550_v8 }
 0xbf8   :  { %6521 = vmatpush3.bf16.msra.mxu1 %v2668_v19  ;;  %6522 = vmatprep.mubr.msk.bf16.mxu1 %vm7232_vm1, %v7231_v17 }
 0xbf9   :  { %6532 = vmatprep.subr.bf16.mxu1 %v7231_v17 }
 0xc45   :  { %v2306_v22 = vpop.f32.mrb[64].mxu1 }
 0xc46   :  { %v6476_v23 = vpop.f32.mrb[65].mxu1 }
 0xc47   :  { %v2309_v25 = vpop.f32.mrb[66].mxu1 }
 0xc48   :  { %v6477_v26 = vpop.f32.mrb[67].mxu1 }
 0xc49   :  { %v2352_v1 = vpop.f32.mrb[68].mxu0 }
 0xc4a   :  { %v2607_v46 = vpack.c.bf16 %v2352_v1, %v2306_v22  ;;  %v6482_v33 = vpop.f32.mrb[69].mxu0 }
 0xc4b   :  { %v2355_v36 = vpop.f32.mrb[70].mxu0 }
 0xc4c   :  { %v6483_v27 = vpop.f32.mrb[71].mxu0  ;;  %6517 = vmatmul.mubr.msk.bf16.vlgmr.msra.gmra.mrb[80].mxu0 %vm229_vm2, %v2607_v46 }
 0xc4d   :  { %6527 = vmatpush3.bf16.msra.mxu0 %v2721_v21  ;;  %6528 = vmatprep.mubr.msk.bf16.mxu0 %vm7232_vm1, %v7231_v17 }
 0xc4e   :  { %6540 = vmatprep.subr.bf16.mxu0 %v7231_v17 }
 0xc5c   :  { %v2398_v51 = vpop.f32.mrb[68].mxu1 }
 0xc5d   :  { %v6488_v10 = vpop.f32.mrb[69].mxu1 }
 0xc5e   :  { %v2401_v31 = vpop.f32.mrb[70].mxu1 }
 0xc5f   :  { %v6489_v37 = vpop.f32.mrb[71].mxu1 }
 0xc60   :  { %v2444_v38 = vpop.f32.mrb[72].mxu0  ;;  %v7059_v37 = vld [vmem:[%s8773_s5 + $0x18] sm:$0xff] }
 0xc61   :  { %v2660_v40 = vpack.c.bf16 %v2444_v38, %v2398_v51  ;;  %v6494_v41 = vpop.f32.mrb[73].mxu0  ;;  %v7060_v38 = vld [vmem:[%s8773_s5 + $0x24] sm:$0xff] }
 0xc62   :  { %v2447_v42 = vpop.f32.mrb[74].mxu0 }
 0xc63   :  { %v6495_v47 = vpop.f32.mrb[75].mxu0  ;;  %6523 = vmatmul.mubr.msk.bf16.vlgmr.msra.gmra.mrb[80].mxu1 %vm229_vm2, %v2660_v40  ;;  %v5974_v40 = vcombine.low %v7059_v37, %v7060_v38 }
 0xc64   :  { %6533 = vmatpush3.bf16.msra.mxu1 %v5973_v35  ;;  %6536 = vmatprep.mubr.msk.bf16.mxu1 %vm7232_vm1, %v7231_v17  ;;  %v2490_v52 = vpop.f32.mrb[72].mxu1 }
 0xc65   :  { %6534 = vmatprep.subr.bf16.mxu1 %v7231_v17  ;;  %v6500_v45 = vpop.f32.mrb[73].mxu1 }
 0xc66   :  { %v2493_v55 = vpop.f32.mrb[74].mxu1 }
 0xc67   :  { %v6501_v48 = vpop.f32.mrb[75].mxu1 }
 0xc68   :  { %v2536_v62 = vpop.f32.mrb[76].mxu0  ;;  %6535 = vmatpush3.bf16.msra.mxu1 %v5974_v40  ;;  %v2796_v48 = vsub.s32 4, %v7405_v28 }
 0xc69   :  { %v2713_v63 = vpack.c.bf16 %v2536_v62, %v2490_v52  ;;  %v6506_v50 = vpop.f32.mrb[77].mxu0  ;;  %6552 = vmatprep.subr.bf16.mxu1 %v7231_v17 }
 0xc6a   :  { %v2539_v0 = vpop.f32.mrb[78].mxu0 }
 0xc6b   :  { %v6507_v58 = vpop.f32.mrb[79].mxu0  ;;  %6529 = vmatmul.mubr.msk.bf16.vlgmr.msra.gmra.mrb[84].mxu0 %vm229_vm2, %v2713_v63  ;;  %v2797_v63 = vrot.slane %v7739_v57, %v2796_v48  ;;  %v2802_v0 = vsub.s32 5, %v7405_v28  ;;  %v6868_v57 = vld [vmem:[%s8774_s6] sm:$0xff]   ;;  %v6878_v28 = vld [vmem:[%s8774_s6 + $0x30] sm:$0xff]  }
 0xc6c   :  { %6548 = vmatprep.mubr.msk.bf16.mxu0 %vm7232_vm1, %v7231_v17  ;;  %6541 = vmatpush3.bf16.msra.mxu0 %v6868_v57  ;;  %v8102_v57 = vld [vmem:[%s8772_s4 + $0x10] sm:$0xff] }
 0xc6d   :  { %6542 = vmatprep.subr.bf16.mxu0 %v7231_v17 }
 0xcca   :  { %v2594_v2 = vpop.f32.mrb[76].mxu1 }
 0xccb   :  { %v6512_v56 = vpop.f32.mrb[77].mxu1  ;;  %v2605_v5 = vadd.f32 %v2604_v39, %v2594_v2 }
 0xccc   :  { %v2597_v60 = vpop.f32.mrb[78].mxu1 }
 0xccd   :  { %v6513_v4 = vpop.f32.mrb[79].mxu1  ;;  %v2606_v20 = vadd.f32 %v2604_v39, %v2597_v60  ;;  %v7061_v60 = vld [vmem:[%s8772_s4] sm:$0xff] }
 0xcce   :  { %v2803_v4 = vrot.slane %v7061_v60, %v2802_v0 }
 0xd1f   :  { %v2651_v6 = vpop.f32.mrb[80].mxu0 }
 0xd20   :  { %v2658_v16 = vadd.f32 %v2651_v6, %v2605_v5  ;;  %v6518_v7 = vpop.f32.mrb[81].mxu0 }
 0xd21   :  { %v2654_v3 = vpop.f32.mrb[82].mxu0  ;;  %v6870_v7 = vld [vmem:[%s8774_s6 + $0x10] sm:$0xff]  }
 0xd22   :  { %v2659_v15 = vadd.f32 %v2654_v3, %v2606_v20  ;;  %v6519_v24 = vpop.f32.mrb[83].mxu0  ;;  %v6871_v3 = vld [vmem:[%s8774_s6 + $0x18] sm:$0xff]  }
 0xd36   :  { %v2704_v44 = vpop.f32.mrb[80].mxu1 }
 0xd37   :  { %v2711_v8 = vadd.f32 %v2704_v44, %v2658_v16  ;;  %v6524_v9 = vpop.f32.mrb[81].mxu1  ;;  %v6869_v16 = vld [vmem:[%s8774_s6 + $0x8] sm:$0xff]  }
 0xd38   :  { %v2707_v19 = vpop.f32.mrb[82].mxu1  ;;  %6543 = vmatpush3.bf16.msra.mxu0 %v6869_v16  ;;  %v3005_v16 = vrot.slane %v8102_v57, %v7408_v29 }
 0xd39   :  { %v2712_v12 = vadd.f32 %v2707_v19, %v2659_v15  ;;  %v6525_v14 = vpop.f32.mrb[83].mxu1  ;;  %6544 = vmatprep.subr.bf16.mxu0 %v7231_v17 }
 0xd3c   :  { %6545 = vmatpush3.bf16.msra.mxu0 %v6870_v7 }
 0xd3d   :  { %6546 = vmatprep.subr.bf16.mxu0 %v7231_v17 }
 0xd3e   :  { %v2757_v22 = vpop.f32.mrb[84].mxu0 }
 0xd3f   :  { %v2764_v23 = vadd.f32 %v2757_v22, %v2711_v8  ;;  %v6530_v25 = vpop.f32.mrb[85].mxu0 }
 0xd40   :  { %v2760_v61 = vpop.f32.mrb[86].mxu0  ;;  %6547 = vmatpush3.bf16.msra.mxu0 %v6871_v3 }
 0xd41   :  { %v7999_v49 = vadd.f32 %v2764_v23, %v7683_v30  ;;  %v2765_v26 = vadd.f32 %v2760_v61, %v2712_v12  ;;  %v6531_v1 = vpop.f32.mrb[87].mxu0  ;;  %6566 = vmatprep.subr.bf16.mxu0 %v7231_v17 }
 0xd43   :  { %v8002_v46 = vadd.f32 %v2765_v26, %v7685_v11  ;;  %v2768_v33 = vsel %vm128_vm0, %v7999_v49, 0.0 }
 0xd44   :  { %2769 = vadd.xlane.f32.xlu0 %v2768_v33 }
 0xd45   :  { %v2771_v21 = vsel %vm128_vm0, %v8002_v46, 0.0 }
 0xd46   :  { %2772 = vadd.xlane.f32.xlu1 %v2771_v21 }
 0xdd1   :  { %v2770_v36 = vpop.xlane.xlu0 %2769 }
 0xdd2   :  { %v2774_v27 = vmul.f32 0.03125, %v2770_v36 }
 0xdd3   :  { %v2773_v51 = vpop.xlane.xlu1 %2772 }
 0xdd4   :  { %v2776_v10 = vsub.f32 %v7999_v49, %v2774_v27  ;;  %v2775_v30 = vmul.f32 0.03125, %v2773_v51 }
 0xdd6   :  { %v2777_v31 = vsub.f32 %v8002_v46, %v2775_v30  ;;  %v2778_v32 = vmul.f32 %v2776_v10, %v2776_v10 }
 0xdd8   :  { %v2780_v11 = vsel %vm128_vm0, %v2778_v32, 0.0  ;;  %v2779_v13 = vmul.f32 %v2777_v31, %v2777_v31 }
 0xdd9   :  { %2781 = vadd.xlane.f32.xlu0 %v2780_v11 }
 0xdda   :  { %v2783_v35 = vsel %vm128_vm0, %v2779_v13, 0.0 }
 0xddd   :  { %2784 = vadd.xlane.f32.xlu0 %v2783_v35 }
 0xe66   :  { %v2782_v41 = vpop.xlane.xlu0 %2781 }
 0xe67   :  { %v2786_v42 = vmul.f32 0.03125, %v2782_v41 }
 0xe69   :  { %v2788_v47 = vadd.f32 1e-05, %v2786_v42 }
 0xe6a   :  { %v2785_v52 = vpop.xlane.xlu0 %2784 }
 0xe6b   :  { %6954 = vrsqrt.f32 %v2788_v47  ;;  %v2787_v45 = vmul.f32 0.03125, %v2785_v52 }
 0xe6d   :  { %v2789_v55 = vadd.f32 1e-05, %v2787_v45 }
 0xe6f   :  { %6956 = vrsqrt.f32 %v2789_v55 }
 0xe75   :  { %v6955_v62 = vpop.eup %6954 }
 0xe76   :  { %v2792_v50 = vmul.f32 %v6955_v62, %v2776_v10  ;;  %v8070_v62 = vld [vmem:[%s8773_s5 + $0x30] sm:$0xff] }
 0xe78   :  { %v2798_v2 = vmul.f32 %v2797_v63, %v2792_v50 }
 0xe79   :  { %v6957_v58 = vpop.eup %6956 }
 0xe7a   :  { %v2793_v56 = vmul.f32 %v6957_v58, %v2777_v31  ;;  %v2804_v5 = vadd.f32 %v2803_v4, %v2798_v2  ;;  %v8085_v58 = vld [vmem:[%s8773_s5 + $0x48] sm:$0xff]  ;;  %v8090_v2 = vld [vmem:[%s8773_s5 + $0x54] sm:$0xff] }
 0xe7c   :  { %v2799_v39 = vmul.f32 %v2797_v63, %v2793_v56  ;;  %v8075_v63 = vld [vmem:[%s8773_s5 + $0x3c] sm:$0xff]  ;;  %v8095_v56 = vcombine.high %v8085_v58, %v8090_v2 }
 0xe7d   :  { %v8079_v50 = vcombine.high %v8070_v62, %v8075_v63 }
 0xe7e   :  { %v2805_v6 = vadd.f32 %v2803_v4, %v2799_v39 }
 0xe80   :  { %v2806_v20 = vpack.c.bf16 %v2805_v6, %v2804_v5 }
 0xe82   :  { %6537 = vmatmul.mubr.msk.bf16.vlgmr.msra.gmra.mrb[84].mxu1 %vm128_vm0, %v2806_v20 }
 0xe83   :  { %6556 = vmatprep.mubr.msk.bf16.mxu1 %vm7232_vm1, %v7231_v17  ;;  %6553 = vmatpush3.bf16.msra.mxu1 %v8079_v50 }
 0xe84   :  { %6554 = vmatprep.subr.bf16.mxu1 %v7231_v17 }
 0xe87   :  { %6555 = vmatpush3.bf16.msra.mxu1 %v8095_v56 }
 0xe88   :  { %6560 = vmatprep.subr.bf16.mxu1 %v7231_v17 }
 0xf55   :  { %v2852_v15 = vpop.f32.mrb[84].mxu1 }
 0xf56   :  { %2875 = vrot.lane.b32.xlu0 %v2852_v15, %s7240_s1  ;;  %v6538_v24 = vpop.f32.mrb[85].mxu1  ;;  %v5976_v9 = vmul.f32 -1.442695, %v2852_v15 }
 0xf57   :  { %v2855_v44 = vpop.f32.mrb[86].mxu1 }
 0xf58   :  { %2877 = vrot.lane.b32.xlu1 %v2855_v44, %s7240_s1  ;;  %v6539_v8 = vpop.f32.mrb[87].mxu1  ;;  %v5977_v19 = vmul.f32 -1.442695, %v2855_v44  ;;  %6958 = vpow2.f32 %v5976_v9 }
 0xf59   :  { %v3011_v8 = vrot.slane %v8102_v57, %v7418_v34 }
 0xf5a   :  { %6960 = vpow2.f32 %v5977_v19 }
 0xf62   :  { %v6959_v12 = vpop.eup %6958 }
 0xf63   :  { %v2865_v22 = vadd.f32 1.0, %v6959_v12 }
 0xf64   :  { %v6961_v14 = vpop.eup %6960 }
 0xf65   :  { %v2866_v23 = vadd.f32 1.0, %v6961_v14  ;;  %6962 = vrcp.f32 %v2865_v22  ;;  %v3018_v22 = vrot.slane %v8102_v57, %v171_v43 }
 0xf67   :  { %6964 = vrcp.f32 %v2866_v23 }
 0xf6f   :  { %v6963_v25 = vpop.eup %6962 }
 0xf70   :  { %v2871_v1 = vmul.f32 %v6963_v25, %v2852_v15 }
 0xf71   :  { %v6965_v61 = vpop.eup %6964 }
 0xf72   :  { %v2872_v33 = vmul.f32 %v6965_v61, %v2855_v44 }
 0xfc8   :  { %v2876_v26 = vpop.permute.xlu0 %2875 }
 0xfc9   :  { %v2881_v36 = vmul.f32 %v2876_v26, %v2871_v1 }
 0xfca   :  { %v2878_v21 = vpop.permute.xlu1 %2877 }
 0xfcb   :  { %v2882_v27 = vmul.f32 %v2878_v21, %v2872_v33 }
 0xfcd   :  { %v2883_v51 = vpack.c.bf16 %v2882_v27, %v2881_v36 }
 0xfcf   :  { %6549 = vmatmul.mubr.msk.bf16.vlgmr.msra.gmra.mrb[88].mxu0 %vm2908_vm4, %v2883_v51 }
 0xfd0   :  { %6568 = vmatprep.mubr.msk.bf16.mxu0 %vm7232_vm1, %v7231_v17 }
0x10a2   :  { %v2946_v10 = vpop.f32.mrb[88].mxu0 }
0x10a3   :  { %v8054_v30 = vadd.f32 %v2946_v10, %v7999_v49  ;;  %v6550_v31 = vpop.f32.mrb[89].mxu0 }
0x10a4   :  { %v2949_v32 = vpop.f32.mrb[90].mxu0 }
0x10a5   :  { %v8057_v11 = vadd.f32 %v2949_v32, %v8002_v46  ;;  %v6551_v13 = vpop.f32.mrb[91].mxu0  ;;  %v2976_v35 = vsel %vm128_vm0, %v8054_v30, 0.0 }
0x10a6   :  { %2977 = vadd.xlane.f32.xlu1 %v2976_v35 }
0x10a7   :  { %v2979_v37 = vsel %vm128_vm0, %v8057_v11, 0.0 }
0x10a8   :  { %2980 = vadd.xlane.f32.xlu0 %v2979_v37 }
0x1133   :  { %v2978_v38 = vpop.xlane.xlu1 %2977 }
0x1134   :  { %v2982_v40 = vmul.f32 0.03125, %v2978_v38 }
0x1135   :  { %v2981_v41 = vpop.xlane.xlu0 %2980 }
0x1136   :  { %v2984_v49 = vsub.f32 %v8054_v30, %v2982_v40  ;;  %v2983_v42 = vmul.f32 0.03125, %v2981_v41 }
0x1138   :  { %v2985_v47 = vsub.f32 %v8057_v11, %v2983_v42  ;;  %v2986_v52 = vmul.f32 %v2984_v49, %v2984_v49 }
0x113a   :  { %v2988_v46 = vsel %vm128_vm0, %v2986_v52, 0.0  ;;  %v2987_v45 = vmul.f32 %v2985_v47, %v2985_v47 }
0x113b   :  { %2989 = vadd.xlane.f32.xlu0 %v2988_v46 }
0x113c   :  { %v2991_v55 = vsel %vm128_vm0, %v2987_v45, 0.0 }
0x113d   :  { %2992 = vadd.xlane.f32.xlu1 %v2991_v55 }
0x11c8   :  { %v2990_v60 = vpop.xlane.xlu0 %2989 }
0x11c9   :  { %v2994_v4 = vmul.f32 0.03125, %v2990_v60 }
0x11ca   :  { %v2993_v39 = vpop.xlane.xlu1 %2992 }
0x11cb   :  { %v2996_v5 = vadd.f32 1e-05, %v2994_v4  ;;  %v2995_v6 = vmul.f32 0.03125, %v2993_v39 }
0x11cd   :  { %6966 = vrsqrt.f32 %v2996_v5  ;;  %v2997_v20 = vadd.f32 1e-05, %v2995_v6 }
0x11cf   :  { %6968 = vrsqrt.f32 %v2997_v20 }
0x11d7   :  { %v6967_v7 = vpop.eup %6966 }
0x11d8   :  { %v3000_v3 = vmul.f32 %v6967_v7, %v2984_v49 }
0x11d9   :  { %v6969_v15 = vpop.eup %6968 }
0x11da   :  { %v3006_v24 = vmul.f32 %v3005_v16, %v3000_v3  ;;  %v3001_v44 = vmul.f32 %v6969_v15, %v2985_v47 }
0x11dc   :  { %v3007_v9 = vmul.f32 %v3005_v16, %v3001_v44  ;;  %v3012_v19 = vadd.f32 %v3011_v8, %v3006_v24 }
0x11de   :  { %v3013_v12 = vadd.f32 %v3011_v8, %v3007_v9 }
0x11e0   :  { %v3014_v14 = vpack.c.bf16 %v3013_v12, %v3012_v19 }
0x11e2   :  { %6557 = vmatmul.mubr.msk.bf16.vlgmr.msra.gmra.mrb[88].mxu1 %vm128_vm0, %v3014_v14 }
0x11e3   :  { %6562 = vmatprep.mubr.msk.bf16.mxu1 %vm7232_vm1, %v7231_v17 }
0x12b5   :  { %v3068_v23 = vpop.f32.mrb[88].mxu1 }
0x12b6   :  { %v8114_v25 = vadd.f32 %v3068_v23, %v3018_v22  ;;  %v6558_v61 = vpop.f32.mrb[89].mxu1 }
0x12b7   :  { %v3071_v26 = vpop.f32.mrb[90].mxu1 }
0x12b8   :  { %3075 = vst.msk [vmem:[#allocation2] sm:$0xff] %vm229_vm2, %v8114_v25  ;;  %v8118_v1 = vadd.f32 %v3071_v26, %v3018_v22  ;;  %3103 = vrot.lane.b32.xlu0 %v8114_v25, %s7233_s16  ;;  %v6559_v33 = vpop.f32.mrb[91].mxu1 }
0x12ba   :  { %3076 = vst.msk [vmem:[#allocation2 + $0x8] sm:$0xff] %vm229_vm2, %v8118_v1  ;;  %3105 = vrot.lane.b32.xlu1 %v8118_v1, %s7233_s16 }
0x12bc   :  { %3113 = vrot.lane.b32.xlu0 %v8114_v25, %s7234_s12 }
0x12be   :  { %3079 = vrot.lane.b32.xlu1 %v8114_v25, %s7235_s13 }
0x12bf   :  { %v3143_v42 = vld [vmem:[#allocation2] sm:$0xff] }
0x12c0   :  { %3087 = vrot.lane.b32.xlu0 %v8114_v25, %s7236_s15  ;;  %v3151_v45 = vpack.c.bf16 %v3143_v42, %v3143_v42  ;;  %v7062_v42 = vld [vmem:[%s8770_s2] sm:$0xff] }
0x12c1   :  { %v3144_v46 = vld [vmem:[#allocation2 + $0x8] sm:$0xff] }
0x12c2   :  { %3081 = vrot.lane.b32.xlu1 %v8118_v1, %s7235_s13  ;;  %v3152_v39 = vpack.c.bf16 %v3144_v46, %v3144_v46  ;;  %v7063_v46 = vld [vmem:[%s8770_s2 + $0x8] sm:$0xff] }
0x12c4   :  { %3095 = vrot.lane.b32.xlu0 %v8114_v25, %s7237_s17 }
0x12c6   :  { %3115 = vrot.lane.b32.xlu1 %v8118_v1, %s7234_s12 }
0x12ca   :  { %3089 = vrot.lane.b32.xlu1 %v8118_v1, %s7236_s15 }
0x12ce   :  { %3097 = vrot.lane.b32.xlu1 %v8118_v1, %s7237_s17 }
0x132a   :  { %v3104_v43 = vpop.permute.xlu0 %3103 }
0x132b   :  { %3109 = vst.msk [vmem:[#allocation3] sm:$0xff] %vm229_vm2, %v3104_v43  ;;  %3111 = vst.msk [vmem:[#allocation3 + $0x10] sm:$0xff] %vm229_vm2, %v3104_v43 }
0x132c   :  { %v3106_v21 = vpop.permute.xlu1 %3105 }
0x132d   :  { %3110 = vst.msk [vmem:[#allocation3 + $0x8] sm:$0xff] %vm229_vm2, %v3106_v21  ;;  %3112 = vst.msk [vmem:[#allocation3 + $0x18] sm:$0xff] %vm229_vm2, %v3106_v21 }
0x132e   :  { %v3114_v36 = vpop.permute.xlu0 %3113 }
0x132f   :  { %3119 = vst.msk [vmem:[#allocation3 + $0x20] sm:$0xff] %vm229_vm2, %v3114_v36  ;;  %3121 = vst.msk [vmem:[#allocation3 + $0x30] sm:$0xff] %vm229_vm2, %v3114_v36 }
0x1330   :  { %v3080_v27 = vpop.permute.xlu1 %3079 }
0x1331   :  { %3085 = vst.msk [vmem:[#allocation2 + $0x10] sm:$0xff] %vm229_vm2, %v3080_v27 }
0x1332   :  { %v3088_v51 = vpop.permute.xlu0 %3087  ;;  %v3159_v10 = vld [vmem:[#allocation3] sm:$0xff]  ;;  %v3161_v40 = vld [vmem:[#allocation3 + $0x10] sm:$0xff] }
0x1333   :  { %3093 = vst.msk [vmem:[#allocation2 + $0x20] sm:$0xff] %vm229_vm2, %v3088_v51  ;;  %v3167_v31 = vpack.c.bf16 %v3159_v10, %v3159_v10  ;;  %v3169_v52 = vpack.c.bf16 %v3161_v40, %v3161_v40 }
0x1334   :  { %v3082_v32 = vpop.permute.xlu1 %3081  ;;  %v3160_v13 = vld [vmem:[#allocation3 + $0x8] sm:$0xff]  ;;  %v3162_v47 = vld [vmem:[#allocation3 + $0x18] sm:$0xff] }
0x1335   :  { %3086 = vst.msk [vmem:[#allocation2 + $0x18] sm:$0xff] %vm229_vm2, %v3082_v32  ;;  %v3195_v35 = vsel %vm229_vm2, %v3167_v31, 0  ;;  %v3168_v37 = vpack.c.bf16 %v3160_v13, %v3160_v13  ;;  %v3170_v55 = vpack.c.bf16 %v3162_v47, %v3162_v47  ;;  %v3287_v4 = vsel %vm229_vm2, %v3169_v52, 0 }
0x1336   :  { %6561 = vmatpush3.bf16.xpose.msra.mxu1 %v3195_v35  ;;  %v3096_v38 = vpop.permute.xlu0 %3095  ;;  %v3163_v5 = vld [vmem:[#allocation3 + $0x20] sm:$0xff]  ;;  %v3165_v19 = vld [vmem:[#allocation3 + $0x30] sm:$0xff] }
0x1337   :  { %3101 = vst.msk [vmem:[#allocation2 + $0x30] sm:$0xff] %vm229_vm2, %v3096_v38  ;;  %v3241_v41 = vsel %vm229_vm2, %v3168_v37, 0  ;;  %6572 = vmatprep.subr.bf16.mxu1 %v7231_v17  ;;  %v3333_v6 = vsel %vm229_vm2, %v3170_v55, 0  ;;  %v3171_v3 = vpack.c.bf16 %v3163_v5, %v3163_v5  ;;  %v3173_v23 = vpack.c.bf16 %v3165_v19, %v3165_v19 }
0x1338   :  { %6567 = vmatpush3.bf16.xpose.msra.mxu0 %v3241_v41  ;;  %v3116_v49 = vpop.permute.xlu1 %3115  ;;  %v3145_v16 = vld [vmem:[#allocation2 + $0x10] sm:$0xff] }
0x1339   :  { %3120 = vst.msk [vmem:[#allocation3 + $0x28] sm:$0xff] %vm229_vm2, %v3116_v49  ;;  %3122 = vst.msk [vmem:[#allocation3 + $0x38] sm:$0xff] %vm229_vm2, %v3116_v49  ;;  %6578 = vmatprep.subr.bf16.mxu0 %v7231_v17  ;;  %v3153_v24 = vpack.c.bf16 %v3145_v16, %v3145_v16  ;;  %v3379_v8 = vsel %vm229_vm2, %v3171_v3, 0  ;;  %v3471_v43 = vsel %vm229_vm2, %v3173_v23, 0 }
0x133a   :  { %v3147_v14 = vld [vmem:[#allocation2 + $0x20] sm:$0xff] }
0x133b   :  { %v3155_v26 = vpack.c.bf16 %v3147_v14, %v3147_v14 }
0x133c   :  { %v3090_v60 = vpop.permute.xlu1 %3089  ;;  %v3146_v15 = vld [vmem:[#allocation2 + $0x18] sm:$0xff] }
0x133d   :  { %3094 = vst.msk [vmem:[#allocation2 + $0x28] sm:$0xff] %vm229_vm2, %v3090_v60  ;;  %6563 = vmatmul.mubr.msk.bf16.vlgmr.msra.gmra.mrb[92].mxu1 %vm229_vm2, %v3151_v45  ;;  %v3154_v9 = vpack.c.bf16 %v3146_v15, %v3146_v15 }
0x133e   :  { %6573 = vmatpush3.bf16.xpose.msra.mxu1 %v3287_v4  ;;  %6574 = vmatprep.mubr.msk.bf16.mxu1 %vm7232_vm1, %v7231_v17  ;;  %v3149_v27 = vld [vmem:[#allocation2 + $0x30] sm:$0xff] }
0x133f   :  { %6569 = vmatmul.mubr.msk.bf16.vlgmr.msra.gmra.mrb[92].mxu0 %vm229_vm2, %v3152_v39  ;;  %6584 = vmatprep.subr.bf16.mxu1 %v7231_v17  ;;  %v3157_v10 = vpack.c.bf16 %v3149_v27, %v3149_v27 }
0x1340   :  { %v3098_v20 = vpop.permute.xlu1 %3097  ;;  %6579 = vmatpush3.bf16.xpose.msra.mxu0 %v3333_v6  ;;  %6580 = vmatprep.mubr.msk.bf16.mxu0 %vm7232_vm1, %v7231_v17  ;;  %v3164_v7 = vld [vmem:[#allocation3 + $0x28] sm:$0xff]  ;;  %v3166_v22 = vld [vmem:[#allocation3 + $0x38] sm:$0xff] }
0x1341   :  { %3102 = vst.msk [vmem:[#allocation2 + $0x38] sm:$0xff] %vm229_vm2, %v3098_v20  ;;  %6590 = vmatprep.subr.bf16.mxu0 %v7231_v17  ;;  %v3172_v44 = vpack.c.bf16 %v3164_v7, %v3164_v7  ;;  %v3174_v33 = vpack.c.bf16 %v3166_v22, %v3166_v22 }
0x1343   :  { %v3425_v12 = vsel %vm229_vm2, %v3172_v44, 0  ;;  %v3517_v36 = vsel %vm229_vm2, %v3174_v33, 0 }
0x1344   :  { %v3148_v61 = vld [vmem:[#allocation2 + $0x28] sm:$0xff] }
0x1345   :  { %6575 = vmatmul.mubr.msk.bf16.vlgmr.msra.gmra.mrb[96].mxu1 %vm229_vm2, %v3153_v24  ;;  %v3156_v21 = vpack.c.bf16 %v3148_v61, %v3148_v61  ;;  %v7064_v24 = vld [vmem:[%s8770_s2 + $0x10] sm:$0xff] }
0x1346   :  { %6585 = vmatpush3.bf16.xpose.msra.mxu1 %v3379_v8  ;;  %6586 = vmatprep.mubr.msk.bf16.mxu1 %vm7232_vm1, %v7231_v17 }
0x1347   :  { %6581 = vmatmul.mubr.msk.bf16.vlgmr.msra.gmra.mrb[96].mxu0 %vm229_vm2, %v3154_v9  ;;  %6596 = vmatprep.subr.bf16.mxu1 %v7231_v17  ;;  %v7065_v9 = vld [vmem:[%s8770_s2 + $0x18] sm:$0xff] }
0x1348   :  { %6591 = vmatpush3.bf16.xpose.msra.mxu0 %v3425_v12  ;;  %6592 = vmatprep.mubr.msk.bf16.mxu0 %vm7232_vm1, %v7231_v17  ;;  %v3150_v51 = vld [vmem:[#allocation2 + $0x38] sm:$0xff] }
0x1349   :  { %6602 = vmatprep.subr.bf16.mxu0 %v7231_v17  ;;  %v3158_v31 = vpack.c.bf16 %v3150_v51, %v3150_v51 }
0x134d   :  { %6587 = vmatmul.mubr.msk.bf16.vlgmr.msra.gmra.mrb[100].mxu1 %vm229_vm2, %v3155_v26 }
0x134e   :  { %6597 = vmatpush3.bf16.xpose.msra.mxu1 %v3471_v43  ;;  %6598 = vmatprep.mubr.msk.bf16.mxu1 %vm7232_vm1, %v7231_v17 }
0x134f   :  { %6593 = vmatmul.mubr.msk.bf16.vlgmr.msra.gmra.mrb[100].mxu0 %vm229_vm2, %v3156_v21  ;;  %6608 = vmatprep.subr.bf16.mxu1 %v7231_v17  ;;  %v7066_v21 = vld [vmem:[%s8770_s2 + $0x20] sm:$0xff] }
0x1350   :  { %6603 = vmatpush3.bf16.xpose.msra.mxu0 %v3517_v36  ;;  %6604 = vmatprep.mubr.msk.bf16.mxu0 %vm7232_vm1, %v7231_v17 }
0x1351   :  { %6614 = vmatprep.subr.bf16.mxu0 %v7231_v17 }
0x1355   :  { %6599 = vmatmul.mubr.msk.bf16.vlgmr.msra.gmra.mrb[104].mxu1 %vm229_vm2, %v3157_v10 }
0x1356   :  { %6610 = vmatprep.mubr.msk.bf16.mxu1 %vm7232_vm1, %v7231_v17 }
0x1357   :  { %6605 = vmatmul.mubr.msk.bf16.vlgmr.msra.gmra.mrb[104].mxu0 %vm229_vm2, %v3158_v31 }
0x1358   :  { %6616 = vmatprep.mubr.msk.bf16.mxu0 %vm7232_vm1, %v7231_v17 }
0x1410   :  { %v3231_v32 = vpop.f32.mrb[92].mxu1 }
0x1411   :  { %v3559_v13 = vmul.f32 0.35355338, %v3231_v32  ;;  %v6564_v35 = vpop.f32.mrb[93].mxu1  ;;  %v7067_v32 = vld [vmem:[%s8770_s2 + $0x28] sm:$0xff] }
0x1412   :  { %v3234_v37 = vpop.f32.mrb[94].mxu1  ;;  %v3277_v38 = vpop.f32.mrb[92].mxu0 }
0x1413   :  { %v3560_v40 = vmul.f32 0.35355338, %v3277_v38  ;;  %v6565_v41 = vpop.f32.mrb[95].mxu1  ;;  %v6570_v49 = vpop.f32.mrb[93].mxu0  ;;  %v8199_v47 = vadd.f32 %v7062_v42, %v3559_v13 }
0x1414   :  { %v3280_v52 = vpop.f32.mrb[94].mxu0 }
0x1415   :  { %v8204_v45 = vadd.f32 %v7063_v46, %v3560_v40  ;;  %v6571_v55 = vpop.f32.mrb[95].mxu0  ;;  %v3575_v60 = vsel %vm229_vm2, %v8199_v47, -inf  ;;  %v7068_v46 = vld [vmem:[%s8770_s2 + $0x30] sm:$0xff] }
0x1416   :  { %3576 = vmax.xlane.f32.xlu0 %v3575_v60 }
0x1417   :  { %v3578_v4 = vsel %vm229_vm2, %v8204_v45, -inf }
0x1418   :  { %v3323_v39 = vpop.f32.mrb[96].mxu1  ;;  %3579 = vmax.xlane.f32.xlu1 %v3578_v4 }
0x1419   :  { %v3561_v5 = vmul.f32 0.35355338, %v3323_v39  ;;  %v6576_v6 = vpop.f32.mrb[97].mxu1 }
0x141a   :  { %v3326_v20 = vpop.f32.mrb[98].mxu1  ;;  %v3369_v16 = vpop.f32.mrb[96].mxu0  ;;  %v7069_v6 = vld [vmem:[%s8770_s2 + $0x38] sm:$0xff] }
0x141b   :  { %v3562_v7 = vmul.f32 0.35355338, %v3369_v16  ;;  %v6577_v3 = vpop.f32.mrb[99].mxu1  ;;  %v6582_v15 = vpop.f32.mrb[97].mxu0  ;;  %v3569_v44 = vadd.f32 %v7064_v24, %v3561_v5 }
0x141c   :  { %v3372_v8 = vpop.f32.mrb[98].mxu0 }
0x141d   :  { %v3570_v19 = vadd.f32 %v7065_v9, %v3562_v7  ;;  %v6583_v12 = vpop.f32.mrb[99].mxu0  ;;  %v3581_v14 = vsel %vm229_vm2, %v3569_v44, -inf }
0x141e   :  { %3582 = vmax.xlane.f32.xlu0 %v3581_v14 }
0x141f   :  { %v3584_v26 = vsel %vm229_vm2, %v3570_v19, -inf }
0x1420   :  { %v3415_v22 = vpop.f32.mrb[100].mxu1 }
0x1421   :  { %v3563_v23 = vmul.f32 0.35355338, %v3415_v22  ;;  %v6588_v61 = vpop.f32.mrb[101].mxu1 }
0x1422   :  { %v3418_v33 = vpop.f32.mrb[102].mxu1  ;;  %3585 = vmax.xlane.f32.xlu0 %v3584_v26  ;;  %v3461_v43 = vpop.f32.mrb[100].mxu0 }
0x1423   :  { %v3571_v36 = vadd.f32 %v7066_v21, %v3563_v23  ;;  %v3564_v27 = vmul.f32 0.35355338, %v3461_v43  ;;  %v6589_v51 = vpop.f32.mrb[103].mxu1  ;;  %v6594_v10 = vpop.f32.mrb[101].mxu0 }
0x1424   :  { %v3464_v31 = vpop.f32.mrb[102].mxu0 }
0x1425   :  { %v3572_v13 = vadd.f32 %v7067_v32, %v3564_v27  ;;  %v6595_v35 = vpop.f32.mrb[103].mxu0  ;;  %v3587_v37 = vsel %vm229_vm2, %v3571_v36, -inf }
0x1426   :  { %3588 = vmax.xlane.f32.xlu0 %v3587_v37 }
0x1427   :  { %v3590_v38 = vsel %vm229_vm2, %v3572_v13, -inf }
0x1428   :  { %v3507_v40 = vpop.f32.mrb[104].mxu1  ;;  %3591 = vmax.xlane.f32.xlu1 %v3590_v38 }
0x1429   :  { %v3565_v41 = vmul.f32 0.35355338, %v3507_v40  ;;  %v6600_v49 = vpop.f32.mrb[105].mxu1 }
0x142a   :  { %v3510_v42 = vpop.f32.mrb[106].mxu1  ;;  %v3553_v52 = vpop.f32.mrb[104].mxu0 }
0x142b   :  { %v3573_v55 = vadd.f32 %v7068_v46, %v3565_v41  ;;  %v3566_v60 = vmul.f32 0.35355338, %v3553_v52  ;;  %v6601_v4 = vpop.f32.mrb[107].mxu1  ;;  %v6606_v39 = vpop.f32.mrb[105].mxu0 }
0x142c   :  { %v3556_v5 = vpop.f32.mrb[106].mxu0 }
0x142d   :  { %v3574_v20 = vadd.f32 %v7069_v6, %v3566_v60  ;;  %v6607_v16 = vpop.f32.mrb[107].mxu0  ;;  %v3593_v7 = vsel %vm229_vm2, %v3573_v55, -inf }
0x142e   :  { %3594 = vmax.xlane.f32.xlu0 %v3593_v7 }
0x142f   :  { %v3596_v3 = vsel %vm229_vm2, %v3574_v20, -inf }
0x1430   :  { %3597 = vmax.xlane.f32.xlu1 %v3596_v3 }
0x1441   :  { %3125 = vrot.lane.b32.xlu1 %v8118_v1, %s7238_s0 }
0x1444   :  { %3123 = vrot.lane.b32.xlu0 %v8114_v25, %s7238_s0 }
0x14a3   :  { %v3577_v15 = vpop.xlane.xlu0 %3576 }
0x14a4   :  { %v3599_v24 = vsub.f32 %v8199_v47, %v3577_v15 }
0x14a5   :  { %v3580_v8 = vpop.xlane.xlu1 %3579 }
0x14a6   :  { %v3607_v9 = vmul.f32 1.442695, %v3599_v24  ;;  %v3600_v12 = vsub.f32 %v8204_v45, %v3580_v8 }
0x14a8   :  { %6970 = vpow2.f32 %v3607_v9  ;;  %v3609_v14 = vmul.f32 1.442695, %v3600_v12 }
0x14aa   :  { %6972 = vpow2.f32 %v3609_v14  ;;  %v6020_v14 = vcombine.high %v8070_v62, %v8070_v62 }
0x14ab   :  { %v3583_v22 = vpop.xlane.xlu0 %3582 }
0x14ac   :  { %v3601_v23 = vsub.f32 %v3569_v44, %v3583_v22  ;;  %v6024_v22 = vcombine.high %v8085_v58, %v8085_v58 }
0x14ae   :  { %v3611_v61 = vmul.f32 1.442695, %v3601_v23  ;;  %v6022_v23 = vcombine.high %v8075_v63, %v8075_v63 }
0x14af   :  { %v3586_v26 = vpop.xlane.xlu0 %3585 }
0x14b0   :  { %6974 = vpow2.f32 %v3611_v61  ;;  %v3602_v33 = vsub.f32 %v3570_v19, %v3586_v26 }
0x14b2   :  { %v8240_v43 = vpop.eup %6970  ;;  %v3613_v21 = vmul.f32 1.442695, %v3602_v33 }
0x14b3   :  { %v3589_v27 = vpop.xlane.xlu0 %3588  ;;  %v3623_v47 = vsel %vm229_vm2, %v8240_v43, 0.0 }
0x14b4   :  { %v8244_v51 = vpop.eup %6972  ;;  %6976 = vpow2.f32 %v3613_v21  ;;  %v3603_v45 = vsub.f32 %v3571_v36, %v3589_v27  ;;  %3624 = vadd.xlane.f32.xlu0 %v3623_v47 }
0x14b5   :  { %v3592_v10 = vpop.xlane.xlu1 %3591  ;;  %v3626_v44 = vsel %vm229_vm2, %v8244_v51, 0.0 }
0x14b6   :  { %v3615_v31 = vmul.f32 1.442695, %v3603_v45  ;;  %v3604_v32 = vsub.f32 %v3572_v13, %v3592_v10  ;;  %3627 = vadd.xlane.f32.xlu1 %v3626_v44 }
0x14b8   :  { %6978 = vpow2.f32 %v3615_v31  ;;  %v3617_v19 = vmul.f32 1.442695, %v3604_v32 }
0x14ba   :  { %v8248_v35 = vpop.eup %6974  ;;  %6980 = vpow2.f32 %v3617_v19 }
0x14bb   :  { %v3595_v37 = vpop.xlane.xlu0 %3594  ;;  %v3629_v38 = vsel %vm229_vm2, %v8248_v35, 0.0 }
0x14bc   :  { %v3605_v40 = vsub.f32 %v3573_v55, %v3595_v37  ;;  %3630 = vadd.xlane.f32.xlu0 %v3629_v38 }
0x14bd   :  { %v3598_v36 = vpop.xlane.xlu1 %3597 }
0x14be   :  { %v8252_v41 = vpop.eup %6976  ;;  %v3619_v49 = vmul.f32 1.442695, %v3605_v40  ;;  %v3606_v42 = vsub.f32 %v3574_v20, %v3598_v36 }
0x14bf   :  { %v3124_v52 = vpop.permute.xlu0 %3123  ;;  %v3632_v13 = vsel %vm229_vm2, %v8252_v41, 0.0 }
0x14c0   :  { %6982 = vpow2.f32 %v3619_v49  ;;  %v3621_v46 = vmul.f32 1.442695, %v3606_v42  ;;  %3129 = vst.msk [vmem:[#allocation4] sm:$0xff] %vm229_vm2, %v3124_v52  ;;  %3131 = vst.msk [vmem:[#allocation4 + $0x10] sm:$0xff] %vm229_vm2, %v3124_v52  ;;  %3633 = vadd.xlane.f32.xlu1 %v3632_v13 }
0x14c1   :  { %v3126_v60 = vpop.permute.xlu1 %3125 }
0x14c2   :  { %v8258_v4 = vpop.eup %6978  ;;  %6984 = vpow2.f32 %v3621_v46  ;;  %3130 = vst.msk [vmem:[#allocation4 + $0x8] sm:$0xff] %vm229_vm2, %v3126_v60  ;;  %3132 = vst.msk [vmem:[#allocation4 + $0x18] sm:$0xff] %vm229_vm2, %v3126_v60 }
0x14c3   :  { %v3635_v55 = vsel %vm229_vm2, %v8258_v4, 0.0 }
0x14c4   :  { %v8264_v39 = vpop.eup %6980  ;;  %3636 = vadd.xlane.f32.xlu1 %v3635_v55 }
0x14c5   :  { %v3638_v5 = vsel %vm229_vm2, %v8264_v39, 0.0 }
0x14c6   :  { %3639 = vadd.xlane.f32.xlu0 %v3638_v5 }
0x14c7   :  { %v3175_v6 = vld [vmem:[#allocation4] sm:$0xff]  ;;  %v3177_v58 = vld [vmem:[#allocation4 + $0x10] sm:$0xff] }
0x14c8   :  { %v3183_v20 = vpack.c.bf16 %v3175_v6, %v3175_v6  ;;  %v3185_v27 = vpack.c.bf16 %v3177_v58, %v3177_v58 }
0x14c9   :  { %v3176_v16 = vld [vmem:[#allocation4 + $0x8] sm:$0xff]  ;;  %v3178_v33 = vld [vmem:[#allocation4 + $0x18] sm:$0xff] }
0x14ca   :  { %v8268_v7 = vpop.eup %6982  ;;  %v3675_v3 = vsel %vm838_vm3, %v3183_v20, 0  ;;  %v3184_v15 = vpack.c.bf16 %v3176_v16, %v3176_v16  ;;  %v3186_v10 = vpack.c.bf16 %v3178_v33, %v3178_v33  ;;  %v3767_v44 = vsel %vm838_vm3, %v3185_v27, 0 }
0x14cb   :  { %6609 = vmatpush3.bf16.msra.mxu1 %v3675_v3  ;;  %v3641_v24 = vsel %vm229_vm2, %v8268_v7, 0.0 }
0x14cc   :  { %v8273_v8 = vpop.eup %6984  ;;  %3642 = vadd.xlane.f32.xlu0 %v3641_v24  ;;  %v3721_v9 = vsel %vm838_vm3, %v3184_v15, 0  ;;  %6620 = vmatprep.subr.bf16.mxu1 %v7231_v17 }
0x14cd   :  { %6615 = vmatpush3.bf16.msra.mxu0 %v3721_v9  ;;  %v3644_v12 = vsel %vm229_vm2, %v8273_v8, 0.0 }
0x14ce   :  { %3645 = vadd.xlane.f32.xlu1 %v3644_v12  ;;  %6626 = vmatprep.subr.bf16.mxu0 %v7231_v17 }
0x14df   :  { %3135 = vrot.lane.b32.xlu1 %v8118_v1, %s7239_s18  ;;  %v6026_v1 = vcombine.high %v8090_v2, %v8090_v2 }
0x14e2   :  { %3133 = vrot.lane.b32.xlu0 %v8114_v25, %s7239_s18 }
0x14e3   :  { %4041 = vrot.lane.b32.xlu1 %v6020_v14, %s7240_s1 }
0x14e6   :  { %4151 = vrot.lane.b32.xlu0 %v6024_v22, %s7240_s1 }
0x14e7   :  { %4098 = vrot.lane.b32.xlu1 %v6022_v23, %s7240_s1 }
0x14eb   :  { %4204 = vrot.lane.b32.xlu1 %v6026_v1, %s7240_s1 }
0x1541   :  { %v3625_v25 = vpop.xlane.xlu0 %3624 }
0x1542   :  { %6986 = vrcp.f32 %v3625_v25 }
0x1543   :  { %v3628_v62 = vpop.xlane.xlu1 %3627 }
0x1544   :  { %6988 = vrcp.f32 %v3628_v62 }
0x1549   :  { %v3631_v61 = vpop.xlane.xlu0 %3630 }
0x154a   :  { %6990 = vrcp.f32 %v3631_v61 }
0x154c   :  { %v6987_v26 = vpop.eup %6986 }
0x154d   :  { %v3648_v63 = vmul.f32 %v6987_v26, %v8240_v43  ;;  %v3634_v21 = vpop.xlane.xlu1 %3633  ;;  %v3813_v43 = vsel %vm838_vm3, %v3186_v10, 0 }
0x154e   :  { %v6989_v47 = vpop.eup %6988  ;;  %6992 = vrcp.f32 %v3634_v21 }
0x154f   :  { %v3650_v45 = vmul.f32 %v6989_v47, %v8244_v51  ;;  %v3663_v2 = vpack.c.bf16 %v3648_v63, %v3648_v63 }
0x1551   :  { %6611 = vmatmul.mubr.msk.bf16.vlgmr.msra.gmra.mrb[108].mxu1 %vm229_vm2, %v3663_v2  ;;  %v3664_v31 = vpack.c.bf16 %v3650_v45, %v3650_v45  ;;  %v3637_v37 = vpop.xlane.xlu1 %3636 }
0x1552   :  { %6621 = vmatpush3.bf16.msra.mxu1 %v3767_v44  ;;  %6622 = vmatprep.mubr.msk.bf16.mxu1 %vm7232_vm1, %v7231_v17  ;;  %6994 = vrcp.f32 %v3637_v37 }
0x1553   :  { %6617 = vmatmul.mubr.msk.bf16.vlgmr.msra.gmra.mrb[108].mxu0 %vm229_vm2, %v3664_v31  ;;  %6632 = vmatprep.subr.bf16.mxu1 %v7231_v17  ;;  %v3640_v19 = vpop.xlane.xlu0 %3639 }
0x1554   :  { %v6991_v32 = vpop.eup %6990  ;;  %6627 = vmatpush3.bf16.msra.mxu0 %v3813_v43  ;;  %6628 = vmatprep.mubr.msk.bf16.mxu0 %vm7232_vm1, %v7231_v17  ;;  %6996 = vrcp.f32 %v3640_v19 }
0x1555   :  { %v3652_v51 = vmul.f32 %v6991_v32, %v8248_v35  ;;  %6638 = vmatprep.subr.bf16.mxu0 %v7231_v17 }
0x1557   :  { %v3665_v38 = vpack.c.bf16 %v3652_v51, %v3652_v51 }
0x1558   :  { %v6993_v40 = vpop.eup %6992 }
0x1559   :  { %v3654_v36 = vmul.f32 %v6993_v40, %v8252_v41  ;;  %6623 = vmatmul.mubr.msk.bf16.vlgmr.msra.gmra.mrb[112].mxu1 %vm229_vm2, %v3665_v38  ;;  %v3643_v49 = vpop.xlane.xlu0 %3642 }
0x155a   :  { %6634 = vmatprep.mubr.msk.bf16.mxu1 %vm7232_vm1, %v7231_v17  ;;  %6998 = vrcp.f32 %v3643_v49 }
0x155b   :  { %v3646_v42 = vpop.xlane.xlu1 %3645  ;;  %v3666_v52 = vpack.c.bf16 %v3654_v36, %v3654_v36 }
0x155c   :  { %v6995_v41 = vpop.eup %6994  ;;  %7000 = vrcp.f32 %v3646_v42 }
0x155d   :  { %v3134_v13 = vpop.permute.xlu0 %3133  ;;  %6629 = vmatmul.mubr.msk.bf16.vlgmr.msra.gmra.mrb[112].mxu0 %vm229_vm2, %v3666_v52  ;;  %v3656_v5 = vmul.f32 %v6995_v41, %v8258_v4 }
0x155e   :  { %3139 = vst.msk [vmem:[#allocation4 + $0x20] sm:$0xff] %vm229_vm2, %v3134_v13  ;;  %3141 = vst.msk [vmem:[#allocation4 + $0x30] sm:$0xff] %vm229_vm2, %v3134_v13  ;;  %6640 = vmatprep.mubr.msk.bf16.mxu0 %vm7232_vm1, %v7231_v17  ;;  %v6997_v46 = vpop.eup %6996 }
0x155f   :  { %v3136_v35 = vpop.permute.xlu1 %3135  ;;  %v3658_v3 = vmul.f32 %v6997_v46, %v8264_v39  ;;  %v3667_v14 = vpack.c.bf16 %v3656_v5, %v3656_v5 }
0x1560   :  { %3140 = vst.msk [vmem:[#allocation4 + $0x28] sm:$0xff] %vm229_vm2, %v3136_v35  ;;  %3142 = vst.msk [vmem:[#allocation4 + $0x38] sm:$0xff] %vm229_vm2, %v3136_v35 }
0x1561   :  { %v3668_v1 = vpack.c.bf16 %v3658_v3, %v3658_v3  ;;  %v4152_v27 = vpop.permute.xlu0 %4151 }
0x1562   :  { %v4157_v43 = vsel %vm838_vm3, %v4152_v27, 0 }
0x1564   :  { %v6999_v23 = vpop.eup %6998 }
0x1565   :  { %v3179_v60 = vld [vmem:[#allocation4 + $0x20] sm:$0xff]  ;;  %v3181_v55 = vld [vmem:[#allocation4 + $0x30] sm:$0xff]  ;;  %v3660_v25 = vmul.f32 %v6999_v23, %v8268_v7  ;;  %v4042_v7 = vpop.permute.xlu1 %4041 }
0x1566   :  { %v3187_v6 = vpack.c.bf16 %v3179_v60, %v3179_v60  ;;  %v3189_v9 = vpack.c.bf16 %v3181_v55, %v3181_v55  ;;  %v7001_v39 = vpop.eup %7000  ;;  %v4047_v33 = vsel %vm838_vm3, %v4042_v7, 0 }
0x1567   :  { %v3180_v20 = vld [vmem:[#allocation4 + $0x28] sm:$0xff]  ;;  %v3182_v16 = vld [vmem:[#allocation4 + $0x38] sm:$0xff]  ;;  %v3662_v61 = vmul.f32 %v7001_v39, %v8273_v8  ;;  %v3669_v58 = vpack.c.bf16 %v3660_v25, %v3660_v25 }
0x1568   :  { %v3859_v15 = vsel %vm838_vm3, %v3187_v6, 0  ;;  %v3188_v24 = vpack.c.bf16 %v3180_v20, %v3180_v20  ;;  %v3190_v22 = vpack.c.bf16 %v3182_v16, %v3182_v16  ;;  %v3951_v4 = vsel %vm838_vm3, %v3189_v9, 0 }
0x1569   :  { %6633 = vmatpush3.bf16.msra.mxu1 %v3859_v15  ;;  %v3670_v26 = vpack.c.bf16 %v3662_v61, %v3662_v61  ;;  %v4099_v8 = vpop.permute.xlu1 %4098 }
0x156a   :  { %v3905_v12 = vsel %vm838_vm3, %v3188_v24, 0  ;;  %6644 = vmatprep.subr.bf16.mxu1 %v7231_v17  ;;  %v3997_v62 = vsel %vm838_vm3, %v3190_v22, 0  ;;  %v4104_v63 = vsel %vm838_vm3, %v4099_v8, 0 }
0x156b   :  { %6639 = vmatpush3.bf16.msra.mxu0 %v3905_v12 }
0x156c   :  { %6635 = vmatmul.mubr.msk.bf16.vlgmr.msra.gmra.mrb[116].mxu1 %vm229_vm2, %v3667_v14  ;;  %6650 = vmatprep.subr.bf16.mxu0 %v7231_v17 }
0x156d   :  { %6645 = vmatpush3.bf16.msra.mxu1 %v3951_v4  ;;  %6646 = vmatprep.mubr.msk.bf16.mxu1 %vm7232_vm1, %v7231_v17  ;;  %v4205_v40 = vpop.permute.xlu1 %4204 }
0x156e   :  { %6641 = vmatmul.mubr.msk.bf16.vlgmr.msra.gmra.mrb[116].mxu0 %vm229_vm2, %v3668_v1  ;;  %6656 = vmatprep.subr.bf16.mxu1 %v7231_v17  ;;  %v4210_v13 = vsel %vm838_vm3, %v4205_v40, 0 }
0x156f   :  { %6651 = vmatpush3.bf16.msra.mxu0 %v3997_v62  ;;  %6652 = vmatprep.mubr.msk.bf16.mxu0 %vm7232_vm1, %v7231_v17 }
0x1570   :  { %6662 = vmatprep.subr.bf16.mxu0 %v7231_v17 }
0x1574   :  { %6647 = vmatmul.mubr.msk.bf16.vlgmr.msra.gmra.mrb[120].mxu1 %vm229_vm2, %v3669_v58 }
0x1575   :  { %6658 = vmatprep.mubr.msk.bf16.mxu1 %vm7232_vm1, %v7231_v17  ;;  %6657 = vmatpush3.bf16.msra.mxu1 %v4047_v33 }
0x1576   :  { %6653 = vmatmul.mubr.msk.bf16.vlgmr.msra.gmra.mrb[120].mxu0 %vm229_vm2, %v3670_v26  ;;  %6668 = vmatprep.subr.bf16.mxu1 %v7231_v17  ;;  %v4093_v26 = vrot.slane %v8102_v57, %v1257_v54 }
0x1577   :  { %6664 = vmatprep.mubr.msk.bf16.mxu0 %vm7232_vm1, %v7231_v17  ;;  %6663 = vmatpush3.bf16.msra.mxu0 %v4104_v63 }
0x1578   :  { %6674 = vmatprep.subr.bf16.mxu0 %v7231_v17 }
0x1624   :  { %v3711_v21 = vpop.f32.mrb[108].mxu1 }
0x1625   :  { %v6612_v47 = vpop.f32.mrb[109].mxu1 }
0x1626   :  { %v3714_v45 = vpop.f32.mrb[110].mxu1  ;;  %v3757_v2 = vpop.f32.mrb[108].mxu0 }
0x1627   :  { %v4039_v10 = vpack.c.bf16 %v3757_v2, %v3711_v21  ;;  %v6613_v44 = vpop.f32.mrb[111].mxu1  ;;  %v6618_v31 = vpop.f32.mrb[109].mxu0 }
0x1628   :  { %v3760_v32 = vpop.f32.mrb[110].mxu0 }
0x1629   :  { %v6619_v51 = vpop.f32.mrb[111].mxu0  ;;  %6659 = vmatmul.mubr.msk.bf16.vlgmr.msra.gmra.mrb[124].mxu1 %vm229_vm2, %v4039_v10 }
0x162a   :  { %6669 = vmatpush3.bf16.msra.mxu1 %v4157_v43  ;;  %6670 = vmatprep.mubr.msk.bf16.mxu1 %vm7232_vm1, %v7231_v17 }
0x162b   :  { %6680 = vmatprep.subr.bf16.mxu1 %v7231_v17 }
0x162c   :  { %v3803_v19 = vpop.f32.mrb[112].mxu1 }
0x162d   :  { %v6624_v37 = vpop.f32.mrb[113].mxu1 }
0x162e   :  { %v3806_v38 = vpop.f32.mrb[114].mxu1 }
0x162f   :  { %v6625_v36 = vpop.f32.mrb[115].mxu1 }
0x1630   :  { %v3849_v49 = vpop.f32.mrb[112].mxu0 }
0x1631   :  { %v4096_v42 = vpack.c.bf16 %v3849_v49, %v3803_v19  ;;  %v6630_v52 = vpop.f32.mrb[113].mxu0 }
0x1632   :  { %v3852_v35 = vpop.f32.mrb[114].mxu0 }
0x1633   :  { %v6631_v41 = vpop.f32.mrb[115].mxu0  ;;  %6665 = vmatmul.mubr.msk.bf16.vlgmr.msra.gmra.mrb[124].mxu0 %vm229_vm2, %v4096_v42 }
0x1634   :  { %6675 = vmatpush3.bf16.msra.mxu0 %v4210_v13  ;;  %6676 = vmatprep.mubr.msk.bf16.mxu0 %vm7232_vm1, %v7231_v17 }
0x1635   :  { %6688 = vmatprep.subr.bf16.mxu0 %v7231_v17 }
0x163f   :  { %v3895_v46 = vpop.f32.mrb[116].mxu1 }
0x1640   :  { %v6636_v60 = vpop.f32.mrb[117].mxu1 }
0x1641   :  { %v3898_v55 = vpop.f32.mrb[118].mxu1  ;;  %v3941_v5 = vpop.f32.mrb[116].mxu0 }
0x1642   :  { %v4149_v6 = vpack.c.bf16 %v3941_v5, %v3895_v46  ;;  %v6637_v20 = vpop.f32.mrb[119].mxu1  ;;  %v6642_v16 = vpop.f32.mrb[117].mxu0 }
0x1643   :  { %v3944_v3 = vpop.f32.mrb[118].mxu0  ;;  %v8391_v20 = vld [vmem:[%s8773_s5 + $0x44] sm:$0xf] }
0x1644   :  { %v6643_v15 = vpop.f32.mrb[119].mxu0  ;;  %6671 = vmatmul.mubr.msk.bf16.vlgmr.msra.gmra.mrb[128].mxu1 %vm229_vm2, %v4149_v6  ;;  %v8401_v3 = vld [vmem:[%s8773_s5 + $0x50] sm:$0xf] }
0x1645   :  { %6684 = vmatprep.mubr.msk.bf16.mxu1 %vm7232_vm1, %v7231_v17  ;;  %v8406_v15 = vld [vmem:[%s8773_s5 + $0x5c] sm:$0xf] }
0x1647   :  { %v3987_v24 = vpop.f32.mrb[120].mxu1 }
0x1648   :  { %v6648_v9 = vpop.f32.mrb[121].mxu1 }
0x1649   :  { %v3990_v12 = vpop.f32.mrb[122].mxu1  ;;  %v4033_v14 = vpop.f32.mrb[120].mxu0 }
0x164a   :  { %v4202_v22 = vpack.c.bf16 %v4033_v14, %v3987_v24  ;;  %v6649_v23 = vpop.f32.mrb[123].mxu1  ;;  %v6654_v4 = vpop.f32.mrb[121].mxu0  ;;  %v6030_v24 = vcombine.low %v8401_v3, %v8406_v15 }
0x164b   :  { %v4036_v1 = vpop.f32.mrb[122].mxu0 }
0x164c   :  { %v6655_v39 = vpop.f32.mrb[123].mxu0  ;;  %6677 = vmatmul.mubr.msk.bf16.vlgmr.msra.gmra.mrb[128].mxu0 %vm229_vm2, %v4202_v22 }
0x164d   :  { %6692 = vmatprep.mubr.msk.bf16.mxu0 %vm7232_vm1, %v7231_v17  ;;  %v4286_v39 = vrot.slane %v8102_v57, %v7733_v53 }
0x16fc   :  { %v4083_v25 = vpop.f32.mrb[124].mxu1 }
0x16fd   :  { %v6660_v62 = vpop.f32.mrb[125].mxu1  ;;  %v4094_v7 = vadd.f32 %v4093_v26, %v4083_v25 }
0x16fe   :  { %v4086_v61 = vpop.f32.mrb[126].mxu1 }
0x16ff   :  { %v6661_v58 = vpop.f32.mrb[127].mxu1  ;;  %v4095_v8 = vadd.f32 %v4093_v26, %v4086_v61  ;;  %v4292_v26 = vrot.slane %v8102_v57, %v1456_v59 }
0x1706   :  { %v4140_v33 = vpop.f32.mrb[124].mxu0 }
0x1707   :  { %v4147_v63 = vadd.f32 %v4140_v33, %v4094_v7  ;;  %v6666_v21 = vpop.f32.mrb[125].mxu0 }
0x1708   :  { %v4143_v27 = vpop.f32.mrb[126].mxu0  ;;  %v8428_v21 = vld [vmem:[%s8772_s4 + $0x18] sm:$0x7] }
0x1709   :  { %v4148_v47 = vadd.f32 %v4143_v27, %v4095_v8  ;;  %v6667_v45 = vpop.f32.mrb[127].mxu0  ;;  %v4353_v27 = vrot.slane %v8428_v21, %v7418_v34 }
0x1717   :  { %v4193_v2 = vpop.f32.mrb[128].mxu1 }
0x1718   :  { %v4200_v10 = vadd.f32 %v4193_v2, %v4147_v63  ;;  %v6672_v44 = vpop.f32.mrb[129].mxu1 }
0x1719   :  { %v4196_v31 = vpop.f32.mrb[130].mxu1 }
0x171a   :  { %v4201_v43 = vadd.f32 %v4196_v31, %v4148_v47  ;;  %v6673_v32 = vpop.f32.mrb[131].mxu1 }
0x171f   :  { %v4246_v51 = vpop.f32.mrb[128].mxu0 }
0x1720   :  { %v4253_v19 = vadd.f32 %v4246_v51, %v4200_v10  ;;  %v6678_v37 = vpop.f32.mrb[129].mxu0 }
0x1721   :  { %v4249_v38 = vpop.f32.mrb[130].mxu0  ;;  %v4299_v37 = vrot.slane %v8428_v21, %v7408_v29 }
0x1722   :  { %v8368_v54 = vadd.f32 %v4253_v19, %v8054_v30  ;;  %v4254_v40 = vadd.f32 %v4249_v38, %v4201_v43  ;;  %v6679_v36 = vpop.f32.mrb[131].mxu0 }
0x1724   :  { %v8371_v49 = vadd.f32 %v4254_v40, %v8057_v11  ;;  %v4257_v42 = vsel %vm128_vm0, %v8368_v54, 0.0 }
0x1725   :  { %4258 = vadd.xlane.f32.xlu0 %v4257_v42 }
0x1726   :  { %v4260_v52 = vsel %vm128_vm0, %v8371_v49, 0.0 }
0x1727   :  { %4261 = vadd.xlane.f32.xlu1 %v4260_v52 }
0x1738   :  { %4302 = vrot.lane.b32.xlu1 %v8095_v56, %s7241_s14  ;;  %v8386_v56 = vld [vmem:[%s8773_s5 + $0x38] sm:$0xf] }
0x1739   :  { %v6029_v16 = vcombine.low %v8386_v56, %v8391_v20 }
0x173b   :  { %6689 = vmatpush3.bf16.msra.mxu0 %v6029_v16 }
0x173c   :  { %6690 = vmatprep.subr.bf16.mxu0 %v7231_v17 }
0x173f   :  { %6691 = vmatpush3.bf16.msra.mxu0 %v6030_v24 }
0x1740   :  { %6702 = vmatprep.subr.bf16.mxu0 %v7231_v17 }
0x1742   :  { %6693 = vmatmul.mubr.msk.bf16.vlgmr.msra.gmra.mrb[132].mxu0 %vm128_vm0, %v7724_v18 }
0x1743   :  { %6704 = vmatprep.mubr.msk.bf16.mxu0 %vm7232_vm1, %v7231_v17 }
0x17b2   :  { %v4259_v13 = vpop.xlane.xlu0 %4258 }
0x17b3   :  { %v4263_v35 = vmul.f32 0.03125, %v4259_v13 }
0x17b4   :  { %v4262_v30 = vpop.xlane.xlu1 %4261 }
0x17b5   :  { %v4265_v41 = vsub.f32 %v8368_v54, %v4263_v35  ;;  %v4264_v46 = vmul.f32 0.03125, %v4262_v30 }
0x17b7   :  { %v4266_v11 = vsub.f32 %v8371_v49, %v4264_v46  ;;  %v4267_v60 = vmul.f32 %v4265_v41, %v4265_v41 }
0x17b8   :  { %v4303_v1 = vpop.permute.xlu1 %4302 }
0x17b9   :  { %v4269_v55 = vsel %vm128_vm0, %v4267_v60, 0.0  ;;  %v4268_v5 = vmul.f32 %v4266_v11, %v4266_v11 }
0x17ba   :  { %4270 = vadd.xlane.f32.xlu0 %v4269_v55 }
0x17bb   :  { %v4272_v6 = vsel %vm128_vm0, %v4268_v5, 0.0 }
0x17be   :  { %4273 = vadd.xlane.f32.xlu0 %v4272_v6 }
0x17d4   :  { %4300 = vrot.lane.b32.xlu0 %v8079_v50, %s7241_s14 }
0x1815   :  { %v4400_v47 = vpop.f32.mrb[132].mxu0 }
0x1816   :  { %v8432_v45 = vadd.f32 %v4400_v47, %v4353_v27  ;;  %v6694_v59 = vpop.f32.mrb[133].mxu0 }
0x1817   :  { %v4403_v57 = vpop.f32.mrb[134].mxu0 }
0x1818   :  { %4435 = vst.msk [vmem:[#allocation5] sm:$0xff] %vm229_vm2, %v8432_v45  ;;  %4437 = vst.msk [vmem:[#allocation5 + $0x10] sm:$0xff] %vm229_vm2, %v8432_v45  ;;  %v8438_v2 = vadd.f32 %v4403_v57, %v4353_v27  ;;  %4441 = vrot.lane.b32.xlu0 %v8432_v45, %s7235_s13  ;;  %v6695_v10 = vpop.f32.mrb[135].mxu0 }
0x181a   :  { %4436 = vst.msk [vmem:[#allocation5 + $0x8] sm:$0xff] %vm229_vm2, %v8438_v2  ;;  %4438 = vst.msk [vmem:[#allocation5 + $0x18] sm:$0xff] %vm229_vm2, %v8438_v2 }
0x181f   :  { %v4487_v34 = vld [vmem:[#allocation5] sm:$0xff]  ;;  %v4489_v35 = vld [vmem:[#allocation5 + $0x10] sm:$0xff] }
0x1820   :  { %v4495_v44 = vpack.c.bf16 %v4487_v34, %v4487_v34  ;;  %v4497_v29 = vpack.c.bf16 %v4489_v35, %v4489_v35 }
0x1821   :  { %v4488_v31 = vld [vmem:[#allocation5 + $0x8] sm:$0xff]  ;;  %v4490_v30 = vld [vmem:[#allocation5 + $0x18] sm:$0xff] }
0x1822   :  { %v4523_v43 = vsel %vm229_vm2, %v4495_v44, 0  ;;  %v4496_v32 = vpack.c.bf16 %v4488_v31, %v4488_v31  ;;  %v4615_v60 = vsel %vm229_vm2, %v4497_v29, 0  ;;  %v7071_v29 = vld [vmem:[#allocation12 + $0x8] sm:$0xff] }
0x1824   :  { %v4569_v51 = vsel %vm229_vm2, %v4496_v32, 0 }
0x1825   :  { %6703 = vmatpush3.bf16.xpose.msra.mxu0 %v4569_v51 }
0x1826   :  { %6714 = vmatprep.subr.bf16.mxu0 %v7231_v17 }
0x1847   :  { %v4271_v50 = vpop.xlane.xlu0 %4270 }
0x1848   :  { %v4275_v9 = vmul.f32 0.03125, %v4271_v50 }
0x184a   :  { %v4277_v12 = vadd.f32 1e-05, %v4275_v9 }
0x184b   :  { %v4274_v14 = vpop.xlane.xlu0 %4273 }
0x184c   :  { %7002 = vrsqrt.f32 %v4277_v12  ;;  %v4276_v22 = vmul.f32 0.03125, %v4274_v14 }
0x184e   :  { %v4278_v23 = vadd.f32 1e-05, %v4276_v22 }
0x184f   :  { %v4301_v4 = vpop.permute.xlu0 %4300 }
0x1850   :  { %7004 = vrsqrt.f32 %v4278_v23  ;;  %6681 = vmatpush3.bf16.msra.mxu1 %v4301_v4 }
0x1851   :  { %6682 = vmatprep.subr.bf16.mxu1 %v7231_v17 }
0x1854   :  { %6683 = vmatpush3.bf16.msra.mxu1 %v4303_v1 }
0x1855   :  { %6696 = vmatprep.subr.bf16.mxu1 %v7231_v17 }
0x1856   :  { %v7003_v18 = vpop.eup %7002 }
0x1857   :  { %v4281_v25 = vmul.f32 %v7003_v18, %v4265_v41  ;;  %v4498_v41 = vpack.c.bf16 %v4490_v30, %v4490_v30 }
0x1859   :  { %v4287_v61 = vmul.f32 %v4286_v39, %v4281_v25  ;;  %v4661_v6 = vsel %vm229_vm2, %v4498_v41, 0 }
0x185a   :  { %v7005_v62 = vpop.eup %7004 }
0x185b   :  { %v4282_v58 = vmul.f32 %v7005_v62, %v4266_v11  ;;  %v4293_v33 = vadd.f32 %v4292_v26, %v4287_v61 }
0x185d   :  { %v4288_v7 = vmul.f32 %v4286_v39, %v4282_v58 }
0x185f   :  { %v4294_v8 = vadd.f32 %v4292_v26, %v4288_v7 }
0x1861   :  { %v4295_v63 = vpack.c.bf16 %v4294_v8, %v4293_v33 }
0x1863   :  { %6685 = vmatmul.mubr.msk.bf16.vlgmr.msra.gmra.mrb[132].mxu1 %vm128_vm0, %v4295_v63 }
0x1864   :  { %6698 = vmatprep.mubr.msk.bf16.mxu1 %vm7232_vm1, %v7231_v17  ;;  %6697 = vmatpush3.bf16.xpose.msra.mxu1 %v4523_v43 }
0x1865   :  { %6708 = vmatprep.subr.bf16.mxu1 %v7231_v17 }
0x188a   :  { %v4442_v19 = vpop.permute.xlu0 %4441 }
0x188b   :  { %4447 = vst.msk [vmem:[#allocation5 + $0x20] sm:$0xff] %vm229_vm2, %v4442_v19  ;;  %4449 = vst.msk [vmem:[#allocation5 + $0x30] sm:$0xff] %vm229_vm2, %v4442_v19 }
0x1892   :  { %v4491_v50 = vld [vmem:[#allocation5 + $0x20] sm:$0xff]  ;;  %v4493_v18 = vld [vmem:[#allocation5 + $0x30] sm:$0xff] }
0x1893   :  { %v4499_v14 = vpack.c.bf16 %v4491_v50, %v4491_v50  ;;  %v4501_v61 = vpack.c.bf16 %v4493_v18, %v4493_v18 }
0x1895   :  { %v4707_v1 = vsel %vm229_vm2, %v4499_v14, 0  ;;  %v4799_v8 = vsel %vm229_vm2, %v4501_v61, 0 }
0x1936   :  { %v4343_v38 = vpop.f32.mrb[132].mxu1 }
0x1937   :  { %v4344_v40 = vadd.f32 %v4343_v38, %v4299_v37  ;;  %v6686_v36 = vpop.f32.mrb[133].mxu1 }
0x1938   :  { %v4346_v42 = vpop.f32.mrb[134].mxu1  ;;  %v7070_v36 = vld [vmem:[#allocation12] sm:$0xff] }
0x1939   :  { %4407 = vst.msk [vmem:[#allocation2] sm:$0xff] %vm229_vm2, %v4344_v40  ;;  %v4347_v52 = vadd.f32 %v4346_v42, %v4299_v37  ;;  %4411 = vrot.lane.b32.xlu1 %v4344_v40, %s7235_s13  ;;  %v6687_v13 = vpop.f32.mrb[135].mxu1  ;;  %4419 = vrot.lane.b32.xlu0 %v4344_v40, %s7236_s15 }
0x193b   :  { %4408 = vst.msk [vmem:[#allocation2 + $0x8] sm:$0xff] %vm229_vm2, %v4347_v52 }
0x193d   :  { %4413 = vrot.lane.b32.xlu1 %v4347_v52, %s7235_s13  ;;  %4427 = vrot.lane.b32.xlu0 %v4344_v40, %s7237_s17 }
0x1940   :  { %v4471_v46 = vld [vmem:[#allocation2] sm:$0xff] }
0x1941   :  { %4443 = vrot.lane.b32.xlu1 %v8438_v2, %s7235_s13  ;;  %v4479_v11 = vpack.c.bf16 %v4471_v46, %v4471_v46 }
0x1942   :  { %v4472_v55 = vld [vmem:[#allocation2 + $0x8] sm:$0xff] }
0x1943   :  { %6699 = vmatmul.mubr.msk.bf16.vlgmr.msra.gmra.mrb[136].mxu1 %vm229_vm2, %v4479_v11  ;;  %v4480_v5 = vpack.c.bf16 %v4472_v55, %v4472_v55 }
0x1944   :  { %6709 = vmatpush3.bf16.xpose.msra.mxu1 %v4615_v60  ;;  %6710 = vmatprep.mubr.msk.bf16.mxu1 %vm7232_vm1, %v7231_v17 }
0x1945   :  { %4421 = vrot.lane.b32.xlu1 %v4347_v52, %s7236_s15  ;;  %6705 = vmatmul.mubr.msk.bf16.vlgmr.msra.gmra.mrb[136].mxu0 %vm229_vm2, %v4480_v5 }
0x1946   :  { %6715 = vmatpush3.bf16.xpose.msra.mxu0 %v4661_v6  ;;  %6720 = vmatprep.subr.bf16.mxu1 %v7231_v17 }
0x1947   :  { %6716 = vmatprep.mubr.msk.bf16.mxu0 %vm7232_vm1, %v7231_v17  ;;  %6726 = vmatprep.subr.bf16.mxu0 %v7231_v17 }
0x1949   :  { %4429 = vrot.lane.b32.xlu1 %v4347_v52, %s7237_s17 }
0x19ab   :  { %v4412_v16 = vpop.permute.xlu1 %4411  ;;  %v4420_v24 = vpop.permute.xlu0 %4419 }
0x19ac   :  { %4417 = vst.msk [vmem:[#allocation2 + $0x10] sm:$0xff] %vm229_vm2, %v4412_v16  ;;  %4425 = vst.msk [vmem:[#allocation2 + $0x20] sm:$0xff] %vm229_vm2, %v4420_v24  ;;  %v7072_v24 = vld [vmem:[#allocation12 + $0x10] sm:$0xff] }
0x19af   :  { %v4414_v9 = vpop.permute.xlu1 %4413  ;;  %v4428_v12 = vpop.permute.xlu0 %4427 }
0x19b0   :  { %4418 = vst.msk [vmem:[#allocation2 + $0x18] sm:$0xff] %vm229_vm2, %v4414_v9  ;;  %4433 = vst.msk [vmem:[#allocation2 + $0x30] sm:$0xff] %vm229_vm2, %v4428_v12 }
0x19b3   :  { %v4444_v22 = vpop.permute.xlu1 %4443  ;;  %v4473_v23 = vld [vmem:[#allocation2 + $0x10] sm:$0xff]  ;;  %v4475_v58 = vld [vmem:[#allocation2 + $0x20] sm:$0xff] }
0x19b4   :  { %4448 = vst.msk [vmem:[#allocation5 + $0x28] sm:$0xff] %vm229_vm2, %v4444_v22  ;;  %4450 = vst.msk [vmem:[#allocation5 + $0x38] sm:$0xff] %vm229_vm2, %v4444_v22  ;;  %v4481_v4 = vpack.c.bf16 %v4473_v23, %v4473_v23  ;;  %v4483_v33 = vpack.c.bf16 %v4475_v58, %v4475_v58 }
0x19b6   :  { %6711 = vmatmul.mubr.msk.bf16.vlgmr.msra.gmra.mrb[140].mxu1 %vm229_vm2, %v4481_v4 }
0x19b7   :  { %6721 = vmatpush3.bf16.xpose.msra.mxu1 %v4707_v1  ;;  %v4422_v39 = vpop.permute.xlu1 %4421  ;;  %v4474_v25 = vld [vmem:[#allocation2 + $0x18] sm:$0xff]  ;;  %6722 = vmatprep.mubr.msk.bf16.mxu1 %vm7232_vm1, %v7231_v17  ;;  %v4477_v57 = vld [vmem:[#allocation2 + $0x30] sm:$0xff] }
0x19b8   :  { %4426 = vst.msk [vmem:[#allocation2 + $0x28] sm:$0xff] %vm229_vm2, %v4422_v39  ;;  %v4482_v62 = vpack.c.bf16 %v4474_v25, %v4474_v25  ;;  %6732 = vmatprep.subr.bf16.mxu1 %v7231_v17  ;;  %v4485_v44 = vpack.c.bf16 %v4477_v57, %v4477_v57  ;;  %v7073_v1 = vld [vmem:[#allocation12 + $0x18] sm:$0xff] }
0x19ba   :  { %6717 = vmatmul.mubr.msk.bf16.vlgmr.msra.gmra.mrb[140].mxu0 %vm229_vm2, %v4482_v62 }
0x19bb   :  { %v4430_v26 = vpop.permute.xlu1 %4429  ;;  %v4492_v7 = vld [vmem:[#allocation5 + $0x28] sm:$0xff]  ;;  %6728 = vmatprep.mubr.msk.bf16.mxu0 %vm7232_vm1, %v7231_v17  ;;  %v4494_v47 = vld [vmem:[#allocation5 + $0x38] sm:$0xff] }
0x19bc   :  { %4434 = vst.msk [vmem:[#allocation2 + $0x38] sm:$0xff] %vm229_vm2, %v4430_v26  ;;  %v4500_v63 = vpack.c.bf16 %v4492_v7, %v4492_v7  ;;  %v4502_v10 = vpack.c.bf16 %v4494_v47, %v4494_v47  ;;  %v7074_v7 = vld [vmem:[#allocation12 + $0x20] sm:$0xff] }
0x19be   :  { %6723 = vmatmul.mubr.msk.bf16.vlgmr.msra.gmra.mrb[144].mxu1 %vm229_vm2, %v4483_v33  ;;  %v4753_v27 = vsel %vm229_vm2, %v4500_v63, 0  ;;  %v4845_v31 = vsel %vm229_vm2, %v4502_v10, 0 }
0x19bf   :  { %6733 = vmatpush3.bf16.xpose.msra.mxu1 %v4799_v8  ;;  %6727 = vmatpush3.bf16.xpose.msra.mxu0 %v4753_v27  ;;  %v4476_v59 = vld [vmem:[#allocation2 + $0x28] sm:$0xff] }
0x19c0   :  { %6734 = vmatprep.mubr.msk.bf16.mxu1 %vm7232_vm1, %v7231_v17  ;;  %6738 = vmatprep.subr.bf16.mxu0 %v7231_v17  ;;  %v4484_v34 = vpack.c.bf16 %v4476_v59, %v4476_v59 }
0x19c1   :  { %6744 = vmatprep.subr.bf16.mxu1 %v7231_v17 }
0x19c3   :  { %v4478_v43 = vld [vmem:[#allocation2 + $0x38] sm:$0xff] }
0x19c4   :  { %v4486_v32 = vpack.c.bf16 %v4478_v43, %v4478_v43  ;;  %v7075_v43 = vld [vmem:[#allocation12 + $0x28] sm:$0xff] }
0x19c6   :  { %6729 = vmatmul.mubr.msk.bf16.vlgmr.msra.gmra.mrb[144].mxu0 %vm229_vm2, %v4484_v34  ;;  %6735 = vmatmul.mubr.msk.bf16.vlgmr.msra.gmra.mrb[148].mxu1 %vm229_vm2, %v4485_v44 }
0x19c7   :  { %6739 = vmatpush3.bf16.xpose.msra.mxu0 %v4845_v31  ;;  %6740 = vmatprep.mubr.msk.bf16.mxu0 %vm7232_vm1, %v7231_v17 }
0x19c8   :  { %6750 = vmatprep.subr.bf16.mxu0 %v7231_v17  ;;  %6746 = vmatprep.mubr.msk.bf16.mxu1 %vm7232_vm1, %v7231_v17 }
0x19ce   :  { %6741 = vmatmul.mubr.msk.bf16.vlgmr.msra.gmra.mrb[148].mxu0 %vm229_vm2, %v4486_v32 }
0x19cf   :  { %6752 = vmatprep.mubr.msk.bf16.mxu0 %vm7232_vm1, %v7231_v17 }
0x1a16   :  { %v4559_v51 = vpop.f32.mrb[136].mxu1 }
0x1a17   :  { %v4887_v19 = vmul.f32 0.35355338, %v4559_v51  ;;  %v6700_v37 = vpop.f32.mrb[137].mxu1  ;;  %v7076_v51 = vld [vmem:[#allocation12 + $0x30] sm:$0xff] }
0x1a18   :  { %v4562_v38 = vpop.f32.mrb[138].mxu1  ;;  %v4605_v40 = vpop.f32.mrb[136].mxu0 }
0x1a19   :  { %v8508_v42 = vadd.f32 %v7070_v36, %v4887_v19  ;;  %v4888_v52 = vmul.f32 0.35355338, %v4605_v40  ;;  %v6701_v13 = vpop.f32.mrb[139].mxu1  ;;  %v6706_v35 = vpop.f32.mrb[137].mxu0 }
0x1a1a   :  { %v4608_v30 = vpop.f32.mrb[138].mxu0 }
0x1a1b   :  { %v8510_v41 = vadd.f32 %v7071_v29, %v4888_v52  ;;  %v6707_v46 = vpop.f32.mrb[139].mxu0  ;;  %v4903_v11 = vsel %vm229_vm2, %v8508_v42, -inf  ;;  %v7077_v29 = vld [vmem:[#allocation12 + $0x38] sm:$0xff] }
0x1a1c   :  { %4904 = vmax.xlane.f32.xlu0 %v4903_v11 }
0x1a1d   :  { %v4906_v60 = vsel %vm229_vm2, %v8510_v41, -inf }
0x1a1e   :  { %4907 = vmax.xlane.f32.xlu1 %v4906_v60 }
0x1a89   :  { %v4651_v55 = vpop.f32.mrb[140].mxu1 }
0x1a8a   :  { %v4889_v5 = vmul.f32 0.35355338, %v4651_v55  ;;  %v6712_v6 = vpop.f32.mrb[141].mxu1 }
0x1a8b   :  { %v4654_v16 = vpop.f32.mrb[142].mxu1 }
0x1a8c   :  { %v8516_v50 = vadd.f32 %v7072_v24, %v4889_v5  ;;  %v6713_v9 = vpop.f32.mrb[143].mxu1 }
0x1a8d   :  { %v4697_v12 = vpop.f32.mrb[140].mxu0 }
0x1a8e   :  { %v4890_v14 = vmul.f32 0.35355338, %v4697_v12  ;;  %v6718_v22 = vpop.f32.mrb[141].mxu0  ;;  %v4909_v23 = vsel %vm229_vm2, %v8516_v50, -inf }
0x1a8f   :  { %4910 = vmax.xlane.f32.xlu0 %v4909_v23  ;;  %v4700_v4 = vpop.f32.mrb[142].mxu0 }
0x1a90   :  { %v4898_v18 = vadd.f32 %v7073_v1, %v4890_v14  ;;  %v6719_v39 = vpop.f32.mrb[143].mxu0 }
0x1a91   :  { %v4743_v25 = vpop.f32.mrb[144].mxu1 }
0x1a92   :  { %v4891_v62 = vmul.f32 0.35355338, %v4743_v25  ;;  %v6724_v61 = vpop.f32.mrb[145].mxu1  ;;  %v4912_v58 = vsel %vm229_vm2, %v4898_v18, -inf }
0x1a93   :  { %v4746_v26 = vpop.f32.mrb[146].mxu1  ;;  %4913 = vmax.xlane.f32.xlu0 %v4912_v58 }
0x1a94   :  { %v4899_v33 = vadd.f32 %v7074_v7, %v4891_v62  ;;  %v6725_v8 = vpop.f32.mrb[147].mxu1 }
0x1a96   :  { %v4915_v63 = vsel %vm229_vm2, %v4899_v33, -inf }
0x1a97   :  { %4916 = vmax.xlane.f32.xlu0 %v4915_v63 }
0x1a99   :  { %v4789_v27 = vpop.f32.mrb[144].mxu0  ;;  %v4835_v47 = vpop.f32.mrb[148].mxu1 }
0x1a9a   :  { %v4892_v59 = vmul.f32 0.35355338, %v4789_v27  ;;  %v4893_v57 = vmul.f32 0.35355338, %v4835_v47  ;;  %v6730_v10 = vpop.f32.mrb[145].mxu0  ;;  %v6736_v34 = vpop.f32.mrb[149].mxu1 }
0x1a9b   :  { %v4792_v44 = vpop.f32.mrb[146].mxu0  ;;  %v4838_v31 = vpop.f32.mrb[150].mxu1 }
0x1a9c   :  { %v4900_v32 = vadd.f32 %v7075_v43, %v4892_v59  ;;  %v4901_v19 = vadd.f32 %v7076_v51, %v4893_v57  ;;  %v6731_v37 = vpop.f32.mrb[147].mxu0  ;;  %v6737_v38 = vpop.f32.mrb[151].mxu1 }
0x1a9e   :  { %v4921_v40 = vsel %vm229_vm2, %v4901_v19, -inf  ;;  %v4918_v36 = vsel %vm229_vm2, %v4900_v32, -inf }
0x1a9f   :  { %4922 = vmax.xlane.f32.xlu0 %v4921_v40  ;;  %4919 = vmax.xlane.f32.xlu1 %v4918_v36 }
0x1aa1   :  { %v4881_v52 = vpop.f32.mrb[148].mxu0 }
0x1aa2   :  { %v4894_v13 = vmul.f32 0.35355338, %v4881_v52  ;;  %v6742_v35 = vpop.f32.mrb[149].mxu0 }
0x1aa3   :  { %v4884_v30 = vpop.f32.mrb[150].mxu0 }
0x1aa4   :  { %v4902_v46 = vadd.f32 %v7077_v29, %v4894_v13  ;;  %v6743_v11 = vpop.f32.mrb[151].mxu0 }
0x1aa5   :  { %v6048_v11 = vcombine.low %v8386_v56, %v8386_v56 }
0x1aa6   :  { %v4924_v60 = vsel %vm229_vm2, %v4902_v46, -inf }
0x1aa7   :  { %4925 = vmax.xlane.f32.xlu1 %v4924_v60 }
0x1aa9   :  { %v4905_v55 = vpop.xlane.xlu0 %4904 }
0x1aaa   :  { %v4927_v5 = vsub.f32 %v8508_v42, %v4905_v55 }
0x1aab   :  { %v4908_v16 = vpop.xlane.xlu1 %4907 }
0x1aac   :  { %v4935_v6 = vmul.f32 1.442695, %v4927_v5  ;;  %v4928_v24 = vsub.f32 %v8510_v41, %v4908_v16 }
0x1aae   :  { %7006 = vpow2.f32 %v4935_v6  ;;  %v4937_v9 = vmul.f32 1.442695, %v4928_v24 }
0x1ab0   :  { %7008 = vpow2.f32 %v4937_v9 }
0x1ab5   :  { %4451 = vrot.lane.b32.xlu0 %v8432_v45, %s7236_s15 }
0x1ab8   :  { %4453 = vrot.lane.b32.xlu1 %v8438_v2, %s7236_s15  ;;  %v8531_v12 = vpop.eup %7006 }
0x1ab9   :  { %v4951_v14 = vsel %vm229_vm2, %v8531_v12, 0.0 }
0x1aba   :  { %v8535_v22 = vpop.eup %7008 }
0x1abb   :  { %v4954_v23 = vsel %vm229_vm2, %v8535_v22, 0.0 }
0x1ad4   :  { %4952 = vadd.xlane.f32.xlu0 %v4951_v14 }
0x1adc   :  { %4955 = vadd.xlane.f32.xlu1 %v4954_v23 }
0x1b1c   :  { %v4911_v42 = vpop.xlane.xlu0 %4910 }
0x1b1d   :  { %v4929_v4 = vsub.f32 %v8516_v50, %v4911_v42 }
0x1b1f   :  { %v4939_v1 = vmul.f32 1.442695, %v4929_v4 }
0x1b20   :  { %v4914_v39 = vpop.xlane.xlu0 %4913 }
0x1b21   :  { %7010 = vpow2.f32 %v4939_v1  ;;  %v4930_v41 = vsub.f32 %v4898_v18, %v4914_v39 }
0x1b23   :  { %v4941_v25 = vmul.f32 1.442695, %v4930_v41 }
0x1b24   :  { %v4917_v62 = vpop.xlane.xlu0 %4916 }
0x1b25   :  { %7012 = vpow2.f32 %v4941_v25  ;;  %v4931_v61 = vsub.f32 %v4899_v33, %v4917_v62  ;;  %v6054_v62 = vcombine.low %v8406_v15, %v8406_v15 }
0x1b27   :  { %v4943_v58 = vmul.f32 1.442695, %v4931_v61 }
0x1b29   :  { %7014 = vpow2.f32 %v4943_v58 }
0x1b2b   :  { %v8540_v26 = vpop.eup %7010 }
0x1b2c   :  { %v4923_v7 = vpop.xlane.xlu0 %4922  ;;  %v4920_v8 = vpop.xlane.xlu1 %4919  ;;  %v4957_v63 = vsel %vm229_vm2, %v8540_v26, 0.0 }
0x1b2d   :  { %v4933_v27 = vsub.f32 %v4901_v19, %v4923_v7  ;;  %v4932_v47 = vsub.f32 %v4900_v32, %v4920_v8  ;;  %4958 = vadd.xlane.f32.xlu0 %v4957_v63 }
0x1b2f   :  { %v8544_v50 = vpop.eup %7012  ;;  %v4945_v59 = vmul.f32 1.442695, %v4932_v47  ;;  %v4947_v18 = vmul.f32 1.442695, %v4933_v27 }
0x1b30   :  { %v4452_v57 = vpop.permute.xlu0 %4451  ;;  %v4960_v33 = vsel %vm229_vm2, %v8544_v50, 0.0 }
0x1b31   :  { %4457 = vst.msk [vmem:[#allocation6] sm:$0xff] %vm229_vm2, %v4452_v57  ;;  %4459 = vst.msk [vmem:[#allocation6 + $0x10] sm:$0xff] %vm229_vm2, %v4452_v57  ;;  %4961 = vadd.xlane.f32.xlu1 %v4960_v33  ;;  %7016 = vpow2.f32 %v4945_v59 }
0x1b32   :  { %7018 = vpow2.f32 %v4947_v18 }
0x1b33   :  { %v8550_v10 = vpop.eup %7014 }
0x1b34   :  { %v4926_v34 = vpop.xlane.xlu1 %4925  ;;  %v4963_v44 = vsel %vm229_vm2, %v8550_v10, 0.0 }
0x1b35   :  { %v4934_v31 = vsub.f32 %v4902_v46, %v4926_v34  ;;  %4964 = vadd.xlane.f32.xlu1 %v4963_v44 }
0x1b37   :  { %v4949_v43 = vmul.f32 1.442695, %v4934_v31 }
0x1b38   :  { %v4454_v32 = vpop.permute.xlu1 %4453  ;;  %v4503_v51 = vld [vmem:[#allocation6] sm:$0xff]  ;;  %v4505_v5 = vld [vmem:[#allocation6 + $0x10] sm:$0xff] }
0x1b39   :  { %7020 = vpow2.f32 %v4949_v43  ;;  %4458 = vst.msk [vmem:[#allocation6 + $0x8] sm:$0xff] %vm229_vm2, %v4454_v32  ;;  %4460 = vst.msk [vmem:[#allocation6 + $0x18] sm:$0xff] %vm229_vm2, %v4454_v32  ;;  %v4511_v19 = vpack.c.bf16 %v4503_v51, %v4503_v51  ;;  %v4513_v24 = vpack.c.bf16 %v4505_v5, %v4505_v5 }
0x1b3b   :  { %v5003_v37 = vsel %vm838_vm3, %v4511_v19, 0  ;;  %v8557_v38 = vpop.eup %7016 }
0x1b3c   :  { %6745 = vmatpush3.bf16.msra.mxu1 %v5003_v37  ;;  %v4966_v40 = vsel %vm229_vm2, %v8557_v38, 0.0  ;;  %v8562_v36 = vpop.eup %7018 }
0x1b3d   :  { %6756 = vmatprep.subr.bf16.mxu1 %v7231_v17  ;;  %4967 = vadd.xlane.f32.xlu0 %v4966_v40  ;;  %v4969_v13 = vsel %vm229_vm2, %v8562_v36, 0.0 }
0x1b40   :  { %v4504_v52 = vld [vmem:[#allocation6 + $0x8] sm:$0xff]  ;;  %v4506_v9 = vld [vmem:[#allocation6 + $0x18] sm:$0xff] }
0x1b41   :  { %v4512_v35 = vpack.c.bf16 %v4504_v52, %v4504_v52  ;;  %4970 = vadd.xlane.f32.xlu0 %v4969_v13 }
0x1b43   :  { %v8566_v30 = vpop.eup %7020  ;;  %v5049_v29 = vsel %vm838_vm3, %v4512_v35, 0 }
0x1b44   :  { %6751 = vmatpush3.bf16.msra.mxu0 %v5049_v29  ;;  %v4972_v46 = vsel %vm229_vm2, %v8566_v30, 0.0 }
0x1b45   :  { %4973 = vadd.xlane.f32.xlu1 %v4972_v46  ;;  %6762 = vmatprep.subr.bf16.mxu0 %v7231_v17 }
0x1b56   :  { %4463 = vrot.lane.b32.xlu1 %v8438_v2, %s7237_s17  ;;  %v6050_v2 = vcombine.low %v8391_v20, %v8391_v20  ;;  %v4514_v20 = vpack.c.bf16 %v4506_v9, %v4506_v9 }
0x1b57   :  { %4461 = vrot.lane.b32.xlu0 %v8432_v45, %s7237_s17  ;;  %v5095_v45 = vsel %vm838_vm3, %v4513_v24, 0 }
0x1b58   :  { %v5141_v42 = vsel %vm838_vm3, %v4514_v20, 0 }
0x1b5a   :  { %5378 = vrot.lane.b32.xlu1 %v6048_v11, %s7233_s16 }
0x1b5e   :  { %5435 = vrot.lane.b32.xlu1 %v6050_v2, %s7233_s16 }
0x1b61   :  { %v4953_v60 = vpop.xlane.xlu0 %4952 }
0x1b62   :  { %7022 = vrcp.f32 %v4953_v60  ;;  %5541 = vrot.lane.b32.xlu1 %v6054_v62, %s7233_s16 }
0x1b69   :  { %v4956_v55 = vpop.xlane.xlu1 %4955 }
0x1b6a   :  { %7024 = vrcp.f32 %v4956_v55 }
0x1b6c   :  { %v7023_v6 = vpop.eup %7022 }
0x1b6d   :  { %v4976_v16 = vmul.f32 %v7023_v6, %v8531_v12 }
0x1b6f   :  { %5368 = vst.msk [vmem:[#allocation16 + $0x40] sm:$0xff] %vm229_vm2, %v4976_v16  ;;  %v4991_v56 = vpack.c.bf16 %v4976_v16, %v4976_v16 }
0x1b71   :  { %6747 = vmatmul.mubr.msk.bf16.vlgmr.msra.gmra.mrb[152].mxu1 %vm229_vm2, %v4991_v56 }
0x1b72   :  { %6757 = vmatpush3.bf16.msra.mxu1 %v5095_v45  ;;  %6758 = vmatprep.mubr.msk.bf16.mxu1 %vm7232_vm1, %v7231_v17 }
0x1b73   :  { %6768 = vmatprep.subr.bf16.mxu1 %v7231_v17 }
0x1b74   :  { %v7025_v12 = vpop.eup %7024 }
0x1b75   :  { %v4978_v14 = vmul.f32 %v7025_v12, %v8535_v22  ;;  %v6052_v22 = vcombine.low %v8401_v3, %v8401_v3 }
0x1b77   :  { %5369 = vst.msk [vmem:[#allocation16 + $0x48] sm:$0xff] %vm229_vm2, %v4978_v14  ;;  %v4992_v23 = vpack.c.bf16 %v4978_v14, %v4978_v14  ;;  %5488 = vrot.lane.b32.xlu0 %v6052_v22, %s7233_s16 }
0x1b79   :  { %6753 = vmatmul.mubr.msk.bf16.vlgmr.msra.gmra.mrb[152].mxu0 %vm229_vm2, %v4992_v23 }
0x1b7a   :  { %6763 = vmatpush3.bf16.msra.mxu0 %v5141_v42  ;;  %6764 = vmatprep.mubr.msk.bf16.mxu0 %vm7232_vm1, %v7231_v17 }
0x1b7b   :  { %6774 = vmatprep.subr.bf16.mxu0 %v7231_v17 }
0x1bba   :  { %v4959_v4 = vpop.xlane.xlu0 %4958 }
0x1bbb   :  { %7026 = vrcp.f32 %v4959_v4 }
0x1bbe   :  { %v4962_v1 = vpop.xlane.xlu1 %4961 }
0x1bbf   :  { %7028 = vrcp.f32 %v4962_v1 }
0x1bc2   :  { %v4965_v39 = vpop.xlane.xlu1 %4964 }
0x1bc3   :  { %7030 = vrcp.f32 %v4965_v39 }
0x1bc5   :  { %v7027_v41 = vpop.eup %7026 }
0x1bc6   :  { %v4980_v25 = vmul.f32 %v7027_v41, %v8540_v26 }
0x1bc8   :  { %5370 = vst.msk [vmem:[#allocation16 + $0x50] sm:$0xff] %vm229_vm2, %v4980_v25  ;;  %v4993_v61 = vpack.c.bf16 %v4980_v25, %v4980_v25 }
0x1bc9   :  { %v7029_v58 = vpop.eup %7028 }
0x1bca   :  { %v4982_v7 = vmul.f32 %v7029_v58, %v8544_v50  ;;  %6759 = vmatmul.mubr.msk.bf16.vlgmr.msra.gmra.mrb[156].mxu1 %vm229_vm2, %v4993_v61  ;;  %v4968_v8 = vpop.xlane.xlu0 %4967 }
0x1bcb   :  { %6770 = vmatprep.mubr.msk.bf16.mxu1 %vm7232_vm1, %v7231_v17  ;;  %7032 = vrcp.f32 %v4968_v8 }
0x1bcc   :  { %5371 = vst.msk [vmem:[#allocation16 + $0x58] sm:$0xff] %vm229_vm2, %v4982_v7  ;;  %v4994_v3 = vpack.c.bf16 %v4982_v7, %v4982_v7 }
0x1bcd   :  { %v7031_v26 = vpop.eup %7030 }
0x1bce   :  { %v4984_v15 = vmul.f32 %v7031_v26, %v8550_v10  ;;  %6765 = vmatmul.mubr.msk.bf16.vlgmr.msra.gmra.mrb[156].mxu0 %vm229_vm2, %v4994_v3  ;;  %v4971_v63 = vpop.xlane.xlu0 %4970 }
0x1bcf   :  { %6776 = vmatprep.mubr.msk.bf16.mxu0 %vm7232_vm1, %v7231_v17  ;;  %7034 = vrcp.f32 %v4971_v63 }
0x1bd0   :  { %5372 = vst.msk [vmem:[#allocation16 + $0x60] sm:$0xff] %vm229_vm2, %v4984_v15  ;;  %v4995_v40 = vpack.c.bf16 %v4984_v15, %v4984_v15 }
0x1bd2   :  { %v4974_v27 = vpop.xlane.xlu1 %4973  ;;  %v4462_v47 = vpop.permute.xlu0 %4461 }
0x1bd3   :  { %7036 = vrcp.f32 %v4974_v27  ;;  %4467 = vst.msk [vmem:[#allocation6 + $0x20] sm:$0xff] %vm229_vm2, %v4462_v47  ;;  %4469 = vst.msk [vmem:[#allocation6 + $0x30] sm:$0xff] %vm229_vm2, %v4462_v47 }
0x1bd5   :  { %v7033_v50 = vpop.eup %7032 }
0x1bd6   :  { %v4464_v59 = vpop.permute.xlu1 %4463  ;;  %v4986_v18 = vmul.f32 %v7033_v50, %v8557_v38 }
0x1bd7   :  { %4468 = vst.msk [vmem:[#allocation6 + $0x28] sm:$0xff] %vm229_vm2, %v4464_v59  ;;  %4470 = vst.msk [vmem:[#allocation6 + $0x38] sm:$0xff] %vm229_vm2, %v4464_v59 }
0x1bd8   :  { %5373 = vst.msk [vmem:[#allocation16 + $0x68] sm:$0xff] %vm229_vm2, %v4986_v18  ;;  %v4996_v35 = vpack.c.bf16 %v4986_v18, %v4986_v18 }
0x1bd9   :  { %v7035_v57 = vpop.eup %7034 }
0x1bda   :  { %v4988_v33 = vmul.f32 %v7035_v57, %v8562_v36  ;;  %v4507_v10 = vld [vmem:[#allocation6 + $0x20] sm:$0xff]  ;;  %v4509_v34 = vld [vmem:[#allocation6 + $0x30] sm:$0xff]  ;;  %v5379_v29 = vpop.permute.xlu1 %5378 }
0x1bdb   :  { %v4515_v44 = vpack.c.bf16 %v4507_v10, %v4507_v10  ;;  %v4517_v19 = vpack.c.bf16 %v4509_v34, %v4509_v34  ;;  %v5384_v11 = vsel %vm838_vm3, %v5379_v29, 0 }
0x1bdc   :  { %5374 = vst.msk [vmem:[#allocation16 + $0x70] sm:$0xff] %vm229_vm2, %v4988_v33  ;;  %v4997_v46 = vpack.c.bf16 %v4988_v33, %v4988_v33 }
0x1bdd   :  { %v7037_v31 = vpop.eup %7036  ;;  %v5187_v32 = vsel %vm838_vm3, %v4515_v44, 0  ;;  %v5279_v13 = vsel %vm838_vm3, %v4517_v19, 0 }
0x1bde   :  { %v4990_v43 = vmul.f32 %v7037_v31, %v8566_v30  ;;  %v4508_v51 = vld [vmem:[#allocation6 + $0x28] sm:$0xff]  ;;  %v4510_v37 = vld [vmem:[#allocation6 + $0x38] sm:$0xff]  ;;  %6769 = vmatpush3.bf16.msra.mxu1 %v5187_v32  ;;  %v5436_v55 = vpop.permute.xlu1 %5435 }
0x1bdf   :  { %v4516_v38 = vpack.c.bf16 %v4508_v51, %v4508_v51  ;;  %6780 = vmatprep.subr.bf16.mxu1 %v7231_v17  ;;  %v4518_v52 = vpack.c.bf16 %v4510_v37, %v4510_v37  ;;  %v5441_v5 = vsel %vm838_vm3, %v5436_v55, 0 }
0x1be0   :  { %5375 = vst.msk [vmem:[#allocation16 + $0x78] sm:$0xff] %vm229_vm2, %v4990_v43  ;;  %v4998_v60 = vpack.c.bf16 %v4990_v43, %v4990_v43 }
0x1be1   :  { %v5233_v36 = vsel %vm838_vm3, %v4516_v38, 0  ;;  %6771 = vmatmul.mubr.msk.bf16.vlgmr.msra.gmra.mrb[160].mxu1 %vm229_vm2, %v4995_v40  ;;  %v5325_v30 = vsel %vm838_vm3, %v4518_v52, 0  ;;  %v5430_v40 = vrot.slane %v8428_v21, %v7733_v53 }
0x1be2   :  { %6775 = vmatpush3.bf16.msra.mxu0 %v5233_v36  ;;  %6781 = vmatpush3.bf16.msra.mxu1 %v5279_v13  ;;  %v5542_v39 = vpop.permute.xlu1 %5541 }
0x1be3   :  { %6786 = vmatprep.subr.bf16.mxu0 %v7231_v17  ;;  %6782 = vmatprep.mubr.msk.bf16.mxu1 %vm7232_vm1, %v7231_v17  ;;  %v5547_v61 = vsel %vm838_vm3, %v5542_v39, 0 }
0x1be4   :  { %6792 = vmatprep.subr.bf16.mxu1 %v7231_v17 }
0x1be5   :  { %6777 = vmatmul.mubr.msk.bf16.vlgmr.msra.gmra.mrb[160].mxu0 %vm229_vm2, %v4996_v35 }
0x1be6   :  { %6787 = vmatpush3.bf16.msra.mxu0 %v5325_v30  ;;  %6788 = vmatprep.mubr.msk.bf16.mxu0 %vm7232_vm1, %v7231_v17 }
0x1be7   :  { %6798 = vmatprep.subr.bf16.mxu0 %v7231_v17 }
0x1be9   :  { %6783 = vmatmul.mubr.msk.bf16.vlgmr.msra.gmra.mrb[164].mxu1 %vm229_vm2, %v4997_v46  ;;  %v5489_v56 = vpop.permute.xlu0 %5488 }
0x1bea   :  { %6793 = vmatpush3.bf16.msra.mxu1 %v5384_v11  ;;  %6794 = vmatprep.mubr.msk.bf16.mxu1 %vm7232_vm1, %v7231_v17  ;;  %v5494_v14 = vsel %vm838_vm3, %v5489_v56, 0 }
0x1beb   :  { %6804 = vmatprep.subr.bf16.mxu1 %v7231_v17 }
0x1bed   :  { %6789 = vmatmul.mubr.msk.bf16.vlgmr.msra.gmra.mrb[164].mxu0 %vm229_vm2, %v4998_v60 }
0x1bee   :  { %6800 = vmatprep.mubr.msk.bf16.mxu0 %vm7232_vm1, %v7231_v17  ;;  %6799 = vmatpush3.bf16.msra.mxu0 %v5441_v5 }
0x1bef   :  { %6810 = vmatprep.subr.bf16.mxu0 %v7231_v17 }
0x1c44   :  { %v5039_v6 = vpop.f32.mrb[152].mxu1 }
0x1c45   :  { %v6748_v16 = vpop.f32.mrb[153].mxu1 }
0x1c46   :  { %v5042_v24 = vpop.f32.mrb[154].mxu1 }
0x1c47   :  { %v6749_v2 = vpop.f32.mrb[155].mxu1 }
0x1c4c   :  { %v5085_v45 = vpop.f32.mrb[152].mxu0 }
0x1c4d   :  { %v5376_v9 = vpack.c.bf16 %v5085_v45, %v5039_v6  ;;  %v6754_v12 = vpop.f32.mrb[153].mxu0 }
0x1c4e   :  { %v5088_v20 = vpop.f32.mrb[154].mxu0 }
0x1c4f   :  { %v6755_v23 = vpop.f32.mrb[155].mxu0  ;;  %6795 = vmatmul.mubr.msk.bf16.vlgmr.msra.gmra.mrb[168].mxu1 %vm229_vm2, %v5376_v9 }
0x1c50   :  { %6805 = vmatpush3.bf16.msra.mxu1 %v5494_v14  ;;  %6806 = vmatprep.mubr.msk.bf16.mxu1 %vm7232_vm1, %v7231_v17 }
0x1c51   :  { %6816 = vmatprep.subr.bf16.mxu1 %v7231_v17 }
0x1c9d   :  { %v5131_v42 = vpop.f32.mrb[156].mxu1 }
0x1c9e   :  { %v6760_v4 = vpop.f32.mrb[157].mxu1 }
0x1c9f   :  { %v5134_v1 = vpop.f32.mrb[158].mxu1 }
0x1ca0   :  { %v6761_v22 = vpop.f32.mrb[159].mxu1 }
0x1ca1   :  { %v5177_v41 = vpop.f32.mrb[156].mxu0 }
0x1ca2   :  { %v5433_v25 = vpack.c.bf16 %v5177_v41, %v5131_v42  ;;  %v6766_v62 = vpop.f32.mrb[157].mxu0 }
0x1ca3   :  { %v5180_v58 = vpop.f32.mrb[158].mxu0 }
0x1ca4   :  { %v6767_v7 = vpop.f32.mrb[159].mxu0  ;;  %6801 = vmatmul.mubr.msk.bf16.vlgmr.msra.gmra.mrb[168].mxu0 %vm229_vm2, %v5433_v25  ;;  %v7079_v58 = vld [vmem:[%s8773_s5 + $0x3c] sm:$0xff] }
0x1ca5   :  { %6811 = vmatpush3.bf16.msra.mxu0 %v5547_v61  ;;  %6812 = vmatprep.mubr.msk.bf16.mxu0 %vm7232_vm1, %v7231_v17  ;;  %v7078_v61 = vld [vmem:[%s8773_s5 + $0x30] sm:$0xff] }
0x1ca6   :  { %6824 = vmatprep.subr.bf16.mxu0 %v7231_v17  ;;  %v6056_v7 = vcombine.low %v7078_v61, %v7079_v58 }
0x1cb4   :  { %v5223_v8 = vpop.f32.mrb[160].mxu1 }
0x1cb5   :  { %v6772_v3 = vpop.f32.mrb[161].mxu1 }
0x1cb6   :  { %v5226_v26 = vpop.f32.mrb[162].mxu1  ;;  %v7081_v3 = vld [vmem:[%s8773_s5 + $0x54] sm:$0xff] }
0x1cb7   :  { %v6773_v15 = vpop.f32.mrb[163].mxu1 }
0x1cb8   :  { %v5269_v63 = vpop.f32.mrb[160].mxu0 }
0x1cb9   :  { %v5486_v27 = vpack.c.bf16 %v5269_v63, %v5223_v8  ;;  %v6778_v47 = vpop.f32.mrb[161].mxu0  ;;  %v7080_v8 = vld [vmem:[%s8773_s5 + $0x48] sm:$0xff] }
0x1cba   :  { %v5272_v50 = vpop.f32.mrb[162].mxu0  ;;  %v6057_v26 = vcombine.low %v7080_v8, %v7081_v3  ;;  %v6881_v8 = vld [vmem:[%s8776_s8 + $0x8] sm:$0xff]  }
0x1cbb   :  { %v6779_v59 = vpop.f32.mrb[163].mxu0  ;;  %6807 = vmatmul.mubr.msk.bf16.vlgmr.msra.gmra.mrb[172].mxu1 %vm229_vm2, %v5486_v27 }
0x1cbc   :  { %6820 = vmatprep.mubr.msk.bf16.mxu1 %vm7232_vm1, %v7231_v17  ;;  %v5315_v18 = vpop.f32.mrb[164].mxu1  ;;  %6817 = vmatpush3.bf16.msra.mxu1 %v6056_v7  ;;  %v6880_v7 = vld [vmem:[%s8776_s8] sm:$0xff]   ;;  %s7242_s8 = smov [#allocation16]  }
0x1cbd   :  { %v6784_v57 = vpop.f32.mrb[165].mxu1  ;;  %6818 = vmatprep.subr.bf16.mxu1 %v7231_v17  ;;  %s5900_s22 = sshll.u32 %s7242_s8, 4  ;;  %s5901_s22 = int_to_ptr.vmem [resolvable:$true] %s5900_s22 }
0x1cbe   :  { %v5318_v33 = vpop.f32.mrb[166].mxu1  ;;  %v7082_v57 = vld [vmem:[%s8772_s4 + $0x10] sm:$0xff]  ;;  %s7171_s23 = scalar_lea.vmem %s5901_s22, 2048  ;;  %p7176_p5 = scmp.lt.s32.totalorder %s5901_s22, %s5901_s22 }
0x1cbf   :  { %v6785_v10 = vpop.f32.mrb[167].mxu1  ;;  %v5623_v33 = vrot.slane %v7082_v57, %v2796_v48  ;;  %v6876_v48 = vld [vmem:[%s8774_s6 + $0x20] sm:$0xff]   ;;  %p7172_p4 = scmp.ne.s32.totalorder %s5901_s22, %s7171_s23  ;;  %p7177_p6 = scmp.lt.s32.totalorder %s7171_s23, %s7171_s23 }
0x1cc0   :  { %v5361_v34 = vpop.f32.mrb[164].mxu0  ;;  %6819 = vmatpush3.bf16.msra.mxu1 %v6057_v26 }
0x1cc1   :  { %v5539_v44 = vpack.c.bf16 %v5361_v34, %v5315_v18  ;;  %v6790_v31 = vpop.f32.mrb[165].mxu0  ;;  %6836 = vmatprep.subr.bf16.mxu1 %v7231_v17  ;;  %p7178_p7 = por %p7177_p6, %p7176_p5 }
0x1cc2   :  { %v5364_v43 = vpop.f32.mrb[166].mxu0 }
0x1cc3   :  { %v6791_v32 = vpop.f32.mrb[167].mxu0  ;;  %6813 = vmatmul.mubr.msk.bf16.vlgmr.msra.gmra.mrb[172].mxu0 %vm229_vm2, %v5539_v44  ;;  %v5629_v43 = vrot.slane %v7082_v57, %v2802_v0  ;;  %v6879_v0 = vld [vmem:[%s8774_s6 + $0x38] sm:$0xff]   ;;  %p7179_p8 = pnand %p7178_p7, %p7172_p4 }
0x1cc4   :  { %6832 = vmatprep.mubr.msk.bf16.mxu0 %vm7232_vm1, %v7231_v17  ;;  %6825 = vmatpush3.bf16.msra.mxu0 %v6876_v48 }
0x1cc5   :  { %6826 = vmatprep.subr.bf16.mxu0 %v7231_v17 }
0x1d22   :  { %v5420_v51 = vpop.f32.mrb[168].mxu1 }
0x1d23   :  { %v6796_v19 = vpop.f32.mrb[169].mxu1  ;;  %v5431_v36 = vadd.f32 %v5430_v40, %v5420_v51 }
0x1d24   :  { %v5423_v37 = vpop.f32.mrb[170].mxu1 }
0x1d25   :  { %v6797_v38 = vpop.f32.mrb[171].mxu1  ;;  %v5432_v13 = vadd.f32 %v5430_v40, %v5423_v37 }
0x1d26   :  { %v6877_v38 = vld [vmem:[%s8774_s6 + $0x28] sm:$0xff]  }
0x1d27   :  { %6827 = vmatpush3.bf16.msra.mxu0 %v6877_v38 }
0x1d28   :  { %6828 = vmatprep.subr.bf16.mxu0 %v7231_v17 }
0x1d2b   :  { %6829 = vmatpush3.bf16.msra.mxu0 %v6878_v28 }
0x1d2c   :  { %6830 = vmatprep.subr.bf16.mxu0 %v7231_v17 }
0x1d2f   :  { %6831 = vmatpush3.bf16.msra.mxu0 %v6879_v0 }
0x1d77   :  { %v5477_v52 = vpop.f32.mrb[168].mxu0 }
0x1d78   :  { %v5484_v35 = vadd.f32 %v5477_v52, %v5431_v36  ;;  %v6802_v30 = vpop.f32.mrb[169].mxu0 }
0x1d79   :  { %v5480_v29 = vpop.f32.mrb[170].mxu0 }
0x1d7a   :  { %v5485_v46 = vadd.f32 %v5480_v29, %v5432_v13  ;;  %v6803_v11 = vpop.f32.mrb[171].mxu0 }
0x1d8e   :  { %v5530_v60 = vpop.f32.mrb[172].mxu1 }
0x1d8f   :  { %v5537_v55 = vadd.f32 %v5530_v60, %v5484_v35  ;;  %v6808_v5 = vpop.f32.mrb[173].mxu1 }
0x1d90   :  { %v5533_v6 = vpop.f32.mrb[174].mxu1 }
0x1d91   :  { %v5538_v16 = vadd.f32 %v5533_v6, %v5485_v46  ;;  %v6809_v24 = vpop.f32.mrb[175].mxu1 }
0x1d96   :  { %v5583_v2 = vpop.f32.mrb[172].mxu0 }
0x1d97   :  { %v5590_v56 = vadd.f32 %v5583_v2, %v5537_v55  ;;  %v6814_v45 = vpop.f32.mrb[173].mxu0 }
0x1d98   :  { %v5586_v9 = vpop.f32.mrb[174].mxu0 }
0x1d99   :  { %v8667_v53 = vadd.f32 %v5590_v56, %v8368_v54  ;;  %v5591_v21 = vadd.f32 %v5586_v9, %v5538_v16  ;;  %v6815_v12 = vpop.f32.mrb[175].mxu0 }
0x1d9b   :  { %v8670_v14 = vadd.f32 %v5591_v21, %v8371_v49  ;;  %v5594_v20 = vsel %vm128_vm0, %v8667_v53, 0.0 }
0x1d9c   :  { %5595 = vadd.xlane.f32.xlu0 %v5594_v20 }
0x1d9d   :  { %v5597_v23 = vsel %vm128_vm0, %v8670_v14, 0.0 }
0x1d9e   :  { %5598 = vadd.xlane.f32.xlu1 %v5597_v23 }
0x1e29   :  { %v5596_v42 = vpop.xlane.xlu0 %5595 }
0x1e2a   :  { %v5600_v4 = vmul.f32 0.03125, %v5596_v42 }
0x1e2b   :  { %v5599_v1 = vpop.xlane.xlu1 %5598 }
0x1e2c   :  { %v5602_v39 = vsub.f32 %v8667_v53, %v5600_v4  ;;  %v5601_v54 = vmul.f32 0.03125, %v5599_v1 }
0x1e2e   :  { %v5603_v22 = vsub.f32 %v8670_v14, %v5601_v54  ;;  %v5604_v41 = vmul.f32 %v5602_v39, %v5602_v39 }
0x1e30   :  { %v5606_v49 = vsel %vm128_vm0, %v5604_v41, 0.0  ;;  %v5605_v25 = vmul.f32 %v5603_v22, %v5603_v22 }
0x1e31   :  { %5607 = vadd.xlane.f32.xlu0 %v5606_v49 }
0x1e32   :  { %v5609_v62 = vsel %vm128_vm0, %v5605_v25, 0.0 }
0x1e35   :  { %5610 = vadd.xlane.f32.xlu0 %v5609_v62 }
0x1ebe   :  { %v5608_v15 = vpop.xlane.xlu0 %5607 }
0x1ebf   :  { %v5612_v63 = vmul.f32 0.03125, %v5608_v15 }
0x1ec1   :  { %v5614_v27 = vadd.f32 1e-05, %v5612_v63 }
0x1ec2   :  { %v5611_v47 = vpop.xlane.xlu0 %5610 }
0x1ec3   :  { %7038 = vrsqrt.f32 %v5614_v27  ;;  %v5613_v50 = vmul.f32 0.03125, %v5611_v47 }
0x1ec5   :  { %v5615_v59 = vadd.f32 1e-05, %v5613_v50 }
0x1ec7   :  { %7040 = vrsqrt.f32 %v5615_v59  ;;  %v6066_v59 = vld [vmem:[#allocation13] ss:$0 sm:$0xff] }
0x1ecd   :  { %v7039_v18 = vpop.eup %7038 }
0x1ece   :  { %v5618_v10 = vmul.f32 %v7039_v18, %v5602_v39 }
0x1ed0   :  { %v5624_v44 = vmul.f32 %v5623_v33, %v5618_v10 }
0x1ed1   :  { %v7041_v34 = vpop.eup %7040 }
0x1ed2   :  { %v5619_v31 = vmul.f32 %v7041_v34, %v5603_v22  ;;  %v5630_v51 = vadd.f32 %v5629_v43, %v5624_v44  ;;  %v6067_v34 = vld [vmem:[#allocation13 + $0x1] ss:$0 sm:$0xff] }
0x1ed4   :  { %v5625_v32 = vmul.f32 %v5623_v33, %v5619_v31 }
0x1ed6   :  { %v5631_v19 = vadd.f32 %v5629_v43, %v5625_v32 }
0x1ed8   :  { %v5632_v37 = vpack.c.bf16 %v5631_v19, %v5630_v51 }
0x1eda   :  { %6821 = vmatmul.mubr.msk.bf16.vlgmr.msra.gmra.mrb[176].mxu1 %vm128_vm0, %v5632_v37 }
0x1edb   :  { %6840 = vmatprep.mubr.msk.bf16.mxu1 %vm7232_vm1, %v7231_v17  ;;  %6837 = vmatpush3.bf16.msra.mxu1 %v6880_v7 }
0x1edc   :  { %6838 = vmatprep.subr.bf16.mxu1 %v7231_v17 }
0x1edf   :  { %6839 = vmatpush3.bf16.msra.mxu1 %v6881_v8 }
0x1fad   :  { %v5678_v40 = vpop.f32.mrb[176].mxu1 }
0x1fae   :  { %5701 = vrot.lane.b32.xlu0 %v5678_v40, %s7240_s1  ;;  %v6822_v36 = vpop.f32.mrb[177].mxu1  ;;  %v6059_v35 = vmul.f32 -1.442695, %v5678_v40 }
0x1faf   :  { %v5681_v52 = vpop.f32.mrb[178].mxu1 }
0x1fb0   :  { %5703 = vrot.lane.b32.xlu1 %v5681_v52, %s7240_s1  ;;  %v6823_v13 = vpop.f32.mrb[179].mxu1  ;;  %v6060_v30 = vmul.f32 -1.442695, %v5681_v52  ;;  %7042 = vpow2.f32 %v6059_v35 }
0x1fb2   :  { %7044 = vpow2.f32 %v6060_v30 }
0x1fba   :  { %v7043_v29 = vpop.eup %7042 }
0x1fbb   :  { %v5691_v11 = vadd.f32 1.0, %v7043_v29 }
0x1fbc   :  { %v7045_v46 = vpop.eup %7044 }
0x1fbd   :  { %v5692_v60 = vadd.f32 1.0, %v7045_v46  ;;  %7046 = vrcp.f32 %v5691_v11 }
0x1fbf   :  { %7048 = vrcp.f32 %v5692_v60 }
0x1fc7   :  { %v7047_v55 = vpop.eup %7046 }
0x1fc8   :  { %v5697_v16 = vmul.f32 %v7047_v55, %v5678_v40 }
0x1fc9   :  { %v7049_v5 = vpop.eup %7048 }
0x1fca   :  { %v5698_v24 = vmul.f32 %v7049_v5, %v5681_v52 }
0x2020   :  { %v5702_v6 = vpop.permute.xlu0 %5701 }
0x2021   :  { %v5707_v56 = vmul.f32 %v5702_v6, %v5697_v16 }
0x2022   :  { %v5704_v2 = vpop.permute.xlu1 %5703 }
0x2023   :  { %v5708_v45 = vmul.f32 %v5704_v2, %v5698_v24 }
0x2025   :  { %v5709_v9 = vpack.c.bf16 %v5708_v45, %v5707_v56 }
0x2027   :  { %6833 = vmatmul.mubr.msk.bf16.vlgmr.msra.gmra.mrb[176].mxu0 %vm2908_vm4, %v5709_v9 }
0x20fa   :  { %v5771_v21 = vpop.f32.mrb[176].mxu0 }
0x20fb   :  { %v5778_v12 = vadd.f32 %v5771_v21, %v8667_v53  ;;  %v6834_v20 = vpop.f32.mrb[177].mxu0 }
0x20fc   :  { %v5774_v23 = vpop.f32.mrb[178].mxu0 }
0x20fd   :  { %v5779_v42 = vadd.f32 %v5774_v23, %v8670_v14  ;;  %v6835_v4 = vpop.f32.mrb[179].mxu0  ;;  %v5782_v1 = vsel %vm128_vm0, %v5778_v12, 0.0 }
0x20fe   :  { %5783 = vadd.xlane.f32.xlu1 %v5782_v1 }
0x20ff   :  { %v5785_v39 = vsel %vm128_vm0, %v5779_v42, 0.0 }
0x2100   :  { %5786 = vadd.xlane.f32.xlu0 %v5785_v39 }
0x218b   :  { %v5784_v54 = vpop.xlane.xlu1 %5783 }
0x218c   :  { %v5788_v22 = vmul.f32 0.03125, %v5784_v54 }
0x218d   :  { %v5787_v41 = vpop.xlane.xlu0 %5786 }
0x218e   :  { %v5790_v49 = vsub.f32 %v5778_v12, %v5788_v22  ;;  %v5789_v25 = vmul.f32 0.03125, %v5787_v41 }
0x2190   :  { %v5791_v62 = vsub.f32 %v5779_v42, %v5789_v25  ;;  %v5792_v61 = vmul.f32 %v5790_v49, %v5790_v49 }
0x2192   :  { %v5794_v53 = vsel %vm128_vm0, %v5792_v61, 0.0  ;;  %v5793_v58 = vmul.f32 %v5791_v62, %v5791_v62 }
0x2193   :  { %5795 = vadd.xlane.f32.xlu0 %v5794_v53 }
0x2194   :  { %v5797_v14 = vsel %vm128_vm0, %v5793_v58, 0.0 }
0x2195   :  { %5798 = vadd.xlane.f32.xlu1 %v5797_v14 }
0x2220   :  { %v5796_v3 = vpop.xlane.xlu0 %5795 }
0x2221   :  { %v5800_v26 = vmul.f32 0.03125, %v5796_v3 }
0x2222   :  { %v5799_v15 = vpop.xlane.xlu1 %5798 }
0x2223   :  { %v5802_v63 = vadd.f32 1e-05, %v5800_v26  ;;  %v5801_v27 = vmul.f32 0.03125, %v5799_v15 }
0x2225   :  { %7050 = vrsqrt.f32 %v5802_v63  ;;  %v5803_v47 = vadd.f32 1e-05, %v5801_v27 }
0x2227   :  { %7052 = vrsqrt.f32 %v5803_v47 }
0x222f   :  { %v7051_v50 = vpop.eup %7050 }
0x2230   :  { %v5806_v18 = vmul.f32 %v7051_v50, %v5790_v49 }
0x2231   :  { %v7053_v57 = vpop.eup %7052 }
0x2232   :  { %v5812_v33 = vmul.f32 %v6066_v59, %v5806_v18  ;;  %v5807_v10 = vmul.f32 %v7053_v57, %v5791_v62 }
0x2234   :  { %v5813_v44 = vmul.f32 %v6066_v59, %v5807_v10  ;;  %v5818_v31 = vadd.f32 %v6067_v34, %v5812_v33 }
0x2236   :  { %v5819_v43 = vadd.f32 %v6067_v34, %v5813_v44 }
0x2238   :  { %v5820_v17 = vpack.c.bf16 %v5819_v43, %v5818_v31 }
0x223a   :  { %6841 = vmatmul.mubr.msk.bf16.vlgmr.msra.gmra.mrb[180].mxu1 %vm128_vm0, %v5820_v17 }
0x223b   :  { %7182 = shalt.err (!%p7179_p8)
}
0x223c   :  { %s7183_s16 = scalar_lea.hbm %s8778_s10, 2048 }
0x223d   :  { %p7184_p9 = scmp.ne.s32.totalorder %s8778_s10, %s7183_s16  ;;  %p7187_p10 = scmp.lt.u32.totalorder %s7183_s16, %s8778_s10 }
0x223f   :  { %p7189_p11 = pnand %p7187_p10, %p7184_p9 }
0x2241   :  { %7192 = shalt.err (!%p7189_p11)
}
0x2242   :  { %5906 = dma.vmem_to_hbm [thread:$0]  %s5901_s22, 2048, %s8778_s10, [#allocation17], %s7227_s25, %s7227_s25, %s7228_s26  }
0x2243   :  { %s7243_s30 = smov [#allocation15]  }
0x2244   :  { %s5888_s11 = sshll.u32 %s7243_s30, 4  ;;  %s5889_s11 = int_to_ptr.vmem [resolvable:$true] %s5888_s11 }
0x2245   :  { %s7193_s19 = scalar_lea.vmem %s5889_s11, 256  ;;  %p7198_p13 = scmp.lt.s32.totalorder %s5889_s11, %s5889_s11 }
0x2246   :  { %p7194_p12 = scmp.ne.s32.totalorder %s5889_s11, %s7193_s19  ;;  %p7199_p0 = scmp.lt.s32.totalorder %s7193_s19, %s7193_s19 }
0x2248   :  { %p7200_p1 = por %p7199_p0, %p7198_p13 }
0x224a   :  { %p7201_p2 = pnand %p7200_p1, %p7194_p12 }
0x230d   :  { %v5874_v32 = vpop.f32.mrb[180].mxu1 }
0x230e   :  { %5881 = vst.msk [vmem:[#allocation15] sm:$0xff] %vm2908_vm4, %v5874_v32  ;;  %v6842_v51 = vpop.f32.mrb[181].mxu1 }
0x230f   :  { %v5877_v19 = vpop.f32.mrb[182].mxu1 }
0x2310   :  { %5882 = vst.msk [vmem:[#allocation15 + $0x8] sm:$0xff] %vm2908_vm4, %v5877_v19  ;;  %v6843_v37 = vpop.f32.mrb[183].mxu1 }
0x2311   :  { %7204 = shalt.err (!%p7201_p2)
}
0x2312   :  { %s7205_s5 = scalar_lea.hbm %s8777_s9, 256 }
0x2313   :  { %p7206_p3 = scmp.ne.s32.totalorder %s8777_s9, %s7205_s5  ;;  %p7209_p4 = scmp.lt.u32.totalorder %s7205_s5, %s8777_s9 }
0x2315   :  { %p7211_p5 = pnand %p7209_p4, %p7206_p3 }
0x2317   :  { %7214 = shalt.err (!%p7211_p5)
}
0x2318   :  { %5894 = dma.vmem_to_hbm [thread:$0]  %s5889_s11, 256, %s8777_s9, [#allocation9], %s7227_s25, %s7227_s25, %s7228_s26  }
0x2319   :  { %7221 = dma.done.wait [#allocation9], 256  }
0x231a   :  { %7222 = vsyncadd [#allocation9], 4294967040 }
0x231b   :  { %7223 = dma.done.wait [#allocation17], 2048  }
0x231c   :  { %7224 = vsyncadd [#allocation17], 4294965248 }
0x231d   :  { %5913 = vsyncpa [#allocation8], 1 }
0x231e   :  { %5914 = vsyncpa [#allocation11], 1 }
0x231f   :  { %5915 = vsyncpa [#allocation14], 1 }
0x2320   :  { %5916 = vsyncpa [#allocation9], 1 }
0x2321   :  { %5917 = vsyncpa [#allocation17], 1 }

</bundles_post_ra>
